<compile_context>
chip_gen: v5e
topology: v5e:2x2
jax: 0.10.0
libtpu: 0.0.40
codegen_flags: <defaults>
</compile_context>

<pallas_src>
import math

import jax
import jax.numpy as jnp
from jax.experimental import pallas as pl
from jax.experimental.pallas import tpu as pltpu


# ----------------------------- helpers -----------------------------

def _tile(dim, cap):
    """Largest clean tile: full dim if small/awkward, else `cap` (must divide)."""
    if dim <= cap or dim % cap != 0:
        return dim
    return cap


# ----------------------------- Pallas kernels -----------------------------

def _matmul_bias_kernel(x_ref, w_ref, b_ref, o_ref, acc_ref):
    # grid = (M/TM, N/TN, K/TK); accumulate over K, add bias + store on last step.
    k = pl.program_id(2)

    @pl.when(k == 0)
    def _():
        acc_ref[...] = jnp.zeros_like(acc_ref)

    acc_ref[...] += jnp.dot(x_ref[...], w_ref[...],
                            preferred_element_type=jnp.float32)

    @pl.when(k == pl.num_programs(2) - 1)
    def _():
        o_ref[...] = (acc_ref[...] + b_ref[...].astype(jnp.float32)).astype(o_ref.dtype)


def _ffn_kernel(x_ref, w1_ref, b1_ref, w2_ref, b2_ref, o_ref, acc_ref):
    # grid = (M/TM, H/TH); o = relu(x @ w1 + b1) @ w2 + b2, accumulated over H tiles.
    j = pl.program_id(1)

    @pl.when(j == 0)
    def _():
        acc_ref[...] = jnp.zeros_like(acc_ref)

    h = jnp.dot(x_ref[...], w1_ref[...], preferred_element_type=jnp.float32)
    h = jnp.maximum(h + b1_ref[...].astype(jnp.float32), 0.0)
    acc_ref[...] += jnp.dot(h.astype(w2_ref.dtype), w2_ref[...],
                            preferred_element_type=jnp.float32)

    @pl.when(j == pl.num_programs(1) - 1)
    def _():
        o_ref[...] = (acc_ref[...] + b2_ref[...].astype(jnp.float32)).astype(o_ref.dtype)


def _add_ln_kernel(x_ref, y_ref, g_ref, b_ref, o_ref):
    # Fused residual add + LayerNorm; statistics in f32.
    x = x_ref[...].astype(jnp.float32) + y_ref[...].astype(jnp.float32)
    mu = jnp.mean(x, axis=-1, keepdims=True)
    var = jnp.mean(jnp.square(x - mu), axis=-1, keepdims=True)
    inv = jax.lax.rsqrt(var + 1e-5)
    o_ref[...] = ((x - mu) * inv * g_ref[...].astype(jnp.float32)
                  + b_ref[...].astype(jnp.float32)).astype(o_ref.dtype)


def _attention_kernel(q_ref, k_ref, v_ref, bias_ref, o_ref):
    # One (batch, head) slice per grid step.
    # q: (Lq, Dh), k/v: (Lk, Dh) bf16; bias: (Lq, Lk) f32 additive mask.
    q = q_ref[0]
    k = k_ref[0]
    v = v_ref[0]
    bias = bias_ref[0]
    scale = 1.0 / math.sqrt(q.shape[-1])
    s = jax.lax.dot_general(q, k, (((1,), (1,)), ((), ())),
                            preferred_element_type=jnp.float32)
    s = s * scale + bias
    s = s - jnp.max(s, axis=-1, keepdims=True)
    p = jnp.exp(s)
    denom = jnp.sum(p, axis=-1, keepdims=True)
    ctx = jnp.dot(p.astype(v.dtype), v, preferred_element_type=jnp.float32)
    ctx = ctx * pl.reciprocal(denom, approx=True)
    o_ref[0] = ctx.astype(o_ref.dtype)


# ----------------------------- kernel wrappers -----------------------------

def matmul_bias(x2d, w, b, out_dtype=jnp.bfloat16, tm_cap=256, tn_cap=256, tk_cap=512):
    M, K = x2d.shape
    N = w.shape[1]
    tm, tn, tk = _tile(M, tm_cap), _tile(N, tn_cap), _tile(K, tk_cap)
    return pl.pallas_call(
        _matmul_bias_kernel,
        out_shape=jax.ShapeDtypeStruct((M, N), out_dtype),
        grid=(M // tm, N // tn, K // tk),
        in_specs=[
            pl.BlockSpec((tm, tk), lambda i, j, k: (i, k)),
            pl.BlockSpec((tk, tn), lambda i, j, k: (k, j)),
            pl.BlockSpec((1, tn), lambda i, j, k: (0, j)),
        ],
        out_specs=pl.BlockSpec((tm, tn), lambda i, j, k: (i, j)),
        scratch_shapes=[pltpu.VMEM((tm, tn), jnp.float32)],
        compiler_params=pltpu.CompilerParams(
            dimension_semantics=("parallel", "parallel", "arbitrary")),
    )(x2d, w, b.reshape(1, N))


def ffn(x2d, w1, b1, w2, b2, out_dtype=jnp.bfloat16, tm_cap=256, th_cap=256):
    M, D = x2d.shape
    H = w1.shape[1]
    tm, th = _tile(M, tm_cap), _tile(H, th_cap)
    return pl.pallas_call(
        _ffn_kernel,
        out_shape=jax.ShapeDtypeStruct((M, D), out_dtype),
        grid=(M // tm, H // th),
        in_specs=[
            pl.BlockSpec((tm, D), lambda i, j: (i, 0)),
            pl.BlockSpec((D, th), lambda i, j: (0, j)),
            pl.BlockSpec((1, th), lambda i, j: (0, j)),
            pl.BlockSpec((th, D), lambda i, j: (j, 0)),
            pl.BlockSpec((1, D), lambda i, j: (0, 0)),
        ],
        out_specs=pl.BlockSpec((tm, D), lambda i, j: (i, 0)),
        scratch_shapes=[pltpu.VMEM((tm, D), jnp.float32)],
        compiler_params=pltpu.CompilerParams(
            dimension_semantics=("parallel", "arbitrary")),
    )(x2d, w1, b1.reshape(1, H), w2, b2.reshape(1, D))


def add_layernorm(x, y, g, b, tm_cap=256):
    B, L, D = x.shape
    M = B * L
    tm = _tile(M, tm_cap)
    out = pl.pallas_call(
        _add_ln_kernel,
        out_shape=jax.ShapeDtypeStruct((M, D), x.dtype),
        grid=(M // tm,),
        in_specs=[
            pl.BlockSpec((tm, D), lambda i: (i, 0)),
            pl.BlockSpec((tm, D), lambda i: (i, 0)),
            pl.BlockSpec((1, D), lambda i: (0, 0)),
            pl.BlockSpec((1, D), lambda i: (0, 0)),
        ],
        out_specs=pl.BlockSpec((tm, D), lambda i: (i, 0)),
        compiler_params=pltpu.CompilerParams(dimension_semantics=("parallel",)),
    )(x.reshape(M, D), y.reshape(M, D), g.reshape(1, D), b.reshape(1, D))
    return out.reshape(B, L, D)


def attention(q_arr, k_arr, v_arr, q_off, k_off, v_off, bias, n_head, d_head,
              out_dtype=jnp.bfloat16):
    """q_arr/k_arr/v_arr are (B, L, *) tensors containing head-concatenated
    projections; {q,k,v}_off are head-block offsets along the last dim.
    bias is a per-batch additive mask (B, Lq, Lk) in f32."""
    B, Lq, _ = q_arr.shape
    Lk = k_arr.shape[1]
    D = n_head * d_head
    return pl.pallas_call(
        _attention_kernel,
        out_shape=jax.ShapeDtypeStruct((B, Lq, D), out_dtype),
        grid=(B, n_head),
        in_specs=[
            pl.BlockSpec((1, Lq, d_head), lambda b, h: (b, 0, q_off + h)),
            pl.BlockSpec((1, Lk, d_head), lambda b, h: (b, 0, k_off + h)),
            pl.BlockSpec((1, Lk, d_head), lambda b, h: (b, 0, v_off + h)),
            pl.BlockSpec((1, Lq, Lk), lambda b, h: (b, 0, 0)),
        ],
        out_specs=pl.BlockSpec((1, Lq, d_head), lambda b, h: (b, 0, h)),
        compiler_params=pltpu.CompilerParams(
            dimension_semantics=("parallel", "parallel")),
    )(q_arr, k_arr, v_arr, bias)
    # TODO(synk): for long Lk, convert to a flash-style online-softmax loop over
    # Lk tiles so the (Lq, Lk) score block never has to fit VMEM at once.


# ----------------------------- model (glue) -----------------------------

def sinusoidal_pe(max_len, d):
    pos = jnp.arange(max_len, dtype=jnp.float32)[:, None]
    i = jnp.arange(d, dtype=jnp.float32)[None, :]
    angle = pos / jnp.power(10000.0, (2.0 * jnp.floor(i / 2.0)) / d)
    return jnp.where((jnp.arange(d) % 2)[None, :] == 0, jnp.sin(angle), jnp.cos(angle))


def mask_to_bias(mask, B, Lq, Lk):
    # bool mask (broadcastable to (B, Lq, Lk)) -> additive f32 bias, per batch only.
    m = jnp.broadcast_to(mask, (B, Lq, Lk))
    return jnp.where(m, 0.0, -1e9).astype(jnp.float32)


def self_attention_block(x, bias, p, n_head, d_head):
    B, L, D = x.shape
    qkv = matmul_bias(x.reshape(B * L, D), p["qkv"]["w"], p["qkv"]["b"]).reshape(B, L, 3 * D)
    ctx = attention(qkv, qkv, qkv, 0, n_head, 2 * n_head, bias, n_head, d_head)
    out = matmul_bias(ctx.reshape(B * L, D), p["o"]["w"], p["o"]["b"]).reshape(B, L, D)
    return out


def cross_attention_block(x_q, x_kv, bias, p, n_head, d_head):
    B, Lq, D = x_q.shape
    Lk = x_kv.shape[1]
    q = matmul_bias(x_q.reshape(B * Lq, D), p["q"]["w"], p["q"]["b"]).reshape(B, Lq, D)
    kv = matmul_bias(x_kv.reshape(B * Lk, D), p["kv"]["w"], p["kv"]["b"]).reshape(B, Lk, 2 * D)
    ctx = attention(q, kv, kv, 0, 0, n_head, bias, n_head, d_head)
    out = matmul_bias(ctx.reshape(B * Lq, D), p["o"]["w"], p["o"]["b"]).reshape(B, Lq, D)
    return out


def encoder_layer(x, src_bias, p, n_head, d_head):
    attn = self_attention_block(x, src_bias, p["attn"], n_head, d_head)
    x = add_layernorm(x, attn, p["ln1"]["g"], p["ln1"]["b"])
    B, L, D = x.shape
    ff = ffn(x.reshape(B * L, D), p["ffn"]["w1"], p["ffn"]["b1"],
             p["ffn"]["w2"], p["ffn"]["b2"]).reshape(B, L, D)
    x = add_layernorm(x, ff, p["ln2"]["g"], p["ln2"]["b"])
    return x


def decoder_layer(x, enc_out, trg_bias, cross_bias, p, n_head, d_head):
    sa = self_attention_block(x, trg_bias, p["self_attn"], n_head, d_head)
    x = add_layernorm(x, sa, p["ln1"]["g"], p["ln1"]["b"])
    ca = cross_attention_block(x, enc_out, cross_bias, p["cross_attn"], n_head, d_head)
    x = add_layernorm(x, ca, p["ln2"]["g"], p["ln2"]["b"])
    B, L, D = x.shape
    ff = ffn(x.reshape(B * L, D), p["ffn"]["w1"], p["ffn"]["b1"],
             p["ffn"]["w2"], p["ffn"]["b2"]).reshape(B, L, D)
    x = add_layernorm(x, ff, p["ln3"]["g"], p["ln3"]["b"])
    return x


def transformer_forward(params, src, trg, src_pad_idx, trg_pad_idx, n_head):
    Bs, Ls = src.shape
    Bt, Lt = trg.shape
    D = params["enc_emb"].shape[1]
    d_head = D // n_head

    # Masks -> per-batch additive biases (matches PyTorch get_src_mask/get_trg_mask).
    src_key_valid = (src != src_pad_idx)                              # (B, Ls): key mask
    trg_q_valid = (trg != trg_pad_idx)                                # (B, Lt): query-row mask
    causal = jnp.tril(jnp.ones((Lt, Lt), dtype=jnp.bool_))            # (Lt, Lt)

    enc_self_bias = mask_to_bias(src_key_valid[:, None, :], Bs, Ls, Ls)
    dec_self_bias = mask_to_bias(trg_q_valid[:, :, None] & causal[None], Bt, Lt, Lt)
    cross_bias = mask_to_bias(src_key_valid[:, None, :], Bt, Lt, Ls)

    # Embedding + positional encoding (dropout = identity), cast to bf16 for kernels.
    x = (jnp.take(params["enc_emb"], src, axis=0)
         + params["pe"][:Ls][None, :, :]).astype(jnp.bfloat16)
    for lp in params["enc_layers"]:
        x = encoder_layer(x, enc_self_bias, lp, n_head, d_head)
    enc_out = x

    y = (jnp.take(params["dec_emb"], trg, axis=0)
         + params["pe"][:Lt][None, :, :]).astype(jnp.bfloat16)
    for lp in params["dec_layers"]:
        y = decoder_layer(y, enc_out, dec_self_bias, cross_bias, lp, n_head, d_head)

    logits = matmul_bias(y.reshape(Bt * Lt, D), params["out"]["w"], params["out"]["b"],
                         out_dtype=jnp.float32)
    return logits.reshape(Bt, Lt, params["out"]["w"].shape[1])


# ----------------------------- parameter init -----------------------------

def init_params(key, enc_vocab, dec_vocab, d, n_head, hidden, n_layer, max_len):
    keys = iter(jax.random.split(key, 1024))

    def W(shape, dtype=jnp.bfloat16):
        return (jax.random.normal(next(keys), shape, jnp.float32) * 0.02).astype(dtype)

    def lin(din, dout):
        return {"w": W((din, dout)), "b": jnp.zeros((dout,), jnp.bfloat16)}

    def self_attn_block():
        return {"qkv": lin(d, 3 * d), "o": lin(d, d)}

    def cross_attn_block():
        return {"q": lin(d, d), "kv": lin(d, 2 * d), "o": lin(d, d)}

    def ln_block():
        return {"g": jnp.ones((d,), jnp.float32), "b": jnp.zeros((d,), jnp.float32)}

    def ffn_block():
        l1, l2 = lin(d, hidden), lin(hidden, d)
        return {"w1": l1["w"], "b1": l1["b"], "w2": l2["w"], "b2": l2["b"]}

    def enc_layer_params():
        return {"attn": self_attn_block(), "ln1": ln_block(),
                "ffn": ffn_block(), "ln2": ln_block()}

    def dec_layer_params():
        return {"self_attn": self_attn_block(), "ln1": ln_block(),
                "cross_attn": cross_attn_block(), "ln2": ln_block(),
                "ffn": ffn_block(), "ln3": ln_block()}

    return {
        "enc_emb": W((enc_vocab, d), jnp.float32),
        "dec_emb": W((dec_vocab, d), jnp.float32),
        "pe": sinusoidal_pe(max_len, d),
        "enc_layers": [enc_layer_params() for _ in range(n_layer)],
        "dec_layers": [dec_layer_params() for _ in range(n_layer)],
        "out": lin(d, dec_vocab),
    }


# ----------------------------- main -----------------------------

if __name__ == "__main__":
    key = jax.random.PRNGKey(0)
    # Lane-dense small config: D, Dh, hidden, dec_vocab are multiples of 128.
    B, LS, LT = 2, 8, 8
    D, N_HEAD, HID, N_LAYER = 256, 2, 512, 2
    ENC_VOCAB, DEC_VOCAB, MAX_LEN = 300, 256, 16
    SRC_PAD, TRG_PAD = 0, 0

    k_src, k_trg, k_par = jax.random.split(key, 3)
    src = jax.random.randint(k_src, (B, LS), 1, ENC_VOCAB, dtype=jnp.int32)
    trg = jax.random.randint(k_trg, (B, LT), 1, DEC_VOCAB, dtype=jnp.int32)
    # introduce some padding to exercise the masks
    src = src.at[1, 6:].set(SRC_PAD)
    trg = trg.at[1, 5:].set(TRG_PAD)

    params = init_params(k_par, ENC_VOCAB, DEC_VOCAB, D, N_HEAD, HID, N_LAYER, MAX_LEN)

    fwd = jax.jit(transformer_forward, static_argnums=(3, 4, 5))
    out = fwd(params, src, trg, SRC_PAD, TRG_PAD, N_HEAD)
    out = jax.block_until_ready(out)

    assert out.shape == (B, LT, DEC_VOCAB), out.shape
    assert bool(jnp.all(jnp.isfinite(out)))
    print("KERNEL_OK")
</pallas_src>

<mosaic_0001>
module attributes {stable_mosaic.version = 11 : i64} {
  func.func @_matmul_bias_kernel(%arg0: i32, %arg1: i32, %arg2: i32, %arg3: memref<16x256xbf16, #tpu.memory_space<vmem>>, %arg4: memref<256x256xbf16, #tpu.memory_space<vmem>>, %arg5: memref<1x256xbf16, #tpu.memory_space<vmem>>, %arg6: memref<16x256xbf16, #tpu.memory_space<vmem>>, %arg7: memref<16x256xf32, #tpu.memory_space<vmem>>) attributes {dimension_semantics = [#tpu.dimension_semantics<parallel>, #tpu.dimension_semantics<parallel>, #tpu.dimension_semantics<arbitrary>], iteration_bounds = array<i64: 1, 3, 1>, scalar_prefetch = 0 : i64, scratch_operands = 1 : i64, tpu.core_type = #tpu.core_type<tc>, window_params = [{transform_indices = @transform_0, window_bounds = array<i64: 16, 256>}, {transform_indices = @transform_1, window_bounds = array<i64: 256, 256>}, {transform_indices = @transform_2, window_bounds = array<i64: 1, 256>}, {transform_indices = @transform_3, window_bounds = array<i64: 16, 256>}]} {
    %c0_i32 = arith.constant 0 : i32
    %0 = arith.cmpi eq, %arg2, %c0_i32 : i32
    %1 = arith.extui %0 : i1 to i32
    %c0_i32_0 = arith.constant 0 : i32
    %2 = arith.cmpi ne, %1, %c0_i32_0 : i32
    scf.if %2 {
      %cst_10 = arith.constant 0.000000e+00 : f32
      %12 = vector.broadcast %cst_10 : f32 to vector<16x256xf32>
      %c0_11 = arith.constant 0 : index
      %c0_12 = arith.constant 0 : index
      %13 = vector.load %arg7[%c0_11, %c0_12] : memref<16x256xf32, #tpu.memory_space<vmem>>, vector<16x256xf32>
      tpu.vector_store %arg7[%c0_11, %c0_12], %12 {strides = array<i32>} : memref<16x256xf32, #tpu.memory_space<vmem>>, vector<16x256xf32>,
    } else {
    }
    %c0 = arith.constant 0 : index
    %c0_1 = arith.constant 0 : index
    %3 = vector.load %arg7[%c0, %c0_1] : memref<16x256xf32, #tpu.memory_space<vmem>>, vector<16x256xf32>
    %c0_2 = arith.constant 0 : index
    %c0_3 = arith.constant 0 : index
    %4 = vector.load %arg3[%c0_2, %c0_3] : memref<16x256xbf16, #tpu.memory_space<vmem>>, vector<16x256xbf16>
    %c0_4 = arith.constant 0 : index
    %c0_5 = arith.constant 0 : index
    %5 = vector.load %arg4[%c0_4, %c0_5] : memref<256x256xbf16, #tpu.memory_space<vmem>>, vector<256x256xbf16>
    %cst = arith.constant dense<0.000000e+00> : vector<16x256xf32>
    %6 = tpu.matmul %4, %5, %cst {dimension_numbers = #tpu.dot_dimension_numbers<[1], [0], [0], [1], [0, 0, 1, 1], [], []>} : vector<16x256xbf16>, vector<256x256xbf16>, vector<16x256xf32> -> vector<16x256xf32>
    %7 = arith.addf %3, %6 : vector<16x256xf32>
    %c0_6 = arith.constant 0 : index
    %c0_7 = arith.constant 0 : index
    %8 = vector.load %arg7[%c0_6, %c0_7] : memref<16x256xf32, #tpu.memory_space<vmem>>, vector<16x256xf32>
    tpu.vector_store %arg7[%c0_6, %c0_7], %7 {strides = array<i32>} : memref<16x256xf32, #tpu.memory_space<vmem>>, vector<16x256xf32>,
    %c0_i32_8 = arith.constant 0 : i32
    %9 = arith.cmpi eq, %arg2, %c0_i32_8 : i32
    %10 = arith.extui %9 : i1 to i32
    %c0_i32_9 = arith.constant 0 : i32
    %11 = arith.cmpi ne, %10, %c0_i32_9 : i32
    scf.if %11 {
      %c0_10 = arith.constant 0 : index
      %c0_11 = arith.constant 0 : index
      %12 = vector.load %arg7[%c0_10, %c0_11] : memref<16x256xf32, #tpu.memory_space<vmem>>, vector<16x256xf32>
      %c0_12 = arith.constant 0 : index
      %c0_13 = arith.constant 0 : index
      %13 = vector.load %arg5[%c0_12, %c0_13] : memref<1x256xbf16, #tpu.memory_space<vmem>>, vector<1x256xbf16>
      %14 = arith.extf %13 : vector<1x256xbf16> to vector<1x256xf32>
      %15 = vector.broadcast %14 : vector<1x256xf32> to vector<16x256xf32>
      %16 = arith.addf %12, %15 : vector<16x256xf32>
      %17 = arith.truncf %16 : vector<16x256xf32> to vector<16x256xbf16>
      %c0_14 = arith.constant 0 : index
      %c0_15 = arith.constant 0 : index
      %18 = vector.load %arg6[%c0_14, %c0_15] : memref<16x256xbf16, #tpu.memory_space<vmem>>, vector<16x256xbf16>
      tpu.vector_store %arg6[%c0_14, %c0_15], %17 {strides = array<i32>} : memref<16x256xbf16, #tpu.memory_space<vmem>>, vector<16x256xbf16>,
    } else {
    }
    return
  }
  func.func @transform_0(%arg0: i32, %arg1: i32, %arg2: i32) -> (i32, i32) {
    %c0_i32 = arith.constant 0 : i32
    return %arg0, %arg2 : i32, i32
  }
  func.func @transform_1(%arg0: i32, %arg1: i32, %arg2: i32) -> (i32, i32) {
    %c0_i32 = arith.constant 0 : i32
    return %arg2, %arg1 : i32, i32
  }
  func.func @transform_2(%arg0: i32, %arg1: i32, %arg2: i32) -> (i32, i32) {
    %c0_i32 = arith.constant 0 : i32
    %c0_i32_0 = arith.constant 0 : i32
    return %c0_i32, %arg1 : i32, i32
  }
  func.func @transform_3(%arg0: i32, %arg1: i32, %arg2: i32) -> (i32, i32) {
    %c0_i32 = arith.constant 0 : i32
    return %arg0, %arg1 : i32, i32
  }
}

module attributes {stable_mosaic.version = 11 : i64} {
  func.func @_matmul_bias_kernel(%arg0: i32, %arg1: i32, %arg2: i32, %arg3: memref<16x256xbf16, #tpu.memory_space<vmem>>, %arg4: memref<256x256xbf16, #tpu.memory_space<vmem>>, %arg5: memref<1x256xbf16, #tpu.memory_space<vmem>>, %arg6: memref<16x256xbf16, #tpu.memory_space<vmem>>, %arg7: memref<16x256xf32, #tpu.memory_space<vmem>>) attributes {dimension_semantics = [#tpu.dimension_semantics<parallel>, #tpu.dimension_semantics<parallel>, #tpu.dimension_semantics<arbitrary>], iteration_bounds = array<i64: 1, 1, 1>, scalar_prefetch = 0 : i64, scratch_operands = 1 : i64, tpu.core_type = #tpu.core_type<tc>, window_params = [{transform_indices = @transform_0, window_bounds = array<i64: 16, 256>}, {transform_indices = @transform_1, window_bounds = array<i64: 256, 256>}, {transform_indices = @transform_2, window_bounds = array<i64: 1, 256>}, {transform_indices = @transform_3, window_bounds = array<i64: 16, 256>}]} {
    %c0_i32 = arith.constant 0 : i32
    %0 = arith.cmpi eq, %arg2, %c0_i32 : i32
    %1 = arith.extui %0 : i1 to i32
    %c0_i32_0 = arith.constant 0 : i32
    %2 = arith.cmpi ne, %1, %c0_i32_0 : i32
    scf.if %2 {
      %cst_10 = arith.constant 0.000000e+00 : f32
      %12 = vector.broadcast %cst_10 : f32 to vector<16x256xf32>
      %c0_11 = arith.constant 0 : index
      %c0_12 = arith.constant 0 : index
      %13 = vector.load %arg7[%c0_11, %c0_12] : memref<16x256xf32, #tpu.memory_space<vmem>>, vector<16x256xf32>
      tpu.vector_store %arg7[%c0_11, %c0_12], %12 {strides = array<i32>} : memref<16x256xf32, #tpu.memory_space<vmem>>, vector<16x256xf32>,
    } else {
    }
    %c0 = arith.constant 0 : index
    %c0_1 = arith.constant 0 : index
    %3 = vector.load %arg7[%c0, %c0_1] : memref<16x256xf32, #tpu.memory_space<vmem>>, vector<16x256xf32>
    %c0_2 = arith.constant 0 : index
    %c0_3 = arith.constant 0 : index
    %4 = vector.load %arg3[%c0_2, %c0_3] : memref<16x256xbf16, #tpu.memory_space<vmem>>, vector<16x256xbf16>
    %c0_4 = arith.constant 0 : index
    %c0_5 = arith.constant 0 : index
    %5 = vector.load %arg4[%c0_4, %c0_5] : memref<256x256xbf16, #tpu.memory_space<vmem>>, vector<256x256xbf16>
    %cst = arith.constant dense<0.000000e+00> : vector<16x256xf32>
    %6 = tpu.matmul %4, %5, %cst {dimension_numbers = #tpu.dot_dimension_numbers<[1], [0], [0], [1], [0, 0, 1, 1], [], []>} : vector<16x256xbf16>, vector<256x256xbf16>, vector<16x256xf32> -> vector<16x256xf32>
    %7 = arith.addf %3, %6 : vector<16x256xf32>
    %c0_6 = arith.constant 0 : index
    %c0_7 = arith.constant 0 : index
    %8 = vector.load %arg7[%c0_6, %c0_7] : memref<16x256xf32, #tpu.memory_space<vmem>>, vector<16x256xf32>
    tpu.vector_store %arg7[%c0_6, %c0_7], %7 {strides = array<i32>} : memref<16x256xf32, #tpu.memory_space<vmem>>, vector<16x256xf32>,
    %c0_i32_8 = arith.constant 0 : i32
    %9 = arith.cmpi eq, %arg2, %c0_i32_8 : i32
    %10 = arith.extui %9 : i1 to i32
    %c0_i32_9 = arith.constant 0 : i32
    %11 = arith.cmpi ne, %10, %c0_i32_9 : i32
    scf.if %11 {
      %c0_10 = arith.constant 0 : index
      %c0_11 = arith.constant 0 : index
      %12 = vector.load %arg7[%c0_10, %c0_11] : memref<16x256xf32, #tpu.memory_space<vmem>>, vector<16x256xf32>
      %c0_12 = arith.constant 0 : index
      %c0_13 = arith.constant 0 : index
      %13 = vector.load %arg5[%c0_12, %c0_13] : memref<1x256xbf16, #tpu.memory_space<vmem>>, vector<1x256xbf16>
      %14 = arith.extf %13 : vector<1x256xbf16> to vector<1x256xf32>
      %15 = vector.broadcast %14 : vector<1x256xf32> to vector<16x256xf32>
      %16 = arith.addf %12, %15 : vector<16x256xf32>
      %17 = arith.truncf %16 : vector<16x256xf32> to vector<16x256xbf16>
      %c0_14 = arith.constant 0 : index
      %c0_15 = arith.constant 0 : index
      %18 = vector.load %arg6[%c0_14, %c0_15] : memref<16x256xbf16, #tpu.memory_space<vmem>>, vector<16x256xbf16>
      tpu.vector_store %arg6[%c0_14, %c0_15], %17 {strides = array<i32>} : memref<16x256xbf16, #tpu.memory_space<vmem>>, vector<16x256xbf16>,
    } else {
    }
    return
  }
  func.func @transform_0(%arg0: i32, %arg1: i32, %arg2: i32) -> (i32, i32) {
    %c0_i32 = arith.constant 0 : i32
    return %arg0, %arg2 : i32, i32
  }
  func.func @transform_1(%arg0: i32, %arg1: i32, %arg2: i32) -> (i32, i32) {
    %c0_i32 = arith.constant 0 : i32
    return %arg2, %arg1 : i32, i32
  }
  func.func @transform_2(%arg0: i32, %arg1: i32, %arg2: i32) -> (i32, i32) {
    %c0_i32 = arith.constant 0 : i32
    %c0_i32_0 = arith.constant 0 : i32
    return %c0_i32, %arg1 : i32, i32
  }
  func.func @transform_3(%arg0: i32, %arg1: i32, %arg2: i32) -> (i32, i32) {
    %c0_i32 = arith.constant 0 : i32
    return %arg0, %arg1 : i32, i32
  }
}

module attributes {stable_mosaic.version = 11 : i64} {
  func.func @_attention_kernel(%arg0: i32, %arg1: i32, %arg2: memref<1x8x128xbf16, #tpu.memory_space<vmem>>, %arg3: memref<1x8x128xbf16, #tpu.memory_space<vmem>>, %arg4: memref<1x8x128xbf16, #tpu.memory_space<vmem>>, %arg5: memref<1x8x8xf32, #tpu.memory_space<vmem>>, %arg6: memref<1x8x128xbf16, #tpu.memory_space<vmem>>) attributes {dimension_semantics = [#tpu.dimension_semantics<parallel>, #tpu.dimension_semantics<parallel>], iteration_bounds = array<i64: 2, 2>, scalar_prefetch = 0 : i64, scratch_operands = 0 : i64, tpu.core_type = #tpu.core_type<tc>, window_params = [{transform_indices = @transform_0, window_bounds = array<i64: 1, 8, 128>}, {transform_indices = @transform_1, window_bounds = array<i64: 1, 8, 128>}, {transform_indices = @transform_2, window_bounds = array<i64: 1, 8, 128>}, {transform_indices = @transform_3, window_bounds = array<i64: 1, 8, 8>}, {transform_indices = @transform_4, window_bounds = array<i64: 1, 8, 128>}]} {
    %c0 = arith.constant 0 : index
    %c0_0 = arith.constant 0 : index
    %c0_1 = arith.constant 0 : index
    %0 = vector.load %arg2[%c0, %c0_0, %c0_1] : memref<1x8x128xbf16, #tpu.memory_space<vmem>>, vector<1x8x128xbf16>
    %1 = vector.shape_cast %0 : vector<1x8x128xbf16> to vector<8x128xbf16>
    %c0_2 = arith.constant 0 : index
    %c0_3 = arith.constant 0 : index
    %c0_4 = arith.constant 0 : index
    %2 = vector.load %arg3[%c0_2, %c0_3, %c0_4] : memref<1x8x128xbf16, #tpu.memory_space<vmem>>, vector<1x8x128xbf16>
    %3 = vector.shape_cast %2 : vector<1x8x128xbf16> to vector<8x128xbf16>
    %c0_5 = arith.constant 0 : index
    %c0_6 = arith.constant 0 : index
    %c0_7 = arith.constant 0 : index
    %4 = vector.load %arg4[%c0_5, %c0_6, %c0_7] : memref<1x8x128xbf16, #tpu.memory_space<vmem>>, vector<1x8x128xbf16>
    %5 = vector.shape_cast %4 : vector<1x8x128xbf16> to vector<8x128xbf16>
    %c0_8 = arith.constant 0 : index
    %c0_9 = arith.constant 0 : index
    %c0_10 = arith.constant 0 : index
    %6 = vector.load %arg5[%c0_8, %c0_9, %c0_10] : memref<1x8x8xf32, #tpu.memory_space<vmem>>, vector<1x8x8xf32>
    %7 = vector.shape_cast %6 : vector<1x8x8xf32> to vector<8x8xf32>
    %cst = arith.constant dense<0.000000e+00> : vector<8x8xf32>
    %8 = tpu.matmul %1, %3, %cst {dimension_numbers = #tpu.dot_dimension_numbers<[1], [1], [0], [0], [0, 0, 1, 0], [], []>} : vector<8x128xbf16>, vector<8x128xbf16>, vector<8x8xf32> -> vector<8x8xf32>
    %cst_11 = arith.constant 0.0883883461 : f32
    %9 = vector.broadcast %cst_11 : f32 to vector<8x8xf32>
    %10 = arith.mulf %8, %9 : vector<8x8xf32>
    %11 = arith.addf %10, %7 : vector<8x8xf32>
    %cst_12 = arith.constant dense<0xFF800000> : vector<8xf32>
    %12 = vector.multi_reduction <maximumf>, %11, %cst_12 [1] : vector<8x8xf32> to vector<8xf32>
    %13 = vector.shape_cast %12 : vector<8xf32> to vector<8x1xf32>
    %14 = vector.broadcast %13 : vector<8x1xf32> to vector<8x8xf32>
    %15 = arith.subf %11, %14 : vector<8x8xf32>
    %16 = math.exp %15 : vector<8x8xf32>
    %cst_13 = arith.constant dense<0.000000e+00> : vector<8xf32>
    %17 = vector.multi_reduction <add>, %16, %cst_13 [1] : vector<8x8xf32> to vector<8xf32>
    %18 = vector.shape_cast %17 : vector<8xf32> to vector<8x1xf32>
    %19 = arith.truncf %16 : vector<8x8xf32> to vector<8x8xbf16>
    %cst_14 = arith.constant dense<0.000000e+00> : vector<8x128xf32>
    %20 = tpu.matmul %19, %5, %cst_14 {dimension_numbers = #tpu.dot_dimension_numbers<[1], [0], [0], [1], [0, 0, 1, 1], [], []>} : vector<8x8xbf16>, vector<8x128xbf16>, vector<8x128xf32> -> vector<8x128xf32>
    %21 = tpu.reciprocal %18 {approx = true} : vector<8x1xf32> -> vector<8x1xf32>
    %22 = vector.broadcast %21 : vector<8x1xf32> to vector<8x128xf32>
    %23 = arith.mulf %20, %22 : vector<8x128xf32>
    %24 = arith.truncf %23 : vector<8x128xf32> to vector<8x128xbf16>
    %c0_15 = arith.constant 0 : index
    %c0_16 = arith.constant 0 : index
    %c0_17 = arith.constant 0 : index
    %25 = vector.load %arg6[%c0_15, %c0_16, %c0_17] : memref<1x8x128xbf16, #tpu.memory_space<vmem>>, vector<1x8x128xbf16>
    %26 = vector.shape_cast %25 : vector<1x8x128xbf16> to vector<8x128xbf16>
    %27 = vector.shape_cast %24 : vector<8x128xbf16> to vector<1x8x128xbf16>
    tpu.vector_store %arg6[%c0_15, %c0_16, %c0_17], %27 {strides = array<i32>} : memref<1x8x128xbf16, #tpu.memory_space<vmem>>, vector<1x8x128xbf16>,
    return
  }
  func.func @transform_0(%arg0: i32, %arg1: i32) -> (i32, i32, i32) {
    %c0_i32 = arith.constant 0 : i32
    %0 = arith.addi %c0_i32, %arg1 : i32
    %c0_i32_0 = arith.constant 0 : i32
    %c0_i32_1 = arith.constant 0 : i32
    return %arg0, %c0_i32_0, %0 : i32, i32, i32
  }
  func.func @transform_1(%arg0: i32, %arg1: i32) -> (i32, i32, i32) {
    %c2_i32 = arith.constant 2 : i32
    %0 = arith.addi %c2_i32, %arg1 : i32
    %c0_i32 = arith.constant 0 : i32
    %c0_i32_0 = arith.constant 0 : i32
    return %arg0, %c0_i32, %0 : i32, i32, i32
  }
  func.func @transform_2(%arg0: i32, %arg1: i32) -> (i32, i32, i32) {
    %c4_i32 = arith.constant 4 : i32
    %0 = arith.addi %c4_i32, %arg1 : i32
    %c0_i32 = arith.constant 0 : i32
    %c0_i32_0 = arith.constant 0 : i32
    return %arg0, %c0_i32, %0 : i32, i32, i32
  }
  func.func @transform_3(%arg0: i32, %arg1: i32) -> (i32, i32, i32) {
    %c0_i32 = arith.constant 0 : i32
    %c0_i32_0 = arith.constant 0 : i32
    %c0_i32_1 = arith.constant 0 : i32
    return %arg0, %c0_i32, %c0_i32_0 : i32, i32, i32
  }
  func.func @transform_4(%arg0: i32, %arg1: i32) -> (i32, i32, i32) {
    %c0_i32 = arith.constant 0 : i32
    %c0_i32_0 = arith.constant 0 : i32
    return %arg0, %c0_i32, %arg1 : i32, i32, i32
  }
}

module attributes {stable_mosaic.version = 11 : i64} {
  func.func @_add_ln_kernel(%arg0: i32, %arg1: memref<16x256xbf16, #tpu.memory_space<vmem>>, %arg2: memref<16x256xbf16, #tpu.memory_space<vmem>>, %arg3: memref<1x256xf32, #tpu.memory_space<vmem>>, %arg4: memref<1x256xf32, #tpu.memory_space<vmem>>, %arg5: memref<16x256xbf16, #tpu.memory_space<vmem>>) attributes {dimension_semantics = [#tpu.dimension_semantics<parallel>], iteration_bounds = array<i64: 1>, scalar_prefetch = 0 : i64, scratch_operands = 0 : i64, tpu.core_type = #tpu.core_type<tc>, window_params = [{transform_indices = @transform_0, window_bounds = array<i64: 16, 256>}, {transform_indices = @transform_1, window_bounds = array<i64: 16, 256>}, {pipeline_mode = #tpu.pipeline_mode<synchronous>, transform_indices = @transform_2, window_bounds = array<i64: 1, 256>}, {pipeline_mode = #tpu.pipeline_mode<synchronous>, transform_indices = @transform_3, window_bounds = array<i64: 1, 256>}, {transform_indices = @transform_4, window_bounds = array<i64: 16, 256>}]} {
    %c0 = arith.constant 0 : index
    %c0_0 = arith.constant 0 : index
    %0 = vector.load %arg1[%c0, %c0_0] : memref<16x256xbf16, #tpu.memory_space<vmem>>, vector<16x256xbf16>
    %1 = arith.extf %0 : vector<16x256xbf16> to vector<16x256xf32>
    %c0_1 = arith.constant 0 : index
    %c0_2 = arith.constant 0 : index
    %2 = vector.load %arg2[%c0_1, %c0_2] : memref<16x256xbf16, #tpu.memory_space<vmem>>, vector<16x256xbf16>
    %3 = arith.extf %2 : vector<16x256xbf16> to vector<16x256xf32>
    %4 = arith.addf %1, %3 : vector<16x256xf32>
    %cst = arith.constant dense<0.000000e+00> : vector<16xf32>
    %5 = vector.multi_reduction <add>, %4, %cst [1] : vector<16x256xf32> to vector<16xf32>
    %6 = vector.shape_cast %5 : vector<16xf32> to vector<16x1xf32>
    %cst_3 = arith.constant 2.560000e+02 : f32
    %7 = vector.broadcast %cst_3 : f32 to vector<16x1xf32>
    %8 = arith.divf %6, %7 : vector<16x1xf32>
    %9 = vector.broadcast %8 : vector<16x1xf32> to vector<16x256xf32>
    %10 = arith.subf %4, %9 : vector<16x256xf32>
    %11 = arith.mulf %10, %10 : vector<16x256xf32>
    %cst_4 = arith.constant dense<0.000000e+00> : vector<16xf32>
    %12 = vector.multi_reduction <add>, %11, %cst_4 [1] : vector<16x256xf32> to vector<16xf32>
    %13 = vector.shape_cast %12 : vector<16xf32> to vector<16x1xf32>
    %cst_5 = arith.constant 2.560000e+02 : f32
    %14 = vector.broadcast %cst_5 : f32 to vector<16x1xf32>
    %15 = arith.divf %13, %14 : vector<16x1xf32>
    %cst_6 = arith.constant 9.99999974E-6 : f32
    %16 = vector.broadcast %cst_6 : f32 to vector<16x1xf32>
    %17 = arith.addf %15, %16 : vector<16x1xf32>
    %18 = math.rsqrt %17 : vector<16x1xf32>
    %19 = vector.broadcast %8 : vector<16x1xf32> to vector<16x256xf32>
    %20 = arith.subf %4, %19 : vector<16x256xf32>
    %21 = vector.broadcast %18 : vector<16x1xf32> to vector<16x256xf32>
    %22 = arith.mulf %20, %21 : vector<16x256xf32>
    %c0_7 = arith.constant 0 : index
    %c0_8 = arith.constant 0 : index
    %23 = vector.load %arg3[%c0_7, %c0_8] : memref<1x256xf32, #tpu.memory_space<vmem>>, vector<1x256xf32>
    %24 = vector.broadcast %23 : vector<1x256xf32> to vector<16x256xf32>
    %25 = arith.mulf %22, %24 : vector<16x256xf32>
    %c0_9 = arith.constant 0 : index
    %c0_10 = arith.constant 0 : index
    %26 = vector.load %arg4[%c0_9, %c0_10] : memref<1x256xf32, #tpu.memory_space<vmem>>, vector<1x256xf32>
    %27 = vector.broadcast %26 : vector<1x256xf32> to vector<16x256xf32>
    %28 = arith.addf %25, %27 : vector<16x256xf32>
    %29 = arith.truncf %28 : vector<16x256xf32> to vector<16x256xbf16>
    %c0_11 = arith.constant 0 : index
    %c0_12 = arith.constant 0 : index
    %30 = vector.load %arg5[%c0_11, %c0_12] : memref<16x256xbf16, #tpu.memory_space<vmem>>, vector<16x256xbf16>
    tpu.vector_store %arg5[%c0_11, %c0_12], %29 {strides = array<i32>} : memref<16x256xbf16, #tpu.memory_space<vmem>>, vector<16x256xbf16>,
    return
  }
  func.func @transform_0(%arg0: i32) -> (i32, i32) {
    %c0_i32 = arith.constant 0 : i32
    %c0_i32_0 = arith.constant 0 : i32
    return %arg0, %c0_i32 : i32, i32
  }
  func.func @transform_1(%arg0: i32) -> (i32, i32) {
    %c0_i32 = arith.constant 0 : i32
    %c0_i32_0 = arith.constant 0 : i32
    return %arg0, %c0_i32 : i32, i32
  }
  func.func @transform_2(%arg0: i32) -> (i32, i32) {
    %c0_i32 = arith.constant 0 : i32
    %c0_i32_0 = arith.constant 0 : i32
    %c0_i32_1 = arith.constant 0 : i32
    return %c0_i32, %c0_i32_0 : i32, i32
  }
  func.func @transform_3(%arg0: i32) -> (i32, i32) {
    %c0_i32 = arith.constant 0 : i32
    %c0_i32_0 = arith.constant 0 : i32
    %c0_i32_1 = arith.constant 0 : i32
    return %c0_i32, %c0_i32_0 : i32, i32
  }
  func.func @transform_4(%arg0: i32) -> (i32, i32) {
    %c0_i32 = arith.constant 0 : i32
    %c0_i32_0 = arith.constant 0 : i32
    return %arg0, %c0_i32 : i32, i32
  }
}

module attributes {stable_mosaic.version = 11 : i64} {
  func.func @_matmul_bias_kernel(%arg0: i32, %arg1: i32, %arg2: i32, %arg3: memref<16x256xbf16, #tpu.memory_space<vmem>>, %arg4: memref<256x256xbf16, #tpu.memory_space<vmem>>, %arg5: memref<1x256xbf16, #tpu.memory_space<vmem>>, %arg6: memref<16x256xbf16, #tpu.memory_space<vmem>>, %arg7: memref<16x256xf32, #tpu.memory_space<vmem>>) attributes {dimension_semantics = [#tpu.dimension_semantics<parallel>, #tpu.dimension_semantics<parallel>, #tpu.dimension_semantics<arbitrary>], iteration_bounds = array<i64: 1, 1, 1>, scalar_prefetch = 0 : i64, scratch_operands = 1 : i64, tpu.core_type = #tpu.core_type<tc>, window_params = [{transform_indices = @transform_0, window_bounds = array<i64: 16, 256>}, {transform_indices = @transform_1, window_bounds = array<i64: 256, 256>}, {transform_indices = @transform_2, window_bounds = array<i64: 1, 256>}, {transform_indices = @transform_3, window_bounds = array<i64: 16, 256>}]} {
    %c0_i32 = arith.constant 0 : i32
    %0 = arith.cmpi eq, %arg2, %c0_i32 : i32
    %1 = arith.extui %0 : i1 to i32
    %c0_i32_0 = arith.constant 0 : i32
    %2 = arith.cmpi ne, %1, %c0_i32_0 : i32
    scf.if %2 {
      %cst_10 = arith.constant 0.000000e+00 : f32
      %12 = vector.broadcast %cst_10 : f32 to vector<16x256xf32>
      %c0_11 = arith.constant 0 : index
      %c0_12 = arith.constant 0 : index
      %13 = vector.load %arg7[%c0_11, %c0_12] : memref<16x256xf32, #tpu.memory_space<vmem>>, vector<16x256xf32>
      tpu.vector_store %arg7[%c0_11, %c0_12], %12 {strides = array<i32>} : memref<16x256xf32, #tpu.memory_space<vmem>>, vector<16x256xf32>,
    } else {
    }
    %c0 = arith.constant 0 : index
    %c0_1 = arith.constant 0 : index
    %3 = vector.load %arg7[%c0, %c0_1] : memref<16x256xf32, #tpu.memory_space<vmem>>, vector<16x256xf32>
    %c0_2 = arith.constant 0 : index
    %c0_3 = arith.constant 0 : index
    %4 = vector.load %arg3[%c0_2, %c0_3] : memref<16x256xbf16, #tpu.memory_space<vmem>>, vector<16x256xbf16>
    %c0_4 = arith.constant 0 : index
    %c0_5 = arith.constant 0 : index
    %5 = vector.load %arg4[%c0_4, %c0_5] : memref<256x256xbf16, #tpu.memory_space<vmem>>, vector<256x256xbf16>
    %cst = arith.constant dense<0.000000e+00> : vector<16x256xf32>
    %6 = tpu.matmul %4, %5, %cst {dimension_numbers = #tpu.dot_dimension_numbers<[1], [0], [0], [1], [0, 0, 1, 1], [], []>} : vector<16x256xbf16>, vector<256x256xbf16>, vector<16x256xf32> -> vector<16x256xf32>
    %7 = arith.addf %3, %6 : vector<16x256xf32>
    %c0_6 = arith.constant 0 : index
    %c0_7 = arith.constant 0 : index
    %8 = vector.load %arg7[%c0_6, %c0_7] : memref<16x256xf32, #tpu.memory_space<vmem>>, vector<16x256xf32>
    tpu.vector_store %arg7[%c0_6, %c0_7], %7 {strides = array<i32>} : memref<16x256xf32, #tpu.memory_space<vmem>>, vector<16x256xf32>,
    %c0_i32_8 = arith.constant 0 : i32
    %9 = arith.cmpi eq, %arg2, %c0_i32_8 : i32
    %10 = arith.extui %9 : i1 to i32
    %c0_i32_9 = arith.constant 0 : i32
    %11 = arith.cmpi ne, %10, %c0_i32_9 : i32
    scf.if %11 {
      %c0_10 = arith.constant 0 : index
      %c0_11 = arith.constant 0 : index
      %12 = vector.load %arg7[%c0_10, %c0_11] : memref<16x256xf32, #tpu.memory_space<vmem>>, vector<16x256xf32>
      %c0_12 = arith.constant 0 : index
      %c0_13 = arith.constant 0 : index
      %13 = vector.load %arg5[%c0_12, %c0_13] : memref<1x256xbf16, #tpu.memory_space<vmem>>, vector<1x256xbf16>
      %14 = arith.extf %13 : vector<1x256xbf16> to vector<1x256xf32>
      %15 = vector.broadcast %14 : vector<1x256xf32> to vector<16x256xf32>
      %16 = arith.addf %12, %15 : vector<16x256xf32>
      %17 = arith.truncf %16 : vector<16x256xf32> to vector<16x256xbf16>
      %c0_14 = arith.constant 0 : index
      %c0_15 = arith.constant 0 : index
      %18 = vector.load %arg6[%c0_14, %c0_15] : memref<16x256xbf16, #tpu.memory_space<vmem>>, vector<16x256xbf16>
      tpu.vector_store %arg6[%c0_14, %c0_15], %17 {strides = array<i32>} : memref<16x256xbf16, #tpu.memory_space<vmem>>, vector<16x256xbf16>,
    } else {
    }
    return
  }
  func.func @transform_0(%arg0: i32, %arg1: i32, %arg2: i32) -> (i32, i32) {
    %c0_i32 = arith.constant 0 : i32
    return %arg0, %arg2 : i32, i32
  }
  func.func @transform_1(%arg0: i32, %arg1: i32, %arg2: i32) -> (i32, i32) {
    %c0_i32 = arith.constant 0 : i32
    return %arg2, %arg1 : i32, i32
  }
  func.func @transform_2(%arg0: i32, %arg1: i32, %arg2: i32) -> (i32, i32) {
    %c0_i32 = arith.constant 0 : i32
    %c0_i32_0 = arith.constant 0 : i32
    return %c0_i32, %arg1 : i32, i32
  }
  func.func @transform_3(%arg0: i32, %arg1: i32, %arg2: i32) -> (i32, i32) {
    %c0_i32 = arith.constant 0 : i32
    return %arg0, %arg1 : i32, i32
  }
}

module attributes {stable_mosaic.version = 11 : i64} {
  func.func @_matmul_bias_kernel(%arg0: i32, %arg1: i32, %arg2: i32, %arg3: memref<16x256xbf16, #tpu.memory_space<vmem>>, %arg4: memref<256x256xbf16, #tpu.memory_space<vmem>>, %arg5: memref<1x256xbf16, #tpu.memory_space<vmem>>, %arg6: memref<16x256xbf16, #tpu.memory_space<vmem>>, %arg7: memref<16x256xf32, #tpu.memory_space<vmem>>) attributes {dimension_semantics = [#tpu.dimension_semantics<parallel>, #tpu.dimension_semantics<parallel>, #tpu.dimension_semantics<arbitrary>], iteration_bounds = array<i64: 1, 2, 1>, scalar_prefetch = 0 : i64, scratch_operands = 1 : i64, tpu.core_type = #tpu.core_type<tc>, window_params = [{transform_indices = @transform_0, window_bounds = array<i64: 16, 256>}, {transform_indices = @transform_1, window_bounds = array<i64: 256, 256>}, {transform_indices = @transform_2, window_bounds = array<i64: 1, 256>}, {transform_indices = @transform_3, window_bounds = array<i64: 16, 256>}]} {
    %c0_i32 = arith.constant 0 : i32
    %0 = arith.cmpi eq, %arg2, %c0_i32 : i32
    %1 = arith.extui %0 : i1 to i32
    %c0_i32_0 = arith.constant 0 : i32
    %2 = arith.cmpi ne, %1, %c0_i32_0 : i32
    scf.if %2 {
      %cst_10 = arith.constant 0.000000e+00 : f32
      %12 = vector.broadcast %cst_10 : f32 to vector<16x256xf32>
      %c0_11 = arith.constant 0 : index
      %c0_12 = arith.constant 0 : index
      %13 = vector.load %arg7[%c0_11, %c0_12] : memref<16x256xf32, #tpu.memory_space<vmem>>, vector<16x256xf32>
      tpu.vector_store %arg7[%c0_11, %c0_12], %12 {strides = array<i32>} : memref<16x256xf32, #tpu.memory_space<vmem>>, vector<16x256xf32>,
    } else {
    }
    %c0 = arith.constant 0 : index
    %c0_1 = arith.constant 0 : index
    %3 = vector.load %arg7[%c0, %c0_1] : memref<16x256xf32, #tpu.memory_space<vmem>>, vector<16x256xf32>
    %c0_2 = arith.constant 0 : index
    %c0_3 = arith.constant 0 : index
    %4 = vector.load %arg3[%c0_2, %c0_3] : memref<16x256xbf16, #tpu.memory_space<vmem>>, vector<16x256xbf16>
    %c0_4 = arith.constant 0 : index
    %c0_5 = arith.constant 0 : index
    %5 = vector.load %arg4[%c0_4, %c0_5] : memref<256x256xbf16, #tpu.memory_space<vmem>>, vector<256x256xbf16>
    %cst = arith.constant dense<0.000000e+00> : vector<16x256xf32>
    %6 = tpu.matmul %4, %5, %cst {dimension_numbers = #tpu.dot_dimension_numbers<[1], [0], [0], [1], [0, 0, 1, 1], [], []>} : vector<16x256xbf16>, vector<256x256xbf16>, vector<16x256xf32> -> vector<16x256xf32>
    %7 = arith.addf %3, %6 : vector<16x256xf32>
    %c0_6 = arith.constant 0 : index
    %c0_7 = arith.constant 0 : index
    %8 = vector.load %arg7[%c0_6, %c0_7] : memref<16x256xf32, #tpu.memory_space<vmem>>, vector<16x256xf32>
    tpu.vector_store %arg7[%c0_6, %c0_7], %7 {strides = array<i32>} : memref<16x256xf32, #tpu.memory_space<vmem>>, vector<16x256xf32>,
    %c0_i32_8 = arith.constant 0 : i32
    %9 = arith.cmpi eq, %arg2, %c0_i32_8 : i32
    %10 = arith.extui %9 : i1 to i32
    %c0_i32_9 = arith.constant 0 : i32
    %11 = arith.cmpi ne, %10, %c0_i32_9 : i32
    scf.if %11 {
      %c0_10 = arith.constant 0 : index
      %c0_11 = arith.constant 0 : index
      %12 = vector.load %arg7[%c0_10, %c0_11] : memref<16x256xf32, #tpu.memory_space<vmem>>, vector<16x256xf32>
      %c0_12 = arith.constant 0 : index
      %c0_13 = arith.constant 0 : index
      %13 = vector.load %arg5[%c0_12, %c0_13] : memref<1x256xbf16, #tpu.memory_space<vmem>>, vector<1x256xbf16>
      %14 = arith.extf %13 : vector<1x256xbf16> to vector<1x256xf32>
      %15 = vector.broadcast %14 : vector<1x256xf32> to vector<16x256xf32>
      %16 = arith.addf %12, %15 : vector<16x256xf32>
      %17 = arith.truncf %16 : vector<16x256xf32> to vector<16x256xbf16>
      %c0_14 = arith.constant 0 : index
      %c0_15 = arith.constant 0 : index
      %18 = vector.load %arg6[%c0_14, %c0_15] : memref<16x256xbf16, #tpu.memory_space<vmem>>, vector<16x256xbf16>
      tpu.vector_store %arg6[%c0_14, %c0_15], %17 {strides = array<i32>} : memref<16x256xbf16, #tpu.memory_space<vmem>>, vector<16x256xbf16>,
    } else {
    }
    return
  }
  func.func @transform_0(%arg0: i32, %arg1: i32, %arg2: i32) -> (i32, i32) {
    %c0_i32 = arith.constant 0 : i32
    return %arg0, %arg2 : i32, i32
  }
  func.func @transform_1(%arg0: i32, %arg1: i32, %arg2: i32) -> (i32, i32) {
    %c0_i32 = arith.constant 0 : i32
    return %arg2, %arg1 : i32, i32
  }
  func.func @transform_2(%arg0: i32, %arg1: i32, %arg2: i32) -> (i32, i32) {
    %c0_i32 = arith.constant 0 : i32
    %c0_i32_0 = arith.constant 0 : i32
    return %c0_i32, %arg1 : i32, i32
  }
  func.func @transform_3(%arg0: i32, %arg1: i32, %arg2: i32) -> (i32, i32) {
    %c0_i32 = arith.constant 0 : i32
    return %arg0, %arg1 : i32, i32
  }
}

module attributes {stable_mosaic.version = 11 : i64} {
  func.func @_attention_kernel(%arg0: i32, %arg1: i32, %arg2: memref<1x8x128xbf16, #tpu.memory_space<vmem>>, %arg3: memref<1x8x128xbf16, #tpu.memory_space<vmem>>, %arg4: memref<1x8x128xbf16, #tpu.memory_space<vmem>>, %arg5: memref<1x8x8xf32, #tpu.memory_space<vmem>>, %arg6: memref<1x8x128xbf16, #tpu.memory_space<vmem>>) attributes {dimension_semantics = [#tpu.dimension_semantics<parallel>, #tpu.dimension_semantics<parallel>], iteration_bounds = array<i64: 2, 2>, scalar_prefetch = 0 : i64, scratch_operands = 0 : i64, tpu.core_type = #tpu.core_type<tc>, window_params = [{transform_indices = @transform_0, window_bounds = array<i64: 1, 8, 128>}, {transform_indices = @transform_1, window_bounds = array<i64: 1, 8, 128>}, {transform_indices = @transform_2, window_bounds = array<i64: 1, 8, 128>}, {transform_indices = @transform_3, window_bounds = array<i64: 1, 8, 8>}, {transform_indices = @transform_4, window_bounds = array<i64: 1, 8, 128>}]} {
    %c0 = arith.constant 0 : index
    %c0_0 = arith.constant 0 : index
    %c0_1 = arith.constant 0 : index
    %0 = vector.load %arg2[%c0, %c0_0, %c0_1] : memref<1x8x128xbf16, #tpu.memory_space<vmem>>, vector<1x8x128xbf16>
    %1 = vector.shape_cast %0 : vector<1x8x128xbf16> to vector<8x128xbf16>
    %c0_2 = arith.constant 0 : index
    %c0_3 = arith.constant 0 : index
    %c0_4 = arith.constant 0 : index
    %2 = vector.load %arg3[%c0_2, %c0_3, %c0_4] : memref<1x8x128xbf16, #tpu.memory_space<vmem>>, vector<1x8x128xbf16>
    %3 = vector.shape_cast %2 : vector<1x8x128xbf16> to vector<8x128xbf16>
    %c0_5 = arith.constant 0 : index
    %c0_6 = arith.constant 0 : index
    %c0_7 = arith.constant 0 : index
    %4 = vector.load %arg4[%c0_5, %c0_6, %c0_7] : memref<1x8x128xbf16, #tpu.memory_space<vmem>>, vector<1x8x128xbf16>
    %5 = vector.shape_cast %4 : vector<1x8x128xbf16> to vector<8x128xbf16>
    %c0_8 = arith.constant 0 : index
    %c0_9 = arith.constant 0 : index
    %c0_10 = arith.constant 0 : index
    %6 = vector.load %arg5[%c0_8, %c0_9, %c0_10] : memref<1x8x8xf32, #tpu.memory_space<vmem>>, vector<1x8x8xf32>
    %7 = vector.shape_cast %6 : vector<1x8x8xf32> to vector<8x8xf32>
    %cst = arith.constant dense<0.000000e+00> : vector<8x8xf32>
    %8 = tpu.matmul %1, %3, %cst {dimension_numbers = #tpu.dot_dimension_numbers<[1], [1], [0], [0], [0, 0, 1, 0], [], []>} : vector<8x128xbf16>, vector<8x128xbf16>, vector<8x8xf32> -> vector<8x8xf32>
    %cst_11 = arith.constant 0.0883883461 : f32
    %9 = vector.broadcast %cst_11 : f32 to vector<8x8xf32>
    %10 = arith.mulf %8, %9 : vector<8x8xf32>
    %11 = arith.addf %10, %7 : vector<8x8xf32>
    %cst_12 = arith.constant dense<0xFF800000> : vector<8xf32>
    %12 = vector.multi_reduction <maximumf>, %11, %cst_12 [1] : vector<8x8xf32> to vector<8xf32>
    %13 = vector.shape_cast %12 : vector<8xf32> to vector<8x1xf32>
    %14 = vector.broadcast %13 : vector<8x1xf32> to vector<8x8xf32>
    %15 = arith.subf %11, %14 : vector<8x8xf32>
    %16 = math.exp %15 : vector<8x8xf32>
    %cst_13 = arith.constant dense<0.000000e+00> : vector<8xf32>
    %17 = vector.multi_reduction <add>, %16, %cst_13 [1] : vector<8x8xf32> to vector<8xf32>
    %18 = vector.shape_cast %17 : vector<8xf32> to vector<8x1xf32>
    %19 = arith.truncf %16 : vector<8x8xf32> to vector<8x8xbf16>
    %cst_14 = arith.constant dense<0.000000e+00> : vector<8x128xf32>
    %20 = tpu.matmul %19, %5, %cst_14 {dimension_numbers = #tpu.dot_dimension_numbers<[1], [0], [0], [1], [0, 0, 1, 1], [], []>} : vector<8x8xbf16>, vector<8x128xbf16>, vector<8x128xf32> -> vector<8x128xf32>
    %21 = tpu.reciprocal %18 {approx = true} : vector<8x1xf32> -> vector<8x1xf32>
    %22 = vector.broadcast %21 : vector<8x1xf32> to vector<8x128xf32>
    %23 = arith.mulf %20, %22 : vector<8x128xf32>
    %24 = arith.truncf %23 : vector<8x128xf32> to vector<8x128xbf16>
    %c0_15 = arith.constant 0 : index
    %c0_16 = arith.constant 0 : index
    %c0_17 = arith.constant 0 : index
    %25 = vector.load %arg6[%c0_15, %c0_16, %c0_17] : memref<1x8x128xbf16, #tpu.memory_space<vmem>>, vector<1x8x128xbf16>
    %26 = vector.shape_cast %25 : vector<1x8x128xbf16> to vector<8x128xbf16>
    %27 = vector.shape_cast %24 : vector<8x128xbf16> to vector<1x8x128xbf16>
    tpu.vector_store %arg6[%c0_15, %c0_16, %c0_17], %27 {strides = array<i32>} : memref<1x8x128xbf16, #tpu.memory_space<vmem>>, vector<1x8x128xbf16>,
    return
  }
  func.func @transform_0(%arg0: i32, %arg1: i32) -> (i32, i32, i32) {
    %c0_i32 = arith.constant 0 : i32
    %0 = arith.addi %c0_i32, %arg1 : i32
    %c0_i32_0 = arith.constant 0 : i32
    %c0_i32_1 = arith.constant 0 : i32
    return %arg0, %c0_i32_0, %0 : i32, i32, i32
  }
  func.func @transform_1(%arg0: i32, %arg1: i32) -> (i32, i32, i32) {
    %c0_i32 = arith.constant 0 : i32
    %0 = arith.addi %c0_i32, %arg1 : i32
    %c0_i32_0 = arith.constant 0 : i32
    %c0_i32_1 = arith.constant 0 : i32
    return %arg0, %c0_i32_0, %0 : i32, i32, i32
  }
  func.func @transform_2(%arg0: i32, %arg1: i32) -> (i32, i32, i32) {
    %c2_i32 = arith.constant 2 : i32
    %0 = arith.addi %c2_i32, %arg1 : i32
    %c0_i32 = arith.constant 0 : i32
    %c0_i32_0 = arith.constant 0 : i32
    return %arg0, %c0_i32, %0 : i32, i32, i32
  }
  func.func @transform_3(%arg0: i32, %arg1: i32) -> (i32, i32, i32) {
    %c0_i32 = arith.constant 0 : i32
    %c0_i32_0 = arith.constant 0 : i32
    %c0_i32_1 = arith.constant 0 : i32
    return %arg0, %c0_i32, %c0_i32_0 : i32, i32, i32
  }
  func.func @transform_4(%arg0: i32, %arg1: i32) -> (i32, i32, i32) {
    %c0_i32 = arith.constant 0 : i32
    %c0_i32_0 = arith.constant 0 : i32
    return %arg0, %c0_i32, %arg1 : i32, i32, i32
  }
}

module attributes {stable_mosaic.version = 11 : i64} {
  func.func @_ffn_kernel(%arg0: i32, %arg1: i32, %arg2: memref<16x256xbf16, #tpu.memory_space<vmem>>, %arg3: memref<256x256xbf16, #tpu.memory_space<vmem>>, %arg4: memref<1x256xbf16, #tpu.memory_space<vmem>>, %arg5: memref<256x256xbf16, #tpu.memory_space<vmem>>, %arg6: memref<1x256xbf16, #tpu.memory_space<vmem>>, %arg7: memref<16x256xbf16, #tpu.memory_space<vmem>>, %arg8: memref<16x256xf32, #tpu.memory_space<vmem>>) attributes {dimension_semantics = [#tpu.dimension_semantics<parallel>, #tpu.dimension_semantics<arbitrary>], iteration_bounds = array<i64: 1, 2>, scalar_prefetch = 0 : i64, scratch_operands = 1 : i64, tpu.core_type = #tpu.core_type<tc>, window_params = [{transform_indices = @transform_0, window_bounds = array<i64: 16, 256>}, {transform_indices = @transform_1, window_bounds = array<i64: 256, 256>}, {transform_indices = @transform_2, window_bounds = array<i64: 1, 256>}, {transform_indices = @transform_3, window_bounds = array<i64: 256, 256>}, {pipeline_mode = #tpu.pipeline_mode<synchronous>, transform_indices = @transform_4, window_bounds = array<i64: 1, 256>}, {transform_indices = @transform_5, window_bounds = array<i64: 16, 256>}]} {
    %c0_i32 = arith.constant 0 : i32
    %0 = arith.cmpi eq, %arg1, %c0_i32 : i32
    %1 = arith.extui %0 : i1 to i32
    %c0_i32_0 = arith.constant 0 : i32
    %2 = arith.cmpi ne, %1, %c0_i32_0 : i32
    scf.if %2 {
      %cst_15 = arith.constant 0.000000e+00 : f32
      %21 = vector.broadcast %cst_15 : f32 to vector<16x256xf32>
      %c0_16 = arith.constant 0 : index
      %c0_17 = arith.constant 0 : index
      %22 = vector.load %arg8[%c0_16, %c0_17] : memref<16x256xf32, #tpu.memory_space<vmem>>, vector<16x256xf32>
      tpu.vector_store %arg8[%c0_16, %c0_17], %21 {strides = array<i32>} : memref<16x256xf32, #tpu.memory_space<vmem>>, vector<16x256xf32>,
    } else {
    }
    %c0 = arith.constant 0 : index
    %c0_1 = arith.constant 0 : index
    %3 = vector.load %arg2[%c0, %c0_1] : memref<16x256xbf16, #tpu.memory_space<vmem>>, vector<16x256xbf16>
    %c0_2 = arith.constant 0 : index
    %c0_3 = arith.constant 0 : index
    %4 = vector.load %arg3[%c0_2, %c0_3] : memref<256x256xbf16, #tpu.memory_space<vmem>>, vector<256x256xbf16>
    %cst = arith.constant dense<0.000000e+00> : vector<16x256xf32>
    %5 = tpu.matmul %3, %4, %cst {dimension_numbers = #tpu.dot_dimension_numbers<[1], [0], [0], [1], [0, 0, 1, 1], [], []>} : vector<16x256xbf16>, vector<256x256xbf16>, vector<16x256xf32> -> vector<16x256xf32>
    %c0_4 = arith.constant 0 : index
    %c0_5 = arith.constant 0 : index
    %6 = vector.load %arg4[%c0_4, %c0_5] : memref<1x256xbf16, #tpu.memory_space<vmem>>, vector<1x256xbf16>
    %7 = arith.extf %6 : vector<1x256xbf16> to vector<1x256xf32>
    %8 = vector.broadcast %7 : vector<1x256xf32> to vector<16x256xf32>
    %9 = arith.addf %5, %8 : vector<16x256xf32>
    %cst_6 = arith.constant 0.000000e+00 : f32
    %10 = vector.broadcast %cst_6 : f32 to vector<16x256xf32>
    %11 = arith.maximumf %9, %10 : vector<16x256xf32>
    %c0_7 = arith.constant 0 : index
    %c0_8 = arith.constant 0 : index
    %12 = vector.load %arg8[%c0_7, %c0_8] : memref<16x256xf32, #tpu.memory_space<vmem>>, vector<16x256xf32>
    %13 = arith.truncf %11 : vector<16x256xf32> to vector<16x256xbf16>
    %c0_9 = arith.constant 0 : index
    %c0_10 = arith.constant 0 : index
    %14 = vector.load %arg5[%c0_9, %c0_10] : memref<256x256xbf16, #tpu.memory_space<vmem>>, vector<256x256xbf16>
    %cst_11 = arith.constant dense<0.000000e+00> : vector<16x256xf32>
    %15 = tpu.matmul %13, %14, %cst_11 {dimension_numbers = #tpu.dot_dimension_numbers<[1], [0], [0], [1], [0, 0, 1, 1], [], []>} : vector<16x256xbf16>, vector<256x256xbf16>, vector<16x256xf32> -> vector<16x256xf32>
    %16 = arith.addf %12, %15 : vector<16x256xf32>
    %c0_12 = arith.constant 0 : index
    %c0_13 = arith.constant 0 : index
    %17 = vector.load %arg8[%c0_12, %c0_13] : memref<16x256xf32, #tpu.memory_space<vmem>>, vector<16x256xf32>
    tpu.vector_store %arg8[%c0_12, %c0_13], %16 {strides = array<i32>} : memref<16x256xf32, #tpu.memory_space<vmem>>, vector<16x256xf32>,
    %c1_i32 = arith.constant 1 : i32
    %18 = arith.cmpi eq, %arg1, %c1_i32 : i32
    %19 = arith.extui %18 : i1 to i32
    %c0_i32_14 = arith.constant 0 : i32
    %20 = arith.cmpi ne, %19, %c0_i32_14 : i32
    scf.if %20 {
      %c0_15 = arith.constant 0 : index
      %c0_16 = arith.constant 0 : index
      %21 = vector.load %arg8[%c0_15, %c0_16] : memref<16x256xf32, #tpu.memory_space<vmem>>, vector<16x256xf32>
      %c0_17 = arith.constant 0 : index
      %c0_18 = arith.constant 0 : index
      %22 = vector.load %arg6[%c0_17, %c0_18] : memref<1x256xbf16, #tpu.memory_space<vmem>>, vector<1x256xbf16>
      %23 = arith.extf %22 : vector<1x256xbf16> to vector<1x256xf32>
      %24 = vector.broadcast %23 : vector<1x256xf32> to vector<16x256xf32>
      %25 = arith.addf %21, %24 : vector<16x256xf32>
      %26 = arith.truncf %25 : vector<16x256xf32> to vector<16x256xbf16>
      %c0_19 = arith.constant 0 : index
      %c0_20 = arith.constant 0 : index
      %27 = vector.load %arg7[%c0_19, %c0_20] : memref<16x256xbf16, #tpu.memory_space<vmem>>, vector<16x256xbf16>
      tpu.vector_store %arg7[%c0_19, %c0_20], %26 {strides = array<i32>} : memref<16x256xbf16, #tpu.memory_space<vmem>>, vector<16x256xbf16>,
    } else {
    }
    return
  }
  func.func @transform_0(%arg0: i32, %arg1: i32) -> (i32, i32) {
    %c0_i32 = arith.constant 0 : i32
    %c0_i32_0 = arith.constant 0 : i32
    return %arg0, %c0_i32 : i32, i32
  }
  func.func @transform_1(%arg0: i32, %arg1: i32) -> (i32, i32) {
    %c0_i32 = arith.constant 0 : i32
    %c0_i32_0 = arith.constant 0 : i32
    return %c0_i32, %arg1 : i32, i32
  }
  func.func @transform_2(%arg0: i32, %arg1: i32) -> (i32, i32) {
    %c0_i32 = arith.constant 0 : i32
    %c0_i32_0 = arith.constant 0 : i32
    return %c0_i32, %arg1 : i32, i32
  }
  func.func @transform_3(%arg0: i32, %arg1: i32) -> (i32, i32) {
    %c0_i32 = arith.constant 0 : i32
    %c0_i32_0 = arith.constant 0 : i32
    return %arg1, %c0_i32 : i32, i32
  }
  func.func @transform_4(%arg0: i32, %arg1: i32) -> (i32, i32) {
    %c0_i32 = arith.constant 0 : i32
    %c0_i32_0 = arith.constant 0 : i32
    %c0_i32_1 = arith.constant 0 : i32
    return %c0_i32, %c0_i32_0 : i32, i32
  }
  func.func @transform_5(%arg0: i32, %arg1: i32) -> (i32, i32) {
    %c0_i32 = arith.constant 0 : i32
    %c0_i32_0 = arith.constant 0 : i32
    return %arg0, %c0_i32 : i32, i32
  }
}

module attributes {stable_mosaic.version = 11 : i64} {
  func.func @_matmul_bias_kernel(%arg0: i32, %arg1: i32, %arg2: i32, %arg3: memref<16x256xbf16, #tpu.memory_space<vmem>>, %arg4: memref<256x256xbf16, #tpu.memory_space<vmem>>, %arg5: memref<1x256xbf16, #tpu.memory_space<vmem>>, %arg6: memref<16x256xf32, #tpu.memory_space<vmem>>, %arg7: memref<16x256xf32, #tpu.memory_space<vmem>>) attributes {dimension_semantics = [#tpu.dimension_semantics<parallel>, #tpu.dimension_semantics<parallel>, #tpu.dimension_semantics<arbitrary>], iteration_bounds = array<i64: 1, 1, 1>, scalar_prefetch = 0 : i64, scratch_operands = 1 : i64, tpu.core_type = #tpu.core_type<tc>, window_params = [{transform_indices = @transform_0, window_bounds = array<i64: 16, 256>}, {transform_indices = @transform_1, window_bounds = array<i64: 256, 256>}, {transform_indices = @transform_2, window_bounds = array<i64: 1, 256>}, {transform_indices = @transform_3, window_bounds = array<i64: 16, 256>}]} {
    %c0_i32 = arith.constant 0 : i32
    %0 = arith.cmpi eq, %arg2, %c0_i32 : i32
    %1 = arith.extui %0 : i1 to i32
    %c0_i32_0 = arith.constant 0 : i32
    %2 = arith.cmpi ne, %1, %c0_i32_0 : i32
    scf.if %2 {
      %cst_10 = arith.constant 0.000000e+00 : f32
      %12 = vector.broadcast %cst_10 : f32 to vector<16x256xf32>
      %c0_11 = arith.constant 0 : index
      %c0_12 = arith.constant 0 : index
      %13 = vector.load %arg7[%c0_11, %c0_12] : memref<16x256xf32, #tpu.memory_space<vmem>>, vector<16x256xf32>
      tpu.vector_store %arg7[%c0_11, %c0_12], %12 {strides = array<i32>} : memref<16x256xf32, #tpu.memory_space<vmem>>, vector<16x256xf32>,
    } else {
    }
    %c0 = arith.constant 0 : index
    %c0_1 = arith.constant 0 : index
    %3 = vector.load %arg7[%c0, %c0_1] : memref<16x256xf32, #tpu.memory_space<vmem>>, vector<16x256xf32>
    %c0_2 = arith.constant 0 : index
    %c0_3 = arith.constant 0 : index
    %4 = vector.load %arg3[%c0_2, %c0_3] : memref<16x256xbf16, #tpu.memory_space<vmem>>, vector<16x256xbf16>
    %c0_4 = arith.constant 0 : index
    %c0_5 = arith.constant 0 : index
    %5 = vector.load %arg4[%c0_4, %c0_5] : memref<256x256xbf16, #tpu.memory_space<vmem>>, vector<256x256xbf16>
    %cst = arith.constant dense<0.000000e+00> : vector<16x256xf32>
    %6 = tpu.matmul %4, %5, %cst {dimension_numbers = #tpu.dot_dimension_numbers<[1], [0], [0], [1], [0, 0, 1, 1], [], []>} : vector<16x256xbf16>, vector<256x256xbf16>, vector<16x256xf32> -> vector<16x256xf32>
    %7 = arith.addf %3, %6 : vector<16x256xf32>
    %c0_6 = arith.constant 0 : index
    %c0_7 = arith.constant 0 : index
    %8 = vector.load %arg7[%c0_6, %c0_7] : memref<16x256xf32, #tpu.memory_space<vmem>>, vector<16x256xf32>
    tpu.vector_store %arg7[%c0_6, %c0_7], %7 {strides = array<i32>} : memref<16x256xf32, #tpu.memory_space<vmem>>, vector<16x256xf32>,
    %c0_i32_8 = arith.constant 0 : i32
    %9 = arith.cmpi eq, %arg2, %c0_i32_8 : i32
    %10 = arith.extui %9 : i1 to i32
    %c0_i32_9 = arith.constant 0 : i32
    %11 = arith.cmpi ne, %10, %c0_i32_9 : i32
    scf.if %11 {
      %c0_10 = arith.constant 0 : index
      %c0_11 = arith.constant 0 : index
      %12 = vector.load %arg7[%c0_10, %c0_11] : memref<16x256xf32, #tpu.memory_space<vmem>>, vector<16x256xf32>
      %c0_12 = arith.constant 0 : index
      %c0_13 = arith.constant 0 : index
      %13 = vector.load %arg5[%c0_12, %c0_13] : memref<1x256xbf16, #tpu.memory_space<vmem>>, vector<1x256xbf16>
      %14 = arith.extf %13 : vector<1x256xbf16> to vector<1x256xf32>
      %15 = vector.broadcast %14 : vector<1x256xf32> to vector<16x256xf32>
      %16 = arith.addf %12, %15 : vector<16x256xf32>
      %c0_14 = arith.constant 0 : index
      %c0_15 = arith.constant 0 : index
      %17 = vector.load %arg6[%c0_14, %c0_15] : memref<16x256xf32, #tpu.memory_space<vmem>>, vector<16x256xf32>
      tpu.vector_store %arg6[%c0_14, %c0_15], %16 {strides = array<i32>} : memref<16x256xf32, #tpu.memory_space<vmem>>, vector<16x256xf32>,
    } else {
    }
    return
  }
  func.func @transform_0(%arg0: i32, %arg1: i32, %arg2: i32) -> (i32, i32) {
    %c0_i32 = arith.constant 0 : i32
    return %arg0, %arg2 : i32, i32
  }
  func.func @transform_1(%arg0: i32, %arg1: i32, %arg2: i32) -> (i32, i32) {
    %c0_i32 = arith.constant 0 : i32
    return %arg2, %arg1 : i32, i32
  }
  func.func @transform_2(%arg0: i32, %arg1: i32, %arg2: i32) -> (i32, i32) {
    %c0_i32 = arith.constant 0 : i32
    %c0_i32_0 = arith.constant 0 : i32
    return %c0_i32, %arg1 : i32, i32
  }
  func.func @transform_3(%arg0: i32, %arg1: i32, %arg2: i32) -> (i32, i32) {
    %c0_i32 = arith.constant 0 : i32
    return %arg0, %arg1 : i32, i32
  }
}

</mosaic_0001>

<bundles_post_ra>
// kernel: transformer_forward.47
= control target key start
LH: loop header
LB: loop body
LE: loop exit
PB: predicated region body
PF: predicated region fallthrough
CT: control target
= control target key end

     0   :  { %8 = vsyncpa [#allocation4], 0  ;;  %s1272_s0 = inlined_call_operand.vmem [shape: bf16[16,256], index: 0, kind: input, shape index: {}]   ;;  %s1273_s1 = inlined_call_operand.hbm [shape: bf16[256,768], index: 1, kind: input, shape index: {}]   ;;  %s1274_s2 = inlined_call_operand.vmem [shape: bf16[1,768], index: 2, kind: input, shape index: {}]   ;;  %s1275_s3 = inlined_call_operand.vmem [shape: bf16[16,768], index: 3, kind: output, shape index: {}]  }
   0x1   :  { %10 = vsyncpa [#allocation4 + $0x1], 0  ;;  %s1092_s12 = smov 0   ;;  %s1094_s13 = smov 0  }
   0x2   :  { %s1096_s14 = smov 0   ;;  %s1098_s15 = smov 0  }
   0x3   :  { %s1100_s16 = smov 0   ;;  %s1102_s17 = smov 0  }
   0x4 LB: > { %s740_s18 = sadd.s32 4294967295, %s1067_s17   ;;  %s31_s19 = sadd.s32 1, %s1063_s16  ;;  %s1067_s17 = sphi %s1102_s17, %s16_s17   ;;  %s1063_s16 = sphi %s1100_s16, %s1283_s16   ;;  %s1059_s15 = sphi %s1098_s15, %s1282_s15   ;;  %s1055_s14 = sphi %s1096_s14, %s1281_s14   ;;  %s1051_s13 = sphi %s1094_s13, %s1280_s13   ;;  %s1047_s12 = sphi %s1092_s12, %s1279_s12  }
   0x5   : > { %p33_p0 = scmp.ge.s32.totalorder %s31_s19, 3  ;;  %s72_s20 = sadd.s32 1, %s1055_s14 }
   0x6   : > { %p79_p1 = scmp.ne.s32.totalorder %s1055_s14, %s1051_s13  ;;  %p80_p2 = scmp.eq.s32.totalorder %s1067_s17, 0 }
   0x7   : > { %s1285_s19 = smov (%p33_p0, %s31_s19), 0  ;;  %p85_p4 = scmp.ne.s32.totalorder %s1051_s13, %s1047_s12 }
   0x8   : > { %p1128_p3 = por %p80_p2, %p79_p1  ;;  %s68_s22 = ssub.s32 %s1063_s16, %s1285_s19 }
   0x9   : > { %p86_p5 = scmp.eq.s32.totalorder %s740_s18, 0  ;;  %p70_p6 = scmp.eq.s32.totalorder %s68_s22, 0 }
   0xa   : > { %p137_p7 = scmp.eq.s32.totalorder %s740_s18, 2  ;;  %p935_p10 = scmp.lt.s32.totalorder %s1067_s17, 3 }
   0xb   : > { %p1135_p8 = por %p86_p5, %p85_p4  ;;  %s178_s26 = sand.u32 1, %s1055_s14  }
   0xc   : > { %s1140_s24 = scalar_select %p70_p6, %s1055_s14, %s72_s20  }
   0xd   : > { %p1142_p9 = por %p137_p7, %p79_p1  ;;  %s893_s27 = sshll.u32 %s1063_s16, 3 }
   0xe   : > { %s745_s28 = sshll.u32 %s178_s26, 8  ;;  %s190_s4 = scalar_lea.hbm %s1273_s1, %s893_s27 }
   0xf   : > { %s191_s5 = sshll.u32 %s190_s4, 4  ;;  %s182_s6 = scalar_lea.vmem [#allocation3], %s745_s28  ;;  %s192_s5 = int_to_ptr.hbm [resolvable:$true] %s191_s5 }
  0x10   : > { %s193_s7 = sshll.u32 %s182_s6, 4  ;;  %p932_p11 = pnand %p935_p10, %p1128_p3  ;;  %s194_s7 = int_to_ptr.vmem [resolvable:$true] %s193_s7 }
  0x11   : > { %p748_p12 = scmp.ge.s32.totalorder %s1067_s17, 1  ;;  %s179_s8 = scalar_lea.sflag [#allocation4], %s178_s26 }
  0x12   : > { %s1069_s9 = smov 384   ;;  %s1070_s10 = smov 128  }
  0x13   : > { %s1071_s11 = smov 8   ;;  %p209_p13 = scmp.lt.s32.totalorder %s1067_s17, 4 }
  0x14   : > { %934 = dma.hbm_to_vmem [thread:$0]  (!%p932_p11), %s192_s5, 4096, %s194_s7, %s179_s8, %s1069_s9, %s1070_s10, %s1071_s11  }
  0x15   : > { %p210_p0 = pnand %p748_p12, %p209_p13 }
  0x16   : > { %s1157_s12 = sand.u32 (!%p210_p0), 1, %s1051_s13  }
  0x17   : > { %213 = sbr.rel (%p210_p0) target bundleno = 221 (0xdd), region = 32  ;;  %s749_s18 = sshll.u32 (!%p210_p0), %s1157_s12, 8 }
  0x18   : > { %s216_s20 = scalar_lea.sflag (!%p210_p0), [#allocation4], %s1157_s12  ;;  %s1161_s22 = scalar_lea.vmem (!%p210_p0), [#allocation3], %s749_s18 }
  0x1c   : > { %1042 = dma.done.wait (%p1135_p8), %s216_s20, 4096  }
  0x1d   : > { %1044 = vsyncadd (%p1135_p8), %s216_s20, 4294963200  ;;  %v818_v0 = vld [vmem:[%s1161_s22 + $0x70] sm:$0xf]  ;;  %v911_v1 = vld [vmem:[%s1161_s22 + $0x74] sm:$0xf0]  ;;  %s751_s5 = sshll.u32 %s1059_s15, 1 }
  0x1e   : > { %v882_v2 = vld [vmem:[%s1161_s22 + $0xf0] sm:$0xf]  ;;  %v819_v3 = vor.u32 %v911_v1, %v818_v0  ;;  %v927_v4 = vld [vmem:[%s1161_s22 + $0xf4] sm:$0xf0]  ;;  %v910_v5 = vld [vmem:[%s1161_s22 + $0x74] sm:$0xf] }
  0x1f   : > { %v820_v6 = vld [vmem:[%s1161_s22 + $0x78] sm:$0xf0]  ;;  %v883_v7 = vor.u32 %v927_v4, %v882_v2  ;;  %v926_v9 = vld [vmem:[%s1161_s22 + $0xf4] sm:$0xf]  ;;  %v810_v11 = vld [vmem:[%s1161_s22 + $0x60] sm:$0xf] }
  0x20   : > { %v823_v8 = vor.u32 %v910_v5, %v820_v6  ;;  %v884_v10 = vld [vmem:[%s1161_s22 + $0xf8] sm:$0xf0]  ;;  %493 = vmatpush.bf16.msra.mxu0 %v819_v3  ;;  %v909_v13 = vld [vmem:[%s1161_s22 + $0x64] sm:$0xf0]  ;;  %v874_v14 = vld [vmem:[%s1161_s22 + $0xe0] sm:$0xf] }
  0x21   : > { %v887_v12 = vor.u32 %v926_v9, %v884_v10  ;;  %v925_v15 = vld [vmem:[%s1161_s22 + $0xe4] sm:$0xf0]  ;;  %507 = vmatpush.bf16.msra.mxu1 %v883_v7  ;;  %v811_v16 = vor.u32 %v909_v13, %v810_v11  ;;  %v908_v18 = vld [vmem:[%s1161_s22 + $0x64] sm:$0xf]  ;;  %v812_v19 = vld [vmem:[%s1161_s22 + $0x68] sm:$0xf0] }
  0x22   : > { %521 = vmatpush.bf16.msra.mxu2 %v823_v8  ;;  %v875_v17 = vor.u32 %v925_v15, %v874_v14  ;;  %v924_v20 = vld [vmem:[%s1161_s22 + $0xe4] sm:$0xf]  ;;  %v815_v21 = vor.u32 %v908_v18, %v812_v19  ;;  %v876_v22 = vld [vmem:[%s1161_s22 + $0xe8] sm:$0xf0]  ;;  %v802_v23 = vld [vmem:[%s1161_s22 + $0x50] sm:$0xf] }
  0x23   : > { %535 = vmatpush.bf16.msra.mxu3 %v887_v12  ;;  %v907_v24 = vld [vmem:[%s1161_s22 + $0x54] sm:$0xf0]  ;;  %v879_v25 = vor.u32 %v924_v20, %v876_v22  ;;  %v866_v26 = vld [vmem:[%s1161_s22 + $0xd0] sm:$0xf]  ;;  %v906_v28 = vld [vmem:[%s1161_s22 + $0x54] sm:$0xf] }
  0x24   : > { %v923_v27 = vld [vmem:[%s1161_s22 + $0xd4] sm:$0xf0]  ;;  %494 = vmatpush.bf16.msra.mxu0 %v811_v16  ;;  %v803_v29 = vor.u32 %v907_v24, %v802_v23  ;;  %v804_v30 = vld [vmem:[%s1161_s22 + $0x58] sm:$0xf0]  ;;  %v922_v31 = vld [vmem:[%s1161_s22 + $0xd4] sm:$0xf] }
  0x25   : > { %v868_v32 = vld [vmem:[%s1161_s22 + $0xd8] sm:$0xf0]  ;;  %508 = vmatpush.bf16.msra.mxu1 %v875_v17  ;;  %v867_v33 = vor.u32 %v923_v27, %v866_v26  ;;  %v807_v34 = vor.u32 %v906_v28, %v804_v30  ;;  %v794_v35 = vld [vmem:[%s1161_s22 + $0x40] sm:$0xf]  ;;  %v905_v36 = vld [vmem:[%s1161_s22 + $0x44] sm:$0xf0] }
  0x26   : > { %522 = vmatpush.bf16.msra.mxu2 %v815_v21  ;;  %v858_v37 = vld [vmem:[%s1161_s22 + $0xc0] sm:$0xf]  ;;  %v871_v38 = vor.u32 %v922_v31, %v868_v32  ;;  %v921_v39 = vld [vmem:[%s1161_s22 + $0xc4] sm:$0xf0]  ;;  %v904_v40 = vld [vmem:[%s1161_s22 + $0x44] sm:$0xf]  ;;  %v795_v44 = vor.u32 %v905_v36, %v794_v35 }
  0x27   : > { %536 = vmatpush.bf16.msra.mxu3 %v879_v25  ;;  %v796_v41 = vld [vmem:[%s1161_s22 + $0x48] sm:$0xf0]  ;;  %v920_v42 = vld [vmem:[%s1161_s22 + $0xc4] sm:$0xf]  ;;  %v859_v45 = vor.u32 %v921_v39, %v858_v37  ;;  %v786_v47 = vld [vmem:[%s1161_s22 + $0x30] sm:$0xf] }
  0x28   : > { %v860_v43 = vld [vmem:[%s1161_s22 + $0xc8] sm:$0xf0]  ;;  %495 = vmatpush.bf16.msra.mxu0 %v803_v29  ;;  %v799_v46 = vor.u32 %v904_v40, %v796_v41  ;;  %v903_v48 = vld [vmem:[%s1161_s22 + $0x34] sm:$0xf0]  ;;  %v850_v49 = vld [vmem:[%s1161_s22 + $0xb0] sm:$0xf] }
  0x29   : > { %509 = vmatpush.bf16.msra.mxu1 %v867_v33  ;;  %v863_v50 = vor.u32 %v920_v42, %v860_v43  ;;  %v919_v51 = vld [vmem:[%s1161_s22 + $0xb4] sm:$0xf0]  ;;  %v902_v52 = vld [vmem:[%s1161_s22 + $0x34] sm:$0xf]  ;;  %v788_v53 = vld [vmem:[%s1161_s22 + $0x38] sm:$0xf0]  ;;  %v787_v56 = vor.u32 %v903_v48, %v786_v47 }
  0x2a   : > { %523 = vmatpush.bf16.msra.mxu2 %v807_v34  ;;  %v918_v54 = vld [vmem:[%s1161_s22 + $0xb4] sm:$0xf]  ;;  %v852_v55 = vld [vmem:[%s1161_s22 + $0xb8] sm:$0xf0]  ;;  %v851_v57 = vor.u32 %v919_v51, %v850_v49  ;;  %v791_v58 = vor.u32 %v902_v52, %v788_v53  ;;  %v778_v59 = vld [vmem:[%s1161_s22 + $0x20] sm:$0xf] }
  0x2b   : > { %537 = vmatpush.bf16.msra.mxu3 %v871_v38  ;;  %v901_v60 = vld [vmem:[%s1161_s22 + $0x24] sm:$0xf0]  ;;  %v842_v61 = vld [vmem:[%s1161_s22 + $0xa0] sm:$0xf]  ;;  %v855_v62 = vor.u32 %v918_v54, %v852_v55  ;;  %v900_v0 = vld [vmem:[%s1161_s22 + $0x24] sm:$0xf] }
  0x2c   : > { %496 = vmatpush.bf16.msra.mxu0 %v795_v44  ;;  %v917_v63 = vld [vmem:[%s1161_s22 + $0xa4] sm:$0xf0]  ;;  %v780_v1 = vld [vmem:[%s1161_s22 + $0x28] sm:$0xf0]  ;;  %v916_v2 = vld [vmem:[%s1161_s22 + $0xa4] sm:$0xf]  ;;  %v779_v4 = vor.u32 %v901_v60, %v778_v59 }
  0x2d   : > { %510 = vmatpush.bf16.msra.mxu1 %v859_v45  ;;  %v844_v3 = vld [vmem:[%s1161_s22 + $0xa8] sm:$0xf0]  ;;  %v843_v5 = vor.u32 %v917_v63, %v842_v61  ;;  %v783_v6 = vor.u32 %v900_v0, %v780_v1  ;;  %v770_v7 = vld [vmem:[%s1161_s22 + $0x10] sm:$0xf]  ;;  %v899_v8 = vld [vmem:[%s1161_s22 + $0x14] sm:$0xf0] }
  0x2e   : > { %524 = vmatpush.bf16.msra.mxu2 %v799_v46  ;;  %v834_v9 = vld [vmem:[%s1161_s22 + $0x90] sm:$0xf]  ;;  %v847_v10 = vor.u32 %v916_v2, %v844_v3  ;;  %v915_v11 = vld [vmem:[%s1161_s22 + $0x94] sm:$0xf0]  ;;  %v898_v12 = vld [vmem:[%s1161_s22 + $0x14] sm:$0xf]  ;;  %v771_v16 = vor.u32 %v899_v8, %v770_v7 }
  0x2f   : > { %538 = vmatpush.bf16.msra.mxu3 %v863_v50  ;;  %v772_v13 = vld [vmem:[%s1161_s22 + $0x18] sm:$0xf0]  ;;  %v914_v14 = vld [vmem:[%s1161_s22 + $0x94] sm:$0xf]  ;;  %v835_v17 = vor.u32 %v915_v11, %v834_v9  ;;  %v762_v19 = vld [vmem:[%s1161_s22] sm:$0xf] }
  0x30   : > { %497 = vmatpush.bf16.msra.mxu0 %v787_v56  ;;  %v836_v15 = vld [vmem:[%s1161_s22 + $0x98] sm:$0xf0]  ;;  %v775_v18 = vor.u32 %v898_v12, %v772_v13  ;;  %v897_v20 = vld [vmem:[%s1161_s22 + $0x4] sm:$0xf0]  ;;  %v826_v21 = vld [vmem:[%s1161_s22 + $0x80] sm:$0xf] }
  0x31   : > { %511 = vmatpush.bf16.msra.mxu1 %v851_v57  ;;  %v839_v22 = vor.u32 %v914_v14, %v836_v15  ;;  %v913_v23 = vld [vmem:[%s1161_s22 + $0x84] sm:$0xf0]  ;;  %v896_v24 = vld [vmem:[%s1161_s22 + $0x4] sm:$0xf]  ;;  %v764_v25 = vld [vmem:[%s1161_s22 + $0x8] sm:$0xf0]  ;;  %v763_v28 = vor.u32 %v897_v20, %v762_v19 }
  0x32   : > { %525 = vmatpush.bf16.msra.mxu2 %v791_v58  ;;  %v912_v26 = vld [vmem:[%s1161_s22 + $0x84] sm:$0xf]  ;;  %v828_v27 = vld [vmem:[%s1161_s22 + $0x88] sm:$0xf0]  ;;  %v754_v29 = vld [vmem:[%s1272_s0] sm:$0xf]  ;;  %v827_v31 = vor.u32 %v913_v23, %v826_v21  ;;  %v767_v32 = vor.u32 %v896_v24, %v764_v25 }
  0x33   : > { %539 = vmatpush.bf16.msra.mxu3 %v855_v62  ;;  %v895_v30 = vld [vmem:[%s1272_s0 + $0x4] sm:$0xf0]  ;;  %v894_v33 = vld [vmem:[%s1272_s0 + $0x4] sm:$0xf]  ;;  %v756_v34 = vld [vmem:[%s1272_s0 + $0x8] sm:$0xf0]  ;;  %v831_v35 = vor.u32 %v912_v26, %v828_v27 }
  0x34   : > { %498 = vmatpush.bf16.msra.mxu0 %v779_v4  ;;  %v755_v36 = vor.u32 %v895_v30, %v754_v29  ;;  %v759_v37 = vor.u32 %v894_v33, %v756_v34  ;;  %p271_p1 = scmp.lt.s32.totalorder %s751_s5, 5  ;;  %s750_s9 = sshll.u32 %s1157_s12, 4 }
  0x35   : > { %512 = vmatpush.bf16.msra.mxu1 %v843_v5  ;;  %s255_s10 = scalar_lea.vmem [#allocation5], %s750_s9  ;;  %s928_s11 = sshll.u32 (%p1142_p9), %s1059_s15, 3 }
  0x36   : > { %526 = vmatpush.bf16.msra.mxu2 %v783_v6  ;;  %s1287_s5 = smov (!%p271_p1, %s751_s5), 5  ;;  %s593_s20 = scalar_lea.vmem (%p1142_p9), %s1275_s3, %s928_s11 }
  0x37   : > { %540 = vmatpush.bf16.msra.mxu3 %v847_v10  ;;  %s273_s8 = scalar_lea.vmem %s1274_s2, %s1287_s5 }
  0x38   : > { %499 = vmatpush.bf16.msra.mxu0 %v771_v16  ;;  %v564_v38 = vld [vmem:[%s273_s8] sm:$0x3] }
  0x39   : > { %513 = vmatpush.bf16.msra.mxu1 %v835_v17  ;;  %v565_v39 = vunpack.c.l.bf16 %v564_v38 }
  0x3a   : > { %527 = vmatpush.bf16.msra.mxu2 %v775_v18 }
  0x3b   : > { %541 = vmatpush.bf16.msra.mxu3 %v839_v22  ;;  %v567_v40 = vperm.slane %v565_v39, 0  ;;  %v568_v43 = vperm.slane %v565_v39, 2 }
  0x3c   : > { %500 = vmatpush.bf16.msra.mxu0 %v763_v28 }
  0x3d   : > { %514 = vmatpush.bf16.msra.mxu1 %v827_v31  ;;  %v571_v45 = vperm.slane %v567_v40, 0  ;;  %v572_v47 = vperm.slane %v568_v43, 0 }
  0x3e   : > { %528 = vmatpush.bf16.msra.mxu2 %v767_v32 }
  0x3f   : > { %542 = vmatpush.bf16.msra.mxu3 %v831_v35  ;;  %501 = vmatmul.bf16.vlgmr.msra.gmra.mxu0 %v755_v36 }
  0x40   : > { %515 = vmatmul.bf16.vlgmr.msra.gmra.mxu1 %v759_v37 }
  0x41   : > { %529 = vmatmul.bf16.vlgmr.msra.gmra.mxu2 %v755_v36 }
  0x42   : > { %543 = vmatmul.bf16.vlgmr.msra.gmra.mxu3 %v759_v37 }
  0xbc   : > { %v502_v41 = vpop.f32.mrf.mxu0 }
  0xbd   : > { %v516_v42 = vpop.f32.mrf.mxu1 }
  0xbe   : > { %v517_v44 = vadd.f32 %v516_v42, %v502_v41 }
  0xc0   : > { %v573_v49 = vadd.f32 %v571_v45, %v517_v44 }
  0xc4   : > { %v530_v46 = vpop.f32.mrf.mxu2  ;;  %v504_v52 = vpop.f32.mrf.mxu0 }
  0xc5   : > { %v544_v48 = vpop.f32.mrf.mxu3  ;;  %v518_v53 = vpop.f32.mrf.mxu1 }
  0xc6   : > { %v545_v50 = vadd.f32 %v544_v48, %v530_v46  ;;  %v519_v55 = vadd.f32 %v518_v53, %v504_v52 }
  0xc8   : > { %v574_v51 = vadd.f32 %v572_v47, %v545_v50  ;;  %v575_v59 = vadd.f32 %v571_v45, %v519_v55 }
  0xca   : > { %v577_v54 = vpack.c.bf16 %v574_v51, %v573_v49 }
  0xcc   : > { %579 = vst [vmem:[%s255_s10] sm:$0xff] %v577_v54  ;;  %v532_v56 = vpop.f32.mrf.mxu2 }
  0xcd   : > { %v546_v57 = vpop.f32.mrf.mxu3 }
  0xce   : > { %v547_v58 = vadd.f32 %v546_v57, %v532_v56 }
  0xd0   : > { %v576_v60 = vadd.f32 %v572_v47, %v547_v58  ;;  %587 = sbr.rel (!%p1142_p9) target bundleno = 221 (0xdd), region = 48 }
  0xd2   : > { %v578_v61 = vpack.c.bf16 %v576_v60, %v575_v59 }
  0xd3   : > { %v624_v62 = vld [vmem:[%s255_s10] sm:$0xff] (%p1142_p9) }
  0xd4   : > { %580 = vst [vmem:[%s255_s10 + $0x8] sm:$0xff] %v578_v61 }
  0xd5   : > { %625 = vst [vmem:[%s593_s20] sm:$0xff] %v624_v62 }
  0xdb   : > { %v626_v63 = vld [vmem:[%s255_s10 + $0x8] sm:$0xff] }
  0xdc   : > { %627 = vst [vmem:[%s593_s20 + $0x18] sm:$0xff] %v626_v63 }
  0xdd PF: > { %s16_s17 = sadd.s32 1, %s1067_s17   ;;  %s1279_s12 = smov %s1051_s13 }
  0xde   : > { %p13_p2 = scmp.ge.s32.totalorder %s16_s17, 5   ;;  %s1280_s13 = smov %s1055_s14 }
  0xdf   : > { %s1281_s14 = smov %s1140_s24  ;;  %s1282_s15 = smov %s1063_s16 }
  0xe0   : > { %s1283_s16 = smov %s1285_s19  ;;  %15 = sbr.rel (!%p13_p2) target bundleno = 4 (0x4), region = 124 }
  0xe5   :  { %643 = vsyncpa [#allocation4], 1 }
  0xe6   :  { %645 = vsyncpa [#allocation4 + $0x1], 1 }

// kernel: transformer_forward.49
= control target key start
LH: loop header
LB: loop body
LE: loop exit
PB: predicated region body
PF: predicated region fallthrough
CT: control target
= control target key end

     0   :  { %s725_s1 = inlined_call_operand.vmem [shape: bf16[256,256], index: 1, kind: input, shape index: {}]   ;;  %s726_s0 = inlined_call_operand.vmem [shape: bf16[16,256], index: 0, kind: input, shape index: {}]   ;;  %s727_s2 = inlined_call_operand.vmem [shape: bf16[1,256], index: 2, kind: input, shape index: {}]   ;;  %s728_s3 = inlined_call_operand.vmem [shape: bf16[16,256], index: 3, kind: output, shape index: {}]  }
   0x1   :  { %v388_v0 = vld [vmem:[%s725_s1 + $0x70] sm:$0xf]  ;;  %v475_v1 = vld [vmem:[%s725_s1 + $0x74] sm:$0xf0]  ;;  %v474_v5 = vld [vmem:[%s725_s1 + $0x74] sm:$0xf] }
   0x2   :  { %v452_v2 = vld [vmem:[%s725_s1 + $0xf0] sm:$0xf]  ;;  %v389_v3 = vor.u32 %v475_v1, %v388_v0  ;;  %v491_v4 = vld [vmem:[%s725_s1 + $0xf4] sm:$0xf0]  ;;  %v390_v6 = vld [vmem:[%s725_s1 + $0x78] sm:$0xf0] }
   0x3   :  { %v453_v7 = vor.u32 %v491_v4, %v452_v2  ;;  %v393_v8 = vor.u32 %v474_v5, %v390_v6  ;;  %v490_v9 = vld [vmem:[%s725_s1 + $0xf4] sm:$0xf]  ;;  %v454_v10 = vld [vmem:[%s725_s1 + $0xf8] sm:$0xf0]  ;;  %v380_v11 = vld [vmem:[%s725_s1 + $0x60] sm:$0xf] }
   0x4   :  { %230 = vmatpush.bf16.msra.mxu0 %v389_v3  ;;  %v457_v12 = vor.u32 %v490_v9, %v454_v10  ;;  %v473_v13 = vld [vmem:[%s725_s1 + $0x64] sm:$0xf0]  ;;  %v444_v14 = vld [vmem:[%s725_s1 + $0xe0] sm:$0xf]  ;;  %v472_v18 = vld [vmem:[%s725_s1 + $0x64] sm:$0xf] }
   0x5   :  { %v489_v15 = vld [vmem:[%s725_s1 + $0xe4] sm:$0xf0]  ;;  %244 = vmatpush.bf16.msra.mxu1 %v453_v7  ;;  %258 = vmatpush.bf16.msra.mxu2 %v393_v8  ;;  %v381_v16 = vor.u32 %v473_v13, %v380_v11  ;;  %v382_v19 = vld [vmem:[%s725_s1 + $0x68] sm:$0xf0]  ;;  %v488_v20 = vld [vmem:[%s725_s1 + $0xe4] sm:$0xf] }
   0x6   :  { %v445_v17 = vor.u32 %v489_v15, %v444_v14  ;;  %272 = vmatpush.bf16.msra.mxu3 %v457_v12  ;;  %v385_v21 = vor.u32 %v472_v18, %v382_v19  ;;  %v446_v22 = vld [vmem:[%s725_s1 + $0xe8] sm:$0xf0]  ;;  %v372_v23 = vld [vmem:[%s725_s1 + $0x50] sm:$0xf]  ;;  %v471_v24 = vld [vmem:[%s725_s1 + $0x54] sm:$0xf0] }
   0x7   :  { %v449_v25 = vor.u32 %v488_v20, %v446_v22  ;;  %v436_v26 = vld [vmem:[%s725_s1 + $0xd0] sm:$0xf]  ;;  %v487_v27 = vld [vmem:[%s725_s1 + $0xd4] sm:$0xf0]  ;;  %v470_v28 = vld [vmem:[%s725_s1 + $0x54] sm:$0xf]  ;;  %v373_v29 = vor.u32 %v471_v24, %v372_v23 }
   0x8   :  { %231 = vmatpush.bf16.msra.mxu0 %v381_v16  ;;  %v374_v30 = vld [vmem:[%s725_s1 + $0x58] sm:$0xf0]  ;;  %v486_v31 = vld [vmem:[%s725_s1 + $0xd4] sm:$0xf]  ;;  %v437_v33 = vor.u32 %v487_v27, %v436_v26  ;;  %v364_v35 = vld [vmem:[%s725_s1 + $0x40] sm:$0xf] }
   0x9   :  { %v438_v32 = vld [vmem:[%s725_s1 + $0xd8] sm:$0xf0]  ;;  %245 = vmatpush.bf16.msra.mxu1 %v445_v17  ;;  %259 = vmatpush.bf16.msra.mxu2 %v385_v21  ;;  %v377_v34 = vor.u32 %v470_v28, %v374_v30  ;;  %v469_v36 = vld [vmem:[%s725_s1 + $0x44] sm:$0xf0]  ;;  %v428_v37 = vld [vmem:[%s725_s1 + $0xc0] sm:$0xf] }
   0xa   :  { %273 = vmatpush.bf16.msra.mxu3 %v449_v25  ;;  %v441_v38 = vor.u32 %v486_v31, %v438_v32  ;;  %v485_v39 = vld [vmem:[%s725_s1 + $0xc4] sm:$0xf0]  ;;  %v468_v40 = vld [vmem:[%s725_s1 + $0x44] sm:$0xf]  ;;  %v366_v41 = vld [vmem:[%s725_s1 + $0x48] sm:$0xf0]  ;;  %v365_v44 = vor.u32 %v469_v36, %v364_v35 }
   0xb   :  { %v484_v42 = vld [vmem:[%s725_s1 + $0xc4] sm:$0xf]  ;;  %v430_v43 = vld [vmem:[%s725_s1 + $0xc8] sm:$0xf0]  ;;  %v429_v45 = vor.u32 %v485_v39, %v428_v37  ;;  %v369_v46 = vor.u32 %v468_v40, %v366_v41  ;;  %v356_v47 = vld [vmem:[%s725_s1 + $0x30] sm:$0xf] }
   0xc   :  { %232 = vmatpush.bf16.msra.mxu0 %v373_v29  ;;  %v467_v48 = vld [vmem:[%s725_s1 + $0x34] sm:$0xf0]  ;;  %v420_v49 = vld [vmem:[%s725_s1 + $0xb0] sm:$0xf]  ;;  %v433_v50 = vor.u32 %v484_v42, %v430_v43  ;;  %v466_v52 = vld [vmem:[%s725_s1 + $0x34] sm:$0xf] }
   0xd   :  { %246 = vmatpush.bf16.msra.mxu1 %v437_v33  ;;  %260 = vmatpush.bf16.msra.mxu2 %v377_v34  ;;  %v483_v51 = vld [vmem:[%s725_s1 + $0xb4] sm:$0xf0]  ;;  %v358_v53 = vld [vmem:[%s725_s1 + $0x38] sm:$0xf0]  ;;  %v482_v54 = vld [vmem:[%s725_s1 + $0xb4] sm:$0xf]  ;;  %v357_v56 = vor.u32 %v467_v48, %v356_v47 }
   0xe   :  { %274 = vmatpush.bf16.msra.mxu3 %v441_v38  ;;  %v422_v55 = vld [vmem:[%s725_s1 + $0xb8] sm:$0xf0]  ;;  %v421_v57 = vor.u32 %v483_v51, %v420_v49  ;;  %v361_v58 = vor.u32 %v466_v52, %v358_v53  ;;  %v348_v59 = vld [vmem:[%s725_s1 + $0x20] sm:$0xf]  ;;  %v465_v60 = vld [vmem:[%s725_s1 + $0x24] sm:$0xf0] }
   0xf   :  { %v412_v61 = vld [vmem:[%s725_s1 + $0xa0] sm:$0xf]  ;;  %v425_v62 = vor.u32 %v482_v54, %v422_v55  ;;  %v481_v63 = vld [vmem:[%s725_s1 + $0xa4] sm:$0xf0]  ;;  %v464_v0 = vld [vmem:[%s725_s1 + $0x24] sm:$0xf]  ;;  %v349_v4 = vor.u32 %v465_v60, %v348_v59 }
  0x10   :  { %233 = vmatpush.bf16.msra.mxu0 %v365_v44  ;;  %v350_v1 = vld [vmem:[%s725_s1 + $0x28] sm:$0xf0]  ;;  %v480_v2 = vld [vmem:[%s725_s1 + $0xa4] sm:$0xf]  ;;  %v413_v5 = vor.u32 %v481_v63, %v412_v61  ;;  %v340_v7 = vld [vmem:[%s725_s1 + $0x10] sm:$0xf] }
  0x11   :  { %247 = vmatpush.bf16.msra.mxu1 %v429_v45  ;;  %261 = vmatpush.bf16.msra.mxu2 %v369_v46  ;;  %v414_v3 = vld [vmem:[%s725_s1 + $0xa8] sm:$0xf0]  ;;  %v353_v6 = vor.u32 %v464_v0, %v350_v1  ;;  %v463_v8 = vld [vmem:[%s725_s1 + $0x14] sm:$0xf0]  ;;  %v404_v9 = vld [vmem:[%s725_s1 + $0x90] sm:$0xf] }
  0x12   :  { %275 = vmatpush.bf16.msra.mxu3 %v433_v50  ;;  %v417_v10 = vor.u32 %v480_v2, %v414_v3  ;;  %v479_v11 = vld [vmem:[%s725_s1 + $0x94] sm:$0xf0]  ;;  %v462_v12 = vld [vmem:[%s725_s1 + $0x14] sm:$0xf]  ;;  %v342_v13 = vld [vmem:[%s725_s1 + $0x18] sm:$0xf0]  ;;  %v341_v16 = vor.u32 %v463_v8, %v340_v7 }
  0x13   :  { %v478_v14 = vld [vmem:[%s725_s1 + $0x94] sm:$0xf]  ;;  %v406_v15 = vld [vmem:[%s725_s1 + $0x98] sm:$0xf0]  ;;  %v405_v17 = vor.u32 %v479_v11, %v404_v9  ;;  %v345_v18 = vor.u32 %v462_v12, %v342_v13  ;;  %v332_v19 = vld [vmem:[%s725_s1] sm:$0xf] }
  0x14   :  { %234 = vmatpush.bf16.msra.mxu0 %v357_v56  ;;  %v461_v20 = vld [vmem:[%s725_s1 + $0x4] sm:$0xf0]  ;;  %v396_v21 = vld [vmem:[%s725_s1 + $0x80] sm:$0xf]  ;;  %v409_v22 = vor.u32 %v478_v14, %v406_v15  ;;  %v460_v24 = vld [vmem:[%s725_s1 + $0x4] sm:$0xf] }
  0x15   :  { %248 = vmatpush.bf16.msra.mxu1 %v421_v57  ;;  %262 = vmatpush.bf16.msra.mxu2 %v361_v58  ;;  %v477_v23 = vld [vmem:[%s725_s1 + $0x84] sm:$0xf0]  ;;  %v334_v25 = vld [vmem:[%s725_s1 + $0x8] sm:$0xf0]  ;;  %v476_v26 = vld [vmem:[%s725_s1 + $0x84] sm:$0xf]  ;;  %v333_v28 = vor.u32 %v461_v20, %v332_v19 }
  0x16   :  { %276 = vmatpush.bf16.msra.mxu3 %v425_v62  ;;  %v398_v27 = vld [vmem:[%s725_s1 + $0x88] sm:$0xf0]  ;;  %v324_v29 = vld [vmem:[%s726_s0] sm:$0xf]  ;;  %v459_v30 = vld [vmem:[%s726_s0 + $0x4] sm:$0xf0]  ;;  %v397_v31 = vor.u32 %v477_v23, %v396_v21  ;;  %v337_v32 = vor.u32 %v460_v24, %v334_v25 }
  0x17   :  { %v458_v33 = vld [vmem:[%s726_s0 + $0x4] sm:$0xf]  ;;  %v326_v34 = vld [vmem:[%s726_s0 + $0x8] sm:$0xf0]  ;;  %v401_v35 = vor.u32 %v476_v26, %v398_v27  ;;  %v325_v36 = vor.u32 %v459_v30, %v324_v29  ;;  %v301_v38 = vld [vmem:[%s727_s2] sm:$0x3] }
  0x18   :  { %235 = vmatpush.bf16.msra.mxu0 %v349_v4  ;;  %v329_v37 = vor.u32 %v458_v33, %v326_v34  ;;  %v302_v39 = vunpack.c.l.bf16 %v301_v38 }
  0x19   :  { %249 = vmatpush.bf16.msra.mxu1 %v413_v5  ;;  %263 = vmatpush.bf16.msra.mxu2 %v353_v6 }
  0x1a   :  { %277 = vmatpush.bf16.msra.mxu3 %v417_v10  ;;  %v304_v40 = vperm.slane %v302_v39, 0  ;;  %v305_v43 = vperm.slane %v302_v39, 2 }
  0x1c   :  { %236 = vmatpush.bf16.msra.mxu0 %v341_v16  ;;  %v308_v45 = vperm.slane %v304_v40, 0  ;;  %v309_v47 = vperm.slane %v305_v43, 0 }
  0x1d   :  { %250 = vmatpush.bf16.msra.mxu1 %v405_v17  ;;  %264 = vmatpush.bf16.msra.mxu2 %v345_v18 }
  0x1e   :  { %278 = vmatpush.bf16.msra.mxu3 %v409_v22 }
  0x20   :  { %237 = vmatpush.bf16.msra.mxu0 %v333_v28 }
  0x21   :  { %251 = vmatpush.bf16.msra.mxu1 %v397_v31  ;;  %265 = vmatpush.bf16.msra.mxu2 %v337_v32 }
  0x22   :  { %279 = vmatpush.bf16.msra.mxu3 %v401_v35 }
  0x23   :  { %238 = vmatmul.bf16.vlgmr.msra.gmra.mxu0 %v325_v36 }
  0x24   :  { %252 = vmatmul.bf16.vlgmr.msra.gmra.mxu1 %v329_v37  ;;  %266 = vmatmul.bf16.vlgmr.msra.gmra.mxu2 %v325_v36 }
  0x25   :  { %280 = vmatmul.bf16.vlgmr.msra.gmra.mxu3 %v329_v37 }
  0xa0   :  { %v239_v41 = vpop.f32.mrf.mxu0 }
  0xa1   :  { %v253_v42 = vpop.f32.mrf.mxu1 }
  0xa2   :  { %v254_v44 = vadd.f32 %v253_v42, %v239_v41 }
  0xa4   :  { %v310_v49 = vadd.f32 %v308_v45, %v254_v44 }
  0xa7   :  { %v267_v46 = vpop.f32.mrf.mxu2 }
  0xa8   :  { %v281_v48 = vpop.f32.mrf.mxu3  ;;  %v241_v52 = vpop.f32.mrf.mxu0 }
  0xa9   :  { %v282_v50 = vadd.f32 %v281_v48, %v267_v46  ;;  %v255_v53 = vpop.f32.mrf.mxu1 }
  0xaa   :  { %v256_v55 = vadd.f32 %v255_v53, %v241_v52 }
  0xab   :  { %v311_v51 = vadd.f32 %v309_v47, %v282_v50 }
  0xac   :  { %v312_v59 = vadd.f32 %v308_v45, %v256_v55 }
  0xad   :  { %v314_v54 = vpack.c.bf16 %v311_v51, %v310_v49 }
  0xaf   :  { %316 = vst [vmem:[%s728_s3] sm:$0xff] %v314_v54  ;;  %v269_v56 = vpop.f32.mrf.mxu2 }
  0xb0   :  { %v283_v57 = vpop.f32.mrf.mxu3 }
  0xb1   :  { %v284_v58 = vadd.f32 %v283_v57, %v269_v56 }
  0xb3   :  { %v313_v60 = vadd.f32 %v309_v47, %v284_v58 }
  0xb5   :  { %v315_v61 = vpack.c.bf16 %v313_v60, %v312_v59 }
  0xb7   :  { %317 = vst [vmem:[%s728_s3 + $0x8] sm:$0xff] %v315_v61 }

// kernel: transformer_forward.50
= control target key start
LH: loop header
LB: loop body
LE: loop exit
PB: predicated region body
PF: predicated region fallthrough
CT: control target
= control target key end

     0   :  { %v125_v18 = vmov 256.0   ;;  %s175_s0 = inlined_call_operand.vmem [shape: bf16[16,256], index: 0, kind: input, shape index: {}]   ;;  %s176_s1 = inlined_call_operand.vmem [shape: bf16[16,256], index: 1, kind: input, shape index: {}]   ;;  %s177_s2 = inlined_call_operand.vmem [shape: f32[1,256], index: 2, kind: input, shape index: {}]   ;;  %s178_s3 = inlined_call_operand.vmem [shape: f32[1,256], index: 3, kind: input, shape index: {}]   ;;  %s179_s4 = inlined_call_operand.vmem [shape: bf16[16,256], index: 4, kind: output, shape index: {}]  }
   0x1   :  { %v17_v0 = vld [vmem:[%s175_s0] sm:$0xff]  ;;  %v18_v2 = vld [vmem:[%s175_s0 + $0x8] sm:$0xff]  ;;  %119 = vrcp.f32 %v125_v18 }
   0x2   :  { %v23_v1 = vld [vmem:[%s176_s1] sm:$0xff]  ;;  %v19_v3 = vunpack.c.l.bf16 %v17_v0  ;;  %v20_v4 = vunpack.c.h.bf16 %v17_v0  ;;  %v24_v7 = vld [vmem:[%s176_s1 + $0x8] sm:$0xff]  ;;  %v21_v8 = vunpack.c.l.bf16 %v18_v2  ;;  %v22_v9 = vunpack.c.h.bf16 %v18_v2 }
   0x3   :  { %v25_v5 = vunpack.c.l.bf16 %v23_v1  ;;  %v26_v6 = vunpack.c.h.bf16 %v23_v1  ;;  %v27_v12 = vunpack.c.l.bf16 %v24_v7  ;;  %v28_v13 = vunpack.c.h.bf16 %v24_v7  ;;  %v90_v49 = vld [vmem:[%s177_s2] sm:$0x3] }
   0x4   :  { %v100_v52 = vld [vmem:[%s178_s3] sm:$0x3]  ;;  %v92_v55 = vperm.slane %v90_v49, 0  ;;  %v93_v56 = vperm.slane %v90_v49, 1 }
   0x5   :  { %v29_v10 = vadd.f32 %v25_v5, %v19_v3  ;;  %v30_v11 = vadd.f32 %v26_v6, %v20_v4  ;;  %v31_v15 = vadd.f32 %v27_v12, %v21_v8  ;;  %v32_v16 = vadd.f32 %v28_v13, %v22_v9 }
   0x6   :  { %v102_v59 = vperm.slane %v100_v52, 0  ;;  %v103_v60 = vperm.slane %v100_v52, 1 }
   0x7   :  { %v33_v14 = vadd.f32 %v30_v11, %v29_v10  ;;  %v36_v17 = vadd.f32 %v32_v16, %v31_v15  ;;  %v120_v19 = vpop.eup %119 }
   0x8   :  { %v40_v20 = vmul.f32 256.0, %v120_v19  ;;  %vm44_vm0 = vweird.f32 %v120_v19 }
   0x9   :  { %34 = vadd.xlane.f32.xlu0 %v33_v14 }
   0xa   :  { %v41_v21 = vsub.f32 1.0, %v40_v20 }
   0xc   :  { %v42_v22 = vmul.f32 %v120_v19, %v41_v21 }
   0xe   :  { %v43_v23 = vadd.f32 %v120_v19, %v42_v22 }
  0x10   :  { %v45_v24 = vsel %vm44_vm0, %v120_v19, %v43_v23 }
  0x11   :  { %37 = vadd.xlane.f32.xlu0 %v36_v17 }
  0x7c   :  { %v35_v25 = vpop.xlane.xlu0 %34 }
  0x7d   :  { %v46_v26 = vmul.f32 %v45_v24, %v35_v25 }
  0x7f   :  { %v48_v27 = vsub.f32 %v29_v10, %v46_v26  ;;  %v49_v28 = vsub.f32 %v30_v11, %v46_v26 }
  0x81   :  { %v52_v29 = vmul.f32 %v48_v27, %v48_v27  ;;  %v53_v30 = vmul.f32 %v49_v28, %v49_v28 }
  0x83   :  { %v56_v31 = vadd.f32 %v53_v30, %v52_v29 }
  0x84   :  { %v38_v32 = vpop.xlane.xlu0 %37 }
  0x85   :  { %v47_v33 = vmul.f32 %v45_v24, %v38_v32  ;;  %57 = vadd.xlane.f32.xlu1 %v56_v31 }
  0x87   :  { %v50_v34 = vsub.f32 %v31_v15, %v47_v33  ;;  %v51_v35 = vsub.f32 %v32_v16, %v47_v33 }
  0x89   :  { %v54_v36 = vmul.f32 %v50_v34, %v50_v34  ;;  %v55_v37 = vmul.f32 %v51_v35, %v51_v35 }
  0x8b   :  { %v59_v38 = vadd.f32 %v55_v37, %v54_v36 }
  0x8d   :  { %60 = vadd.xlane.f32.xlu1 %v59_v38 }
  0xf8   :  { %v58_v39 = vpop.xlane.xlu1 %57 }
  0xf9   :  { %v62_v40 = vmul.f32 %v58_v39, %v45_v24 }
  0xfb   :  { %v64_v41 = vadd.f32 1e-05, %v62_v40 }
  0xfd   :  { %121 = vrsqrt.f32 %v64_v41  ;;  %vm72_vm2 = vweird.f32 %v64_v41 }
 0x100   :  { %v61_v42 = vpop.xlane.xlu1 %60 }
 0x101   :  { %v63_v43 = vmul.f32 %v61_v42, %v45_v24 }
 0x103   :  { %v122_v44 = vpop.eup %121  ;;  %v65_v45 = vadd.f32 1e-05, %v63_v43 }
 0x104   :  { %v67_v46 = vmul.f32 %v122_v44, %v64_v41  ;;  %vm73_vm1 = vweird.f32 %v122_v44 }
 0x105   :  { %123 = vrsqrt.f32 %v65_v45  ;;  %vm74_vm3 = vmor %vm72_vm2, %vm73_vm1  ;;  %vm82_vm5 = vweird.f32 %v65_v45 }
 0x106   :  { %v68_v47 = vmul.f32 %v122_v44, %v67_v46 }
 0x108   :  { %v69_v48 = vmul.f32 0.5, %v68_v47 }
 0x10a   :  { %v70_v50 = vsub.f32 1.5, %v69_v48 }
 0x10b   :  { %v124_v51 = vpop.eup %123 }
 0x10c   :  { %v71_v53 = vmul.f32 %v122_v44, %v70_v50  ;;  %v77_v54 = vmul.f32 %v124_v51, %v65_v45  ;;  %vm83_vm4 = vweird.f32 %v124_v51 }
 0x10d   :  { %vm84_vm6 = vmor %vm82_vm5, %vm83_vm4 }
 0x10e   :  { %v75_v57 = vsel %vm74_vm3, %v122_v44, %v71_v53  ;;  %v78_v58 = vmul.f32 %v124_v51, %v77_v54 }
 0x10f   :  { %v86_v61 = vmul.f32 %v75_v57, %v48_v27  ;;  %v87_v62 = vmul.f32 %v75_v57, %v49_v28 }
 0x110   :  { %v79_v63 = vmul.f32 0.5, %v78_v58 }
 0x111   :  { %v96_v0 = vmul.f32 %v92_v55, %v86_v61  ;;  %v97_v1 = vmul.f32 %v93_v56, %v87_v62 }
 0x112   :  { %v80_v2 = vsub.f32 1.5, %v79_v63 }
 0x113   :  { %v106_v3 = vadd.f32 %v102_v59, %v96_v0  ;;  %v107_v4 = vadd.f32 %v103_v60, %v97_v1 }
 0x114   :  { %v81_v5 = vmul.f32 %v124_v51, %v80_v2 }
 0x115   :  { %v110_v6 = vpack.c.bf16 %v107_v4, %v106_v3 }
 0x116   :  { %v85_v7 = vsel %vm84_vm6, %v124_v51, %v81_v5 }
 0x117   :  { %112 = vst [vmem:[%s179_s4] sm:$0xff] %v110_v6  ;;  %v88_v8 = vmul.f32 %v85_v7, %v50_v34  ;;  %v89_v9 = vmul.f32 %v85_v7, %v51_v35 }
 0x119   :  { %v98_v10 = vmul.f32 %v92_v55, %v88_v8  ;;  %v99_v11 = vmul.f32 %v93_v56, %v89_v9 }
 0x11b   :  { %v108_v12 = vadd.f32 %v102_v59, %v98_v10  ;;  %v109_v13 = vadd.f32 %v103_v60, %v99_v11 }
 0x11d   :  { %v111_v14 = vpack.c.bf16 %v109_v13, %v108_v12 }
 0x11f   :  { %113 = vst [vmem:[%s179_s4 + $0x8] sm:$0xff] %v111_v14 }

// kernel: transformer_forward.48
= control target key start
LH: loop header
LB: loop body
LE: loop exit
PB: predicated region body
PF: predicated region fallthrough
CT: control target
= control target key end

     0   :  { %s635_s15 = smov 0   ;;  %s637_s16 = smov 0   ;;  %s711_s0 = inlined_call_operand.vmem [shape: bf16[2,8,768], index: 0, kind: input, shape index: {}, may-alias: {0,1,2}]   ;;  %s712_s1 = inlined_call_operand.vmem [shape: bf16[2,8,768], index: 1, kind: input, shape index: {}, may-alias: {0,1,2}]   ;;  %s713_s2 = inlined_call_operand.vmem [shape: bf16[2,8,768], index: 2, kind: input, shape index: {}, may-alias: {0,1,2}]   ;;  %s714_s3 = inlined_call_operand.vmem [shape: f32[2,8,8], index: 3, kind: input, shape index: {}]   ;;  %s715_s4 = inlined_call_operand.vmem [shape: bf16[2,8,256], index: 4, kind: output, shape index: {}]  }
   0x1   :  { %s639_s17 = smov 0   ;;  %s641_s18 = smov 0  }
   0x2   :  { %s643_s19 = smov 0  }
   0x3 LB: > { %s23_s20 = sadd.s32 1, %s600_s17  ;;  %s26_s21 = sadd.s32 1, %s604_s18  ;;  %s608_s19 = sphi %s643_s19, %s14_s19   ;;  %s604_s18 = sphi %s641_s18, %s719_s18   ;;  %s600_s17 = sphi %s639_s17, %s718_s17   ;;  %s596_s16 = sphi %s637_s16, %s717_s16   ;;  %s592_s15 = sphi %s635_s15, %s716_s15  }
   0x4   : > { %p24_p0 = scmp.ge.s32.totalorder %s23_s20, 2  ;;  %p515_p1 = scmp.ge.s32.totalorder %s608_s19, 1 }
   0x5   : > { %p228_p2 = scmp.lt.s32.totalorder %s608_s19, 5 }
   0x6   : > { %s721_s20 = smov (%p24_p0, %s23_s20), 0  ;;  %s723_s21 = smov (!%p24_p0, %s26_s21), %s604_s18 }
   0x7   : > { %p229_p3 = pnand %p515_p1, %p228_p2  ;;  %p28_p4 = scmp.ge.s32.totalorder %s723_s21, 2 }
   0x8   : > { %p282_p5 = scmp.lt.s32.totalorder (!%p229_p3), %s596_s16, 1  ;;  %s290_s22 = sadd.s32 (!%p229_p3), 2, %s592_s15 }
   0x9   : > { %s725_s21 = smov (%p28_p4, %s723_s21), 0  ;;  %232 = sbr.rel (%p229_p3) target bundleno = 422 (0x1a6), region = 36 }
   0xa   : > { %p293_p6 = scmp.lt.s32.totalorder (!%p229_p3), %s290_s22, 5  ;;  %p284_p7 = scmp.lt.s32.totalorder (!%p229_p3), %s592_s15, 5 }
   0xb   : > { %s300_s13 = sadd.s32 (!%p229_p3), 4, %s592_s15  ;;  %p316_p9 = scmp.lt.s32.totalorder (!%p229_p3), %s592_s15, 1 }
   0xc   : > { %p303_p8 = scmp.lt.s32.totalorder (!%p229_p3), %s300_s13, 5 }
   0xe   : > { %s727_s16 = smov (!%p282_p5, %s596_s16), 1  ;;  %s729_s22 = smov (!%p293_p6, %s290_s22), 5  ;;  %vm342_vm0 = vcmask 64512   ;;  %vm356_vm1 = vcmask 1043456  }
   0xf   : > { %s525_s23 = smul.u32 6, %s727_s16  ;;  %s519_s9 = sshll.u32 %s727_s16, 3 }
  0x10   : > { %s285_s24 = scalar_select %p284_p7, %s592_s15, 5 }
  0x11   : > { %s296_s25 = sadd.s32 %s525_s23, %s729_s22  ;;  %s313_s12 = scalar_lea.vmem %s714_s3, %s519_s9 }
  0x12   : > { %s517_s26 = sshll.u32 %s296_s25, 2  ;;  %s287_s27 = sadd.s32 %s525_s23, %s285_s24  ;;  %v326_v3 = vld [vmem:[%s313_s12] sm:$0xff] }
  0x13   : > { %s298_s30 = scalar_lea.vmem %s712_s1, %s517_s26  ;;  %s516_s5 = sshll.u32 %s287_s27, 2 }
  0x14   : > { %v324_v0 = vld [vmem:[%s298_s30] sm:$0xf]  ;;  %s289_s8 = scalar_lea.vmem %s711_s0, %s516_s5  ;;  %s731_s13 = smov (!%p303_p8, %s300_s13), 5 }
  0x15   : > { %334 = vmatpush.bf16.xpose.msra.mxu0 %v324_v0  ;;  %v323_v1 = vld [vmem:[%s289_s8] sm:$0xf]  ;;  %s306_s14 = sadd.s32 %s525_s23, %s731_s13  ;;  %s733_s15 = smov (!%p316_p9, %s592_s15), 1 }
  0x16   : > { %s518_s22 = sshll.u32 %s306_s14, 2  ;;  %s520_s23 = sshll.u32 %s727_s16, 1 }
  0x17   : > { %s308_s26 = scalar_lea.vmem %s713_s2, %s518_s22  ;;  %s319_s27 = sadd.s32 %s520_s23, %s733_s15 }
  0x18   : > { %v325_v8 = vld [vmem:[%s308_s26] sm:$0xf]  ;;  %s521_s28 = sshll.u32 %s319_s27, 2 }
  0x19   : > { %v358_v9 = vsel %vm356_vm1, %v325_v8, 0  ;;  %s321_s5 = scalar_lea.vmem %s715_s4, %s521_s28 }
  0x1a   : > { %367 = vmatpush.bf16.msra.mxu1 %v358_v9 }
  0x1c   : > { %335 = vmatmul.bf16.vlgmr.msra.gmra.mxu0 %v323_v1 }
  0x99   : > { %v336_v2 = vpop.f32.mrf.mxu0 }
  0x9a   : > { %v340_v4 = vmul.f32 0.088388346, %v336_v2 }
  0x9c   : > { %v341_v5 = vadd.f32 %v340_v4, %v326_v3 }
  0x9e   : > { %v343_v6 = vsel %vm342_vm0, %v341_v5, -inf }
  0x9f   : > { %344 = vmax.xlane.f32.xlu0 %v343_v6 }
  0xa1   : > { %v338_v7 = vpop.f32.mrf.mxu0 }
 0x112   : > { %v345_v10 = vpop.xlane.xlu0 %344 }
 0x113   : > { %v346_v11 = vsub.f32 %v341_v5, %v345_v10 }
 0x115   : > { %v347_v12 = vmul.f32 1.442695, %v346_v11 }
 0x117   : > { %566 = vpow2.f32 %v347_v12 }
 0x11d   : > { %v567_v13 = vpop.eup %566 }
 0x11e   : > { %v349_v14 = vsel %vm342_vm0, %v567_v13, 0.0  ;;  %v352_v15 = vpack.c.bf16 %v567_v13, %v567_v13 }
 0x11f   : > { %350 = vadd.xlane.f32.xlu0 %v349_v14 }
 0x120   : > { %522 = vmatmul.msk.bf16.vlgmr.msra.gmra.mxu1 %vm342_vm0, %v352_v15 }
 0x192   : > { %v351_v16 = vpop.xlane.xlu0 %350 }
 0x193   : > { %568 = vrcp.f32 %v351_v16 }
 0x199   : > { %v569_v17 = vpop.eup %568 }
 0x19d   : > { %v369_v18 = vpop.f32.mrf.mxu1 }
 0x19e   : > { %v374_v19 = vmul.f32 %v569_v17, %v369_v18 }
 0x1a0   : > { %v375_v20 = vpack.c.bf16 %v374_v19, %v374_v19 }
 0x1a2   : > { %376 = vst [vmem:[%s321_s5] sm:$0xf] %v375_v20 }
 0x1a5   : > { %v371_v21 = vpop.f32.mrf.mxu1 }
 0x1a6 PF: > { %s14_s19 = sadd.s32 1, %s608_s19   ;;  %s716_s15 = smov %s600_s17 }
 0x1a7   : > { %p11_p10 = scmp.ge.s32.totalorder %s14_s19, 6   ;;  %s717_s16 = smov %s604_s18 }
 0x1a8   : > { %s718_s17 = smov %s721_s20  ;;  %s719_s18 = smov %s725_s21 }
 0x1a9   :  { %13 = sbr.rel (!%p11_p10) target bundleno = 3 (0x3), region = 75 }

// kernel: transformer_forward.53
= control target key start
LH: loop header
LB: loop body
LE: loop exit
PB: predicated region body
PF: predicated region fallthrough
CT: control target
= control target key end

     0   :  { %s630_s15 = smov 0   ;;  %s632_s16 = smov 0   ;;  %s712_s0 = inlined_call_operand.vmem [shape: bf16[2,8,256], index: 0, kind: input, shape index: {}]   ;;  %s713_s1 = inlined_call_operand.vmem [shape: bf16[2,8,512], index: 1, kind: input, shape index: {}, may-alias: {1,2}]   ;;  %s714_s2 = inlined_call_operand.vmem [shape: bf16[2,8,512], index: 2, kind: input, shape index: {}, may-alias: {1,2}]   ;;  %s715_s3 = inlined_call_operand.vmem [shape: f32[2,8,8], index: 3, kind: input, shape index: {}]   ;;  %s716_s4 = inlined_call_operand.vmem [shape: bf16[2,8,256], index: 4, kind: output, shape index: {}]  }
   0x1   :  { %s634_s17 = smov 0   ;;  %s636_s18 = smov 0  }
   0x2   :  { %s638_s19 = smov 0  }
   0x3 LB: > { %s23_s20 = sadd.s32 1, %s595_s17  ;;  %s26_s21 = sadd.s32 1, %s599_s18  ;;  %s603_s19 = sphi %s638_s19, %s14_s19   ;;  %s599_s18 = sphi %s636_s18, %s720_s18   ;;  %s595_s17 = sphi %s634_s17, %s719_s17   ;;  %s591_s16 = sphi %s632_s16, %s718_s16   ;;  %s587_s15 = sphi %s630_s15, %s717_s15  }
   0x4   : > { %p24_p0 = scmp.ge.s32.totalorder %s23_s20, 2  ;;  %p508_p1 = scmp.ge.s32.totalorder %s603_s19, 1 }
   0x5   : > { %p224_p2 = scmp.lt.s32.totalorder %s603_s19, 5 }
   0x6   : > { %s722_s20 = smov (%p24_p0, %s23_s20), 0  ;;  %s724_s21 = smov (!%p24_p0, %s26_s21), %s599_s18 }
   0x7   : > { %p225_p3 = pnand %p508_p1, %p224_p2  ;;  %p28_p4 = scmp.ge.s32.totalorder %s724_s21, 2 }
   0x8   : > { %p277_p5 = scmp.lt.s32.totalorder (!%p225_p3), %s591_s16, 1  ;;  %p287_p6 = scmp.lt.s32.totalorder (!%p225_p3), %s587_s15, 3 }
   0x9   : > { %s726_s21 = smov (%p28_p4, %s724_s21), 0  ;;  %228 = sbr.rel (%p225_p3) target bundleno = 422 (0x1a6), region = 36 }
   0xa   : > { %p279_p7 = scmp.lt.s32.totalorder (!%p225_p3), %s587_s15, 1  ;;  %s293_s14 = sadd.s32 (!%p225_p3), 2, %s587_s15 }
   0xb   : > { %p296_p8 = scmp.lt.s32.totalorder (!%p225_p3), %s293_s14, 3 }
   0xe   : > { %s728_s16 = smov (!%p277_p5, %s591_s16), 1  ;;  %vm335_vm0 = vcmask 64512   ;;  %s730_s14 = smov (!%p296_p8, %s293_s14), 3  ;;  %vm349_vm1 = vcmask 1043456  }
   0xf   : > { %s288_s22 = scalar_select %p287_p6, %s587_s15, 3 }
  0x10   : > { %s511_s23 = sshll.u32 %s728_s16, 2  ;;  %s509_s29 = sshll.u32 %s728_s16, 1 }
  0x11   : > { %s290_s24 = sadd.s32 %s511_s23, %s288_s22  ;;  %s515_s10 = sshll.u32 %s728_s16, 3 }
  0x12   : > { %s512_s25 = sshll.u32 %s290_s24, 2  ;;  %s306_s13 = scalar_lea.vmem %s715_s3, %s515_s10 }
  0x13   : > { %s292_s28 = scalar_lea.vmem %s713_s1, %s512_s25  ;;  %v319_v3 = vld [vmem:[%s306_s13] sm:$0xff]  ;;  %s299_s22 = sadd.s32 %s511_s23, %s730_s14 }
  0x14   : > { %v317_v0 = vld [vmem:[%s292_s28] sm:$0xf]  ;;  %s280_s30 = scalar_select %p279_p7, %s587_s15, 1 }
  0x15   : > { %327 = vmatpush.bf16.xpose.msra.mxu0 %v317_v0  ;;  %s514_s24 = sshll.u32 %s299_s22, 2 }
  0x16   : > { %s673_s5 = sadd.s32 %s509_s29, %s280_s30  ;;  %s301_s26 = scalar_lea.vmem %s714_s2, %s514_s24 }
  0x17   : > { %s510_s6 = sshll.u32 %s673_s5, 2  ;;  %v318_v8 = vld [vmem:[%s301_s26] sm:$0xf] }
  0x18   : > { %s284_s9 = scalar_lea.vmem %s712_s0, %s510_s6  ;;  %v351_v9 = vsel %vm349_vm1, %v318_v8, 0  ;;  %s314_s27 = scalar_lea.vmem %s716_s4, %s510_s6 }
  0x19   : > { %v316_v1 = vld [vmem:[%s284_s9] sm:$0xf]  ;;  %360 = vmatpush.bf16.msra.mxu1 %v351_v9 }
  0x1c   : > { %328 = vmatmul.bf16.vlgmr.msra.gmra.mxu0 %v316_v1 }
  0x99   : > { %v329_v2 = vpop.f32.mrf.mxu0 }
  0x9a   : > { %v333_v4 = vmul.f32 0.088388346, %v329_v2 }
  0x9c   : > { %v334_v5 = vadd.f32 %v333_v4, %v319_v3 }
  0x9e   : > { %v336_v6 = vsel %vm335_vm0, %v334_v5, -inf }
  0x9f   : > { %337 = vmax.xlane.f32.xlu0 %v336_v6 }
  0xa1   : > { %v331_v7 = vpop.f32.mrf.mxu0 }
 0x112   : > { %v338_v10 = vpop.xlane.xlu0 %337 }
 0x113   : > { %v339_v11 = vsub.f32 %v334_v5, %v338_v10 }
 0x115   : > { %v340_v12 = vmul.f32 1.442695, %v339_v11 }
 0x117   : > { %561 = vpow2.f32 %v340_v12 }
 0x11d   : > { %v562_v13 = vpop.eup %561 }
 0x11e   : > { %v342_v14 = vsel %vm335_vm0, %v562_v13, 0.0  ;;  %v345_v15 = vpack.c.bf16 %v562_v13, %v562_v13 }
 0x11f   : > { %343 = vadd.xlane.f32.xlu0 %v342_v14 }
 0x120   : > { %518 = vmatmul.msk.bf16.vlgmr.msra.gmra.mxu1 %vm335_vm0, %v345_v15 }
 0x192   : > { %v344_v16 = vpop.xlane.xlu0 %343 }
 0x193   : > { %563 = vrcp.f32 %v344_v16 }
 0x199   : > { %v564_v17 = vpop.eup %563 }
 0x19d   : > { %v362_v18 = vpop.f32.mrf.mxu1 }
 0x19e   : > { %v367_v19 = vmul.f32 %v564_v17, %v362_v18 }
 0x1a0   : > { %v368_v20 = vpack.c.bf16 %v367_v19, %v367_v19 }
 0x1a2   : > { %369 = vst [vmem:[%s314_s27] sm:$0xf] %v368_v20 }
 0x1a5   : > { %v364_v21 = vpop.f32.mrf.mxu1 }
 0x1a6 PF: > { %s14_s19 = sadd.s32 1, %s603_s19   ;;  %s717_s15 = smov %s595_s17 }
 0x1a7   : > { %p11_p9 = scmp.ge.s32.totalorder %s14_s19, 6   ;;  %s718_s16 = smov %s599_s18 }
 0x1a8   : > { %s719_s17 = smov %s722_s20  ;;  %s720_s18 = smov %s726_s21 }
 0x1a9   :  { %13 = sbr.rel (!%p11_p9) target bundleno = 3 (0x3), region = 75 }

// kernel: transformer_forward.52
= control target key start
LH: loop header
LB: loop body
LE: loop exit
PB: predicated region body
PF: predicated region fallthrough
CT: control target
= control target key end

     0   :  { %8 = vsyncpa [#allocation4], 0  ;;  %s1272_s0 = inlined_call_operand.vmem [shape: bf16[16,256], index: 0, kind: input, shape index: {}]   ;;  %s1273_s1 = inlined_call_operand.hbm [shape: bf16[256,512], index: 1, kind: input, shape index: {}]   ;;  %s1274_s2 = inlined_call_operand.vmem [shape: bf16[1,512], index: 2, kind: input, shape index: {}]   ;;  %s1275_s3 = inlined_call_operand.vmem [shape: bf16[16,512], index: 3, kind: output, shape index: {}]  }
   0x1   :  { %10 = vsyncpa [#allocation4 + $0x1], 0  ;;  %s1092_s12 = smov 0   ;;  %s1094_s13 = smov 0  }
   0x2   :  { %s1096_s14 = smov 0   ;;  %s1098_s15 = smov 0  }
   0x3   :  { %s1100_s16 = smov 0   ;;  %s1102_s17 = smov 0  }
   0x4 LB: > { %s740_s18 = sadd.s32 4294967295, %s1067_s17   ;;  %s31_s19 = sadd.s32 1, %s1063_s16  ;;  %s1067_s17 = sphi %s1102_s17, %s16_s17   ;;  %s1063_s16 = sphi %s1100_s16, %s1283_s16   ;;  %s1059_s15 = sphi %s1098_s15, %s1282_s15   ;;  %s1055_s14 = sphi %s1096_s14, %s1281_s14   ;;  %s1051_s13 = sphi %s1094_s13, %s1280_s13   ;;  %s1047_s12 = sphi %s1092_s12, %s1279_s12  }
   0x5   : > { %p33_p0 = scmp.ge.s32.totalorder %s31_s19, 2  ;;  %s72_s20 = sadd.s32 1, %s1055_s14 }
   0x6   : > { %p79_p1 = scmp.ne.s32.totalorder %s1055_s14, %s1051_s13  ;;  %p80_p2 = scmp.eq.s32.totalorder %s1067_s17, 0 }
   0x7   : > { %s1285_s19 = smov (%p33_p0, %s31_s19), 0  ;;  %p85_p4 = scmp.ne.s32.totalorder %s1051_s13, %s1047_s12 }
   0x8   : > { %p1128_p3 = por %p80_p2, %p79_p1  ;;  %s68_s22 = ssub.s32 %s1063_s16, %s1285_s19 }
   0x9   : > { %p86_p5 = scmp.eq.s32.totalorder %s740_s18, 0  ;;  %p70_p6 = scmp.eq.s32.totalorder %s68_s22, 0 }
   0xa   : > { %p137_p7 = scmp.eq.s32.totalorder %s740_s18, 1  ;;  %p935_p10 = scmp.lt.s32.totalorder %s1067_s17, 2 }
   0xb   : > { %p1135_p8 = por %p86_p5, %p85_p4  ;;  %s178_s26 = sand.u32 1, %s1055_s14  }
   0xc   : > { %s1140_s24 = scalar_select %p70_p6, %s1055_s14, %s72_s20  }
   0xd   : > { %p1142_p9 = por %p137_p7, %p79_p1  ;;  %s893_s27 = sshll.u32 %s1063_s16, 3 }
   0xe   : > { %s745_s28 = sshll.u32 %s178_s26, 8  ;;  %s190_s4 = scalar_lea.hbm %s1273_s1, %s893_s27 }
   0xf   : > { %s191_s5 = sshll.u32 %s190_s4, 4  ;;  %s182_s6 = scalar_lea.vmem [#allocation3], %s745_s28  ;;  %s192_s5 = int_to_ptr.hbm [resolvable:$true] %s191_s5 }
  0x10   : > { %s193_s7 = sshll.u32 %s182_s6, 4  ;;  %p932_p11 = pnand %p935_p10, %p1128_p3  ;;  %s194_s7 = int_to_ptr.vmem [resolvable:$true] %s193_s7 }
  0x11   : > { %p748_p12 = scmp.ge.s32.totalorder %s1067_s17, 1  ;;  %s179_s8 = scalar_lea.sflag [#allocation4], %s178_s26 }
  0x12   : > { %s1069_s9 = smov 256   ;;  %s1070_s10 = smov 128  }
  0x13   : > { %s1071_s11 = smov 8   ;;  %p209_p13 = scmp.lt.s32.totalorder %s1067_s17, 3 }
  0x14   : > { %934 = dma.hbm_to_vmem [thread:$0]  (!%p932_p11), %s192_s5, 4096, %s194_s7, %s179_s8, %s1069_s9, %s1070_s10, %s1071_s11  }
  0x15   : > { %p210_p0 = pnand %p748_p12, %p209_p13 }
  0x16   : > { %s1157_s12 = sand.u32 (!%p210_p0), 1, %s1051_s13  }
  0x17   : > { %213 = sbr.rel (%p210_p0) target bundleno = 221 (0xdd), region = 32  ;;  %s749_s18 = sshll.u32 (!%p210_p0), %s1157_s12, 8 }
  0x18   : > { %s216_s20 = scalar_lea.sflag (!%p210_p0), [#allocation4], %s1157_s12  ;;  %s1161_s22 = scalar_lea.vmem (!%p210_p0), [#allocation3], %s749_s18 }
  0x1c   : > { %1042 = dma.done.wait (%p1135_p8), %s216_s20, 4096  }
  0x1d   : > { %1044 = vsyncadd (%p1135_p8), %s216_s20, 4294963200  ;;  %v818_v0 = vld [vmem:[%s1161_s22 + $0x70] sm:$0xf]  ;;  %v911_v1 = vld [vmem:[%s1161_s22 + $0x74] sm:$0xf0]  ;;  %s751_s5 = sshll.u32 %s1059_s15, 1 }
  0x1e   : > { %v882_v2 = vld [vmem:[%s1161_s22 + $0xf0] sm:$0xf]  ;;  %v819_v3 = vor.u32 %v911_v1, %v818_v0  ;;  %v927_v4 = vld [vmem:[%s1161_s22 + $0xf4] sm:$0xf0]  ;;  %v910_v5 = vld [vmem:[%s1161_s22 + $0x74] sm:$0xf] }
  0x1f   : > { %v820_v6 = vld [vmem:[%s1161_s22 + $0x78] sm:$0xf0]  ;;  %v883_v7 = vor.u32 %v927_v4, %v882_v2  ;;  %v926_v9 = vld [vmem:[%s1161_s22 + $0xf4] sm:$0xf]  ;;  %v810_v11 = vld [vmem:[%s1161_s22 + $0x60] sm:$0xf] }
  0x20   : > { %v823_v8 = vor.u32 %v910_v5, %v820_v6  ;;  %v884_v10 = vld [vmem:[%s1161_s22 + $0xf8] sm:$0xf0]  ;;  %493 = vmatpush.bf16.msra.mxu0 %v819_v3  ;;  %v909_v13 = vld [vmem:[%s1161_s22 + $0x64] sm:$0xf0]  ;;  %v874_v14 = vld [vmem:[%s1161_s22 + $0xe0] sm:$0xf] }
  0x21   : > { %v887_v12 = vor.u32 %v926_v9, %v884_v10  ;;  %v925_v15 = vld [vmem:[%s1161_s22 + $0xe4] sm:$0xf0]  ;;  %507 = vmatpush.bf16.msra.mxu1 %v883_v7  ;;  %v811_v16 = vor.u32 %v909_v13, %v810_v11  ;;  %v908_v18 = vld [vmem:[%s1161_s22 + $0x64] sm:$0xf]  ;;  %v812_v19 = vld [vmem:[%s1161_s22 + $0x68] sm:$0xf0] }
  0x22   : > { %521 = vmatpush.bf16.msra.mxu2 %v823_v8  ;;  %v875_v17 = vor.u32 %v925_v15, %v874_v14  ;;  %v924_v20 = vld [vmem:[%s1161_s22 + $0xe4] sm:$0xf]  ;;  %v815_v21 = vor.u32 %v908_v18, %v812_v19  ;;  %v876_v22 = vld [vmem:[%s1161_s22 + $0xe8] sm:$0xf0]  ;;  %v802_v23 = vld [vmem:[%s1161_s22 + $0x50] sm:$0xf] }
  0x23   : > { %535 = vmatpush.bf16.msra.mxu3 %v887_v12  ;;  %v907_v24 = vld [vmem:[%s1161_s22 + $0x54] sm:$0xf0]  ;;  %v879_v25 = vor.u32 %v924_v20, %v876_v22  ;;  %v866_v26 = vld [vmem:[%s1161_s22 + $0xd0] sm:$0xf]  ;;  %v906_v28 = vld [vmem:[%s1161_s22 + $0x54] sm:$0xf] }
  0x24   : > { %v923_v27 = vld [vmem:[%s1161_s22 + $0xd4] sm:$0xf0]  ;;  %494 = vmatpush.bf16.msra.mxu0 %v811_v16  ;;  %v803_v29 = vor.u32 %v907_v24, %v802_v23  ;;  %v804_v30 = vld [vmem:[%s1161_s22 + $0x58] sm:$0xf0]  ;;  %v922_v31 = vld [vmem:[%s1161_s22 + $0xd4] sm:$0xf] }
  0x25   : > { %v868_v32 = vld [vmem:[%s1161_s22 + $0xd8] sm:$0xf0]  ;;  %508 = vmatpush.bf16.msra.mxu1 %v875_v17  ;;  %v867_v33 = vor.u32 %v923_v27, %v866_v26  ;;  %v807_v34 = vor.u32 %v906_v28, %v804_v30  ;;  %v794_v35 = vld [vmem:[%s1161_s22 + $0x40] sm:$0xf]  ;;  %v905_v36 = vld [vmem:[%s1161_s22 + $0x44] sm:$0xf0] }
  0x26   : > { %522 = vmatpush.bf16.msra.mxu2 %v815_v21  ;;  %v858_v37 = vld [vmem:[%s1161_s22 + $0xc0] sm:$0xf]  ;;  %v871_v38 = vor.u32 %v922_v31, %v868_v32  ;;  %v921_v39 = vld [vmem:[%s1161_s22 + $0xc4] sm:$0xf0]  ;;  %v904_v40 = vld [vmem:[%s1161_s22 + $0x44] sm:$0xf]  ;;  %v795_v44 = vor.u32 %v905_v36, %v794_v35 }
  0x27   : > { %536 = vmatpush.bf16.msra.mxu3 %v879_v25  ;;  %v796_v41 = vld [vmem:[%s1161_s22 + $0x48] sm:$0xf0]  ;;  %v920_v42 = vld [vmem:[%s1161_s22 + $0xc4] sm:$0xf]  ;;  %v859_v45 = vor.u32 %v921_v39, %v858_v37  ;;  %v786_v47 = vld [vmem:[%s1161_s22 + $0x30] sm:$0xf] }
  0x28   : > { %v860_v43 = vld [vmem:[%s1161_s22 + $0xc8] sm:$0xf0]  ;;  %495 = vmatpush.bf16.msra.mxu0 %v803_v29  ;;  %v799_v46 = vor.u32 %v904_v40, %v796_v41  ;;  %v903_v48 = vld [vmem:[%s1161_s22 + $0x34] sm:$0xf0]  ;;  %v850_v49 = vld [vmem:[%s1161_s22 + $0xb0] sm:$0xf] }
  0x29   : > { %509 = vmatpush.bf16.msra.mxu1 %v867_v33  ;;  %v863_v50 = vor.u32 %v920_v42, %v860_v43  ;;  %v919_v51 = vld [vmem:[%s1161_s22 + $0xb4] sm:$0xf0]  ;;  %v902_v52 = vld [vmem:[%s1161_s22 + $0x34] sm:$0xf]  ;;  %v788_v53 = vld [vmem:[%s1161_s22 + $0x38] sm:$0xf0]  ;;  %v787_v56 = vor.u32 %v903_v48, %v786_v47 }
  0x2a   : > { %523 = vmatpush.bf16.msra.mxu2 %v807_v34  ;;  %v918_v54 = vld [vmem:[%s1161_s22 + $0xb4] sm:$0xf]  ;;  %v852_v55 = vld [vmem:[%s1161_s22 + $0xb8] sm:$0xf0]  ;;  %v851_v57 = vor.u32 %v919_v51, %v850_v49  ;;  %v791_v58 = vor.u32 %v902_v52, %v788_v53  ;;  %v778_v59 = vld [vmem:[%s1161_s22 + $0x20] sm:$0xf] }
  0x2b   : > { %537 = vmatpush.bf16.msra.mxu3 %v871_v38  ;;  %v901_v60 = vld [vmem:[%s1161_s22 + $0x24] sm:$0xf0]  ;;  %v842_v61 = vld [vmem:[%s1161_s22 + $0xa0] sm:$0xf]  ;;  %v855_v62 = vor.u32 %v918_v54, %v852_v55  ;;  %v900_v0 = vld [vmem:[%s1161_s22 + $0x24] sm:$0xf] }
  0x2c   : > { %496 = vmatpush.bf16.msra.mxu0 %v795_v44  ;;  %v917_v63 = vld [vmem:[%s1161_s22 + $0xa4] sm:$0xf0]  ;;  %v780_v1 = vld [vmem:[%s1161_s22 + $0x28] sm:$0xf0]  ;;  %v916_v2 = vld [vmem:[%s1161_s22 + $0xa4] sm:$0xf]  ;;  %v779_v4 = vor.u32 %v901_v60, %v778_v59 }
  0x2d   : > { %510 = vmatpush.bf16.msra.mxu1 %v859_v45  ;;  %v844_v3 = vld [vmem:[%s1161_s22 + $0xa8] sm:$0xf0]  ;;  %v843_v5 = vor.u32 %v917_v63, %v842_v61  ;;  %v783_v6 = vor.u32 %v900_v0, %v780_v1  ;;  %v770_v7 = vld [vmem:[%s1161_s22 + $0x10] sm:$0xf]  ;;  %v899_v8 = vld [vmem:[%s1161_s22 + $0x14] sm:$0xf0] }
  0x2e   : > { %524 = vmatpush.bf16.msra.mxu2 %v799_v46  ;;  %v834_v9 = vld [vmem:[%s1161_s22 + $0x90] sm:$0xf]  ;;  %v847_v10 = vor.u32 %v916_v2, %v844_v3  ;;  %v915_v11 = vld [vmem:[%s1161_s22 + $0x94] sm:$0xf0]  ;;  %v898_v12 = vld [vmem:[%s1161_s22 + $0x14] sm:$0xf]  ;;  %v771_v16 = vor.u32 %v899_v8, %v770_v7 }
  0x2f   : > { %538 = vmatpush.bf16.msra.mxu3 %v863_v50  ;;  %v772_v13 = vld [vmem:[%s1161_s22 + $0x18] sm:$0xf0]  ;;  %v914_v14 = vld [vmem:[%s1161_s22 + $0x94] sm:$0xf]  ;;  %v835_v17 = vor.u32 %v915_v11, %v834_v9  ;;  %v762_v19 = vld [vmem:[%s1161_s22] sm:$0xf] }
  0x30   : > { %497 = vmatpush.bf16.msra.mxu0 %v787_v56  ;;  %v836_v15 = vld [vmem:[%s1161_s22 + $0x98] sm:$0xf0]  ;;  %v775_v18 = vor.u32 %v898_v12, %v772_v13  ;;  %v897_v20 = vld [vmem:[%s1161_s22 + $0x4] sm:$0xf0]  ;;  %v826_v21 = vld [vmem:[%s1161_s22 + $0x80] sm:$0xf] }
  0x31   : > { %511 = vmatpush.bf16.msra.mxu1 %v851_v57  ;;  %v839_v22 = vor.u32 %v914_v14, %v836_v15  ;;  %v913_v23 = vld [vmem:[%s1161_s22 + $0x84] sm:$0xf0]  ;;  %v896_v24 = vld [vmem:[%s1161_s22 + $0x4] sm:$0xf]  ;;  %v764_v25 = vld [vmem:[%s1161_s22 + $0x8] sm:$0xf0]  ;;  %v763_v28 = vor.u32 %v897_v20, %v762_v19 }
  0x32   : > { %525 = vmatpush.bf16.msra.mxu2 %v791_v58  ;;  %v912_v26 = vld [vmem:[%s1161_s22 + $0x84] sm:$0xf]  ;;  %v828_v27 = vld [vmem:[%s1161_s22 + $0x88] sm:$0xf0]  ;;  %v754_v29 = vld [vmem:[%s1272_s0] sm:$0xf]  ;;  %v827_v31 = vor.u32 %v913_v23, %v826_v21  ;;  %v767_v32 = vor.u32 %v896_v24, %v764_v25 }
  0x33   : > { %539 = vmatpush.bf16.msra.mxu3 %v855_v62  ;;  %v895_v30 = vld [vmem:[%s1272_s0 + $0x4] sm:$0xf0]  ;;  %v894_v33 = vld [vmem:[%s1272_s0 + $0x4] sm:$0xf]  ;;  %v756_v34 = vld [vmem:[%s1272_s0 + $0x8] sm:$0xf0]  ;;  %v831_v35 = vor.u32 %v912_v26, %v828_v27 }
  0x34   : > { %498 = vmatpush.bf16.msra.mxu0 %v779_v4  ;;  %v755_v36 = vor.u32 %v895_v30, %v754_v29  ;;  %v759_v37 = vor.u32 %v894_v33, %v756_v34  ;;  %p271_p1 = scmp.lt.s32.totalorder %s751_s5, 3  ;;  %s750_s9 = sshll.u32 %s1157_s12, 4 }
  0x35   : > { %512 = vmatpush.bf16.msra.mxu1 %v843_v5  ;;  %s255_s10 = scalar_lea.vmem [#allocation5], %s750_s9  ;;  %s928_s11 = sshll.u32 (%p1142_p9), %s1059_s15, 3 }
  0x36   : > { %526 = vmatpush.bf16.msra.mxu2 %v783_v6  ;;  %s1287_s5 = smov (!%p271_p1, %s751_s5), 3  ;;  %s593_s20 = scalar_lea.vmem (%p1142_p9), %s1275_s3, %s928_s11 }
  0x37   : > { %540 = vmatpush.bf16.msra.mxu3 %v847_v10  ;;  %s273_s8 = scalar_lea.vmem %s1274_s2, %s1287_s5 }
  0x38   : > { %499 = vmatpush.bf16.msra.mxu0 %v771_v16  ;;  %v564_v38 = vld [vmem:[%s273_s8] sm:$0x3] }
  0x39   : > { %513 = vmatpush.bf16.msra.mxu1 %v835_v17  ;;  %v565_v39 = vunpack.c.l.bf16 %v564_v38 }
  0x3a   : > { %527 = vmatpush.bf16.msra.mxu2 %v775_v18 }
  0x3b   : > { %541 = vmatpush.bf16.msra.mxu3 %v839_v22  ;;  %v567_v40 = vperm.slane %v565_v39, 0  ;;  %v568_v43 = vperm.slane %v565_v39, 2 }
  0x3c   : > { %500 = vmatpush.bf16.msra.mxu0 %v763_v28 }
  0x3d   : > { %514 = vmatpush.bf16.msra.mxu1 %v827_v31  ;;  %v571_v45 = vperm.slane %v567_v40, 0  ;;  %v572_v47 = vperm.slane %v568_v43, 0 }
  0x3e   : > { %528 = vmatpush.bf16.msra.mxu2 %v767_v32 }
  0x3f   : > { %542 = vmatpush.bf16.msra.mxu3 %v831_v35  ;;  %501 = vmatmul.bf16.vlgmr.msra.gmra.mxu0 %v755_v36 }
  0x40   : > { %515 = vmatmul.bf16.vlgmr.msra.gmra.mxu1 %v759_v37 }
  0x41   : > { %529 = vmatmul.bf16.vlgmr.msra.gmra.mxu2 %v755_v36 }
  0x42   : > { %543 = vmatmul.bf16.vlgmr.msra.gmra.mxu3 %v759_v37 }
  0xbc   : > { %v502_v41 = vpop.f32.mrf.mxu0 }
  0xbd   : > { %v516_v42 = vpop.f32.mrf.mxu1 }
  0xbe   : > { %v517_v44 = vadd.f32 %v516_v42, %v502_v41 }
  0xc0   : > { %v573_v49 = vadd.f32 %v571_v45, %v517_v44 }
  0xc4   : > { %v530_v46 = vpop.f32.mrf.mxu2  ;;  %v504_v52 = vpop.f32.mrf.mxu0 }
  0xc5   : > { %v544_v48 = vpop.f32.mrf.mxu3  ;;  %v518_v53 = vpop.f32.mrf.mxu1 }
  0xc6   : > { %v545_v50 = vadd.f32 %v544_v48, %v530_v46  ;;  %v519_v55 = vadd.f32 %v518_v53, %v504_v52 }
  0xc8   : > { %v574_v51 = vadd.f32 %v572_v47, %v545_v50  ;;  %v575_v59 = vadd.f32 %v571_v45, %v519_v55 }
  0xca   : > { %v577_v54 = vpack.c.bf16 %v574_v51, %v573_v49 }
  0xcc   : > { %579 = vst [vmem:[%s255_s10] sm:$0xff] %v577_v54  ;;  %v532_v56 = vpop.f32.mrf.mxu2 }
  0xcd   : > { %v546_v57 = vpop.f32.mrf.mxu3 }
  0xce   : > { %v547_v58 = vadd.f32 %v546_v57, %v532_v56 }
  0xd0   : > { %v576_v60 = vadd.f32 %v572_v47, %v547_v58  ;;  %587 = sbr.rel (!%p1142_p9) target bundleno = 221 (0xdd), region = 48 }
  0xd2   : > { %v578_v61 = vpack.c.bf16 %v576_v60, %v575_v59 }
  0xd3   : > { %v624_v62 = vld [vmem:[%s255_s10] sm:$0xff] (%p1142_p9) }
  0xd4   : > { %580 = vst [vmem:[%s255_s10 + $0x8] sm:$0xff] %v578_v61 }
  0xd5   : > { %625 = vst [vmem:[%s593_s20] sm:$0xff] %v624_v62 }
  0xdb   : > { %v626_v63 = vld [vmem:[%s255_s10 + $0x8] sm:$0xff] }
  0xdc   : > { %627 = vst [vmem:[%s593_s20 + $0x10] sm:$0xff] %v626_v63 }
  0xdd PF: > { %s16_s17 = sadd.s32 1, %s1067_s17   ;;  %s1279_s12 = smov %s1051_s13 }
  0xde   : > { %p13_p2 = scmp.ge.s32.totalorder %s16_s17, 4   ;;  %s1280_s13 = smov %s1055_s14 }
  0xdf   : > { %s1281_s14 = smov %s1140_s24  ;;  %s1282_s15 = smov %s1063_s16 }
  0xe0   : > { %s1283_s16 = smov %s1285_s19  ;;  %15 = sbr.rel (!%p13_p2) target bundleno = 4 (0x4), region = 124 }
  0xe5   :  { %643 = vsyncpa [#allocation4], 1 }
  0xe6   :  { %645 = vsyncpa [#allocation4 + $0x1], 1 }

// kernel: transformer_forward.37
= control target key start
LH: loop header
LB: loop body
LE: loop exit
PB: predicated region body
PF: predicated region fallthrough
CT: control target
= control target key end

     0   :  { %8 = vsyncpa [#allocation4], 0  ;;  %s538_s15 = smov [#allocation3]   ;;  %s539_s17 = smov 128   ;;  %s585_s0 = inlined_call_operand.vmem [shape: bf16[16,256], index: 0, kind: input, shape index: {}]   ;;  %s586_s1 = inlined_call_operand.hbm [shape: bf16[256,256], index: 1, kind: input, shape index: {}]   ;;  %s587_s2 = inlined_call_operand.vmem [shape: bf16[1,256], index: 2, kind: input, shape index: {}]   ;;  %s588_s3 = inlined_call_operand.vmem [shape: bf16[16,256], index: 3, kind: output, shape index: {}]  }
   0x1   :  { %s15_s14 = sshll.u32 %s586_s1, 4  ;;  %s17_s16 = sshll.u32 %s538_s15, 4  ;;  %s16_s14 = int_to_ptr.hbm [resolvable:$true] %s15_s14  ;;  %s18_s16 = int_to_ptr.vmem [resolvable:$true] %s17_s16 }
   0x2   :  { %s540_s18 = smov 8  }
   0x3   :  { %23 = dma.hbm_to_vmem [thread:$0]  %s16_s14, 4096, %s18_s16, [#allocation4], %s539_s17, %s539_s17, %s540_s18  }
   0x4   :  { %536 = dma.done.wait [#allocation4], 4096  }
   0x5   :  { %537 = vsyncadd [#allocation4], 4294963200  ;;  %v405_v0 = vld [vmem:[#allocation3 + $0x70] sm:$0xf]  ;;  %v492_v1 = vld [vmem:[#allocation3 + $0x74] sm:$0xf0] }
   0x6   :  { %v469_v2 = vld [vmem:[#allocation3 + $0xf0] sm:$0xf]  ;;  %v406_v3 = vor.u32 %v492_v1, %v405_v0  ;;  %v508_v4 = vld [vmem:[#allocation3 + $0xf4] sm:$0xf0]  ;;  %v491_v5 = vld [vmem:[#allocation3 + $0x74] sm:$0xf] }
   0x7   :  { %v407_v6 = vld [vmem:[#allocation3 + $0x78] sm:$0xf0]  ;;  %v470_v7 = vor.u32 %v508_v4, %v469_v2  ;;  %v507_v9 = vld [vmem:[#allocation3 + $0xf4] sm:$0xf]  ;;  %v397_v11 = vld [vmem:[#allocation3 + $0x60] sm:$0xf] }
   0x8   :  { %v410_v8 = vor.u32 %v491_v5, %v407_v6  ;;  %v471_v10 = vld [vmem:[#allocation3 + $0xf8] sm:$0xf0]  ;;  %246 = vmatpush.bf16.msra.mxu0 %v406_v3  ;;  %v490_v13 = vld [vmem:[#allocation3 + $0x64] sm:$0xf0]  ;;  %v461_v14 = vld [vmem:[#allocation3 + $0xe0] sm:$0xf] }
   0x9   :  { %v474_v12 = vor.u32 %v507_v9, %v471_v10  ;;  %v506_v15 = vld [vmem:[#allocation3 + $0xe4] sm:$0xf0]  ;;  %260 = vmatpush.bf16.msra.mxu1 %v470_v7  ;;  %v398_v16 = vor.u32 %v490_v13, %v397_v11  ;;  %v489_v18 = vld [vmem:[#allocation3 + $0x64] sm:$0xf]  ;;  %v399_v19 = vld [vmem:[#allocation3 + $0x68] sm:$0xf0] }
   0xa   :  { %274 = vmatpush.bf16.msra.mxu2 %v410_v8  ;;  %v462_v17 = vor.u32 %v506_v15, %v461_v14  ;;  %v505_v20 = vld [vmem:[#allocation3 + $0xe4] sm:$0xf]  ;;  %v402_v21 = vor.u32 %v489_v18, %v399_v19  ;;  %v463_v22 = vld [vmem:[#allocation3 + $0xe8] sm:$0xf0]  ;;  %v389_v23 = vld [vmem:[#allocation3 + $0x50] sm:$0xf] }
   0xb   :  { %288 = vmatpush.bf16.msra.mxu3 %v474_v12  ;;  %v488_v24 = vld [vmem:[#allocation3 + $0x54] sm:$0xf0]  ;;  %v466_v25 = vor.u32 %v505_v20, %v463_v22  ;;  %v453_v26 = vld [vmem:[#allocation3 + $0xd0] sm:$0xf]  ;;  %v487_v28 = vld [vmem:[#allocation3 + $0x54] sm:$0xf] }
   0xc   :  { %v504_v27 = vld [vmem:[#allocation3 + $0xd4] sm:$0xf0]  ;;  %247 = vmatpush.bf16.msra.mxu0 %v398_v16  ;;  %v390_v29 = vor.u32 %v488_v24, %v389_v23  ;;  %v391_v30 = vld [vmem:[#allocation3 + $0x58] sm:$0xf0]  ;;  %v503_v31 = vld [vmem:[#allocation3 + $0xd4] sm:$0xf] }
   0xd   :  { %v455_v32 = vld [vmem:[#allocation3 + $0xd8] sm:$0xf0]  ;;  %261 = vmatpush.bf16.msra.mxu1 %v462_v17  ;;  %v454_v33 = vor.u32 %v504_v27, %v453_v26  ;;  %v394_v34 = vor.u32 %v487_v28, %v391_v30  ;;  %v381_v35 = vld [vmem:[#allocation3 + $0x40] sm:$0xf]  ;;  %v486_v36 = vld [vmem:[#allocation3 + $0x44] sm:$0xf0] }
   0xe   :  { %275 = vmatpush.bf16.msra.mxu2 %v402_v21  ;;  %v445_v37 = vld [vmem:[#allocation3 + $0xc0] sm:$0xf]  ;;  %v458_v38 = vor.u32 %v503_v31, %v455_v32  ;;  %v502_v39 = vld [vmem:[#allocation3 + $0xc4] sm:$0xf0]  ;;  %v485_v40 = vld [vmem:[#allocation3 + $0x44] sm:$0xf]  ;;  %v382_v44 = vor.u32 %v486_v36, %v381_v35 }
   0xf   :  { %289 = vmatpush.bf16.msra.mxu3 %v466_v25  ;;  %v383_v41 = vld [vmem:[#allocation3 + $0x48] sm:$0xf0]  ;;  %v501_v42 = vld [vmem:[#allocation3 + $0xc4] sm:$0xf]  ;;  %v446_v45 = vor.u32 %v502_v39, %v445_v37  ;;  %v373_v47 = vld [vmem:[#allocation3 + $0x30] sm:$0xf] }
  0x10   :  { %v447_v43 = vld [vmem:[#allocation3 + $0xc8] sm:$0xf0]  ;;  %248 = vmatpush.bf16.msra.mxu0 %v390_v29  ;;  %v386_v46 = vor.u32 %v485_v40, %v383_v41  ;;  %v484_v48 = vld [vmem:[#allocation3 + $0x34] sm:$0xf0]  ;;  %v437_v49 = vld [vmem:[#allocation3 + $0xb0] sm:$0xf] }
  0x11   :  { %262 = vmatpush.bf16.msra.mxu1 %v454_v33  ;;  %v450_v50 = vor.u32 %v501_v42, %v447_v43  ;;  %v500_v51 = vld [vmem:[#allocation3 + $0xb4] sm:$0xf0]  ;;  %v483_v52 = vld [vmem:[#allocation3 + $0x34] sm:$0xf]  ;;  %v375_v53 = vld [vmem:[#allocation3 + $0x38] sm:$0xf0]  ;;  %v374_v56 = vor.u32 %v484_v48, %v373_v47 }
  0x12   :  { %276 = vmatpush.bf16.msra.mxu2 %v394_v34  ;;  %v499_v54 = vld [vmem:[#allocation3 + $0xb4] sm:$0xf]  ;;  %v439_v55 = vld [vmem:[#allocation3 + $0xb8] sm:$0xf0]  ;;  %v438_v57 = vor.u32 %v500_v51, %v437_v49  ;;  %v378_v58 = vor.u32 %v483_v52, %v375_v53  ;;  %v365_v59 = vld [vmem:[#allocation3 + $0x20] sm:$0xf] }
  0x13   :  { %290 = vmatpush.bf16.msra.mxu3 %v458_v38  ;;  %v482_v60 = vld [vmem:[#allocation3 + $0x24] sm:$0xf0]  ;;  %v429_v61 = vld [vmem:[#allocation3 + $0xa0] sm:$0xf]  ;;  %v442_v62 = vor.u32 %v499_v54, %v439_v55  ;;  %v481_v0 = vld [vmem:[#allocation3 + $0x24] sm:$0xf] }
  0x14   :  { %249 = vmatpush.bf16.msra.mxu0 %v382_v44  ;;  %v498_v63 = vld [vmem:[#allocation3 + $0xa4] sm:$0xf0]  ;;  %v367_v1 = vld [vmem:[#allocation3 + $0x28] sm:$0xf0]  ;;  %v497_v2 = vld [vmem:[#allocation3 + $0xa4] sm:$0xf]  ;;  %v366_v4 = vor.u32 %v482_v60, %v365_v59 }
  0x15   :  { %263 = vmatpush.bf16.msra.mxu1 %v446_v45  ;;  %v431_v3 = vld [vmem:[#allocation3 + $0xa8] sm:$0xf0]  ;;  %v430_v5 = vor.u32 %v498_v63, %v429_v61  ;;  %v370_v6 = vor.u32 %v481_v0, %v367_v1  ;;  %v357_v7 = vld [vmem:[#allocation3 + $0x10] sm:$0xf]  ;;  %v480_v8 = vld [vmem:[#allocation3 + $0x14] sm:$0xf0] }
  0x16   :  { %277 = vmatpush.bf16.msra.mxu2 %v386_v46  ;;  %v421_v9 = vld [vmem:[#allocation3 + $0x90] sm:$0xf]  ;;  %v434_v10 = vor.u32 %v497_v2, %v431_v3  ;;  %v496_v11 = vld [vmem:[#allocation3 + $0x94] sm:$0xf0]  ;;  %v479_v12 = vld [vmem:[#allocation3 + $0x14] sm:$0xf]  ;;  %v358_v16 = vor.u32 %v480_v8, %v357_v7 }
  0x17   :  { %291 = vmatpush.bf16.msra.mxu3 %v450_v50  ;;  %v359_v13 = vld [vmem:[#allocation3 + $0x18] sm:$0xf0]  ;;  %v495_v14 = vld [vmem:[#allocation3 + $0x94] sm:$0xf]  ;;  %v422_v17 = vor.u32 %v496_v11, %v421_v9  ;;  %v349_v19 = vld [vmem:[#allocation3] sm:$0xf] }
  0x18   :  { %250 = vmatpush.bf16.msra.mxu0 %v374_v56  ;;  %v423_v15 = vld [vmem:[#allocation3 + $0x98] sm:$0xf0]  ;;  %v362_v18 = vor.u32 %v479_v12, %v359_v13  ;;  %v478_v20 = vld [vmem:[#allocation3 + $0x4] sm:$0xf0]  ;;  %v413_v21 = vld [vmem:[#allocation3 + $0x80] sm:$0xf] }
  0x19   :  { %264 = vmatpush.bf16.msra.mxu1 %v438_v57  ;;  %v426_v22 = vor.u32 %v495_v14, %v423_v15  ;;  %v494_v23 = vld [vmem:[#allocation3 + $0x84] sm:$0xf0]  ;;  %v477_v24 = vld [vmem:[#allocation3 + $0x4] sm:$0xf]  ;;  %v351_v25 = vld [vmem:[#allocation3 + $0x8] sm:$0xf0]  ;;  %v350_v28 = vor.u32 %v478_v20, %v349_v19 }
  0x1a   :  { %278 = vmatpush.bf16.msra.mxu2 %v378_v58  ;;  %v493_v26 = vld [vmem:[#allocation3 + $0x84] sm:$0xf]  ;;  %v415_v27 = vld [vmem:[#allocation3 + $0x88] sm:$0xf0]  ;;  %v341_v29 = vld [vmem:[%s585_s0] sm:$0xf]  ;;  %v414_v31 = vor.u32 %v494_v23, %v413_v21  ;;  %v354_v32 = vor.u32 %v477_v24, %v351_v25 }
  0x1b   :  { %292 = vmatpush.bf16.msra.mxu3 %v442_v62  ;;  %v476_v30 = vld [vmem:[%s585_s0 + $0x4] sm:$0xf0]  ;;  %v475_v33 = vld [vmem:[%s585_s0 + $0x4] sm:$0xf]  ;;  %v343_v34 = vld [vmem:[%s585_s0 + $0x8] sm:$0xf0]  ;;  %v418_v35 = vor.u32 %v493_v26, %v415_v27 }
  0x1c   :  { %251 = vmatpush.bf16.msra.mxu0 %v366_v4  ;;  %v342_v36 = vor.u32 %v476_v30, %v341_v29  ;;  %v346_v37 = vor.u32 %v475_v33, %v343_v34  ;;  %v317_v38 = vld [vmem:[%s587_s2] sm:$0x3] }
  0x1d   :  { %265 = vmatpush.bf16.msra.mxu1 %v430_v5  ;;  %v318_v39 = vunpack.c.l.bf16 %v317_v38 }
  0x1e   :  { %279 = vmatpush.bf16.msra.mxu2 %v370_v6 }
  0x1f   :  { %293 = vmatpush.bf16.msra.mxu3 %v434_v10  ;;  %v320_v40 = vperm.slane %v318_v39, 0  ;;  %v321_v43 = vperm.slane %v318_v39, 2 }
  0x20   :  { %252 = vmatpush.bf16.msra.mxu0 %v358_v16 }
  0x21   :  { %266 = vmatpush.bf16.msra.mxu1 %v422_v17  ;;  %v324_v45 = vperm.slane %v320_v40, 0  ;;  %v325_v47 = vperm.slane %v321_v43, 0 }
  0x22   :  { %280 = vmatpush.bf16.msra.mxu2 %v362_v18 }
  0x23   :  { %294 = vmatpush.bf16.msra.mxu3 %v426_v22 }
  0x24   :  { %253 = vmatpush.bf16.msra.mxu0 %v350_v28 }
  0x25   :  { %267 = vmatpush.bf16.msra.mxu1 %v414_v31 }
  0x26   :  { %281 = vmatpush.bf16.msra.mxu2 %v354_v32 }
  0x27   :  { %295 = vmatpush.bf16.msra.mxu3 %v418_v35  ;;  %254 = vmatmul.bf16.vlgmr.msra.gmra.mxu0 %v342_v36 }
  0x28   :  { %268 = vmatmul.bf16.vlgmr.msra.gmra.mxu1 %v346_v37 }
  0x29   :  { %282 = vmatmul.bf16.vlgmr.msra.gmra.mxu2 %v342_v36 }
  0x2a   :  { %296 = vmatmul.bf16.vlgmr.msra.gmra.mxu3 %v346_v37 }
  0xa4   :  { %v255_v41 = vpop.f32.mrf.mxu0 }
  0xa5   :  { %v269_v42 = vpop.f32.mrf.mxu1 }
  0xa6   :  { %v270_v44 = vadd.f32 %v269_v42, %v255_v41 }
  0xa8   :  { %v326_v49 = vadd.f32 %v324_v45, %v270_v44 }
  0xac   :  { %v283_v46 = vpop.f32.mrf.mxu2  ;;  %v257_v52 = vpop.f32.mrf.mxu0 }
  0xad   :  { %v297_v48 = vpop.f32.mrf.mxu3  ;;  %v271_v53 = vpop.f32.mrf.mxu1 }
  0xae   :  { %v298_v50 = vadd.f32 %v297_v48, %v283_v46  ;;  %v272_v55 = vadd.f32 %v271_v53, %v257_v52 }
  0xb0   :  { %v327_v51 = vadd.f32 %v325_v47, %v298_v50  ;;  %v328_v59 = vadd.f32 %v324_v45, %v272_v55 }
  0xb2   :  { %v330_v54 = vpack.c.bf16 %v327_v51, %v326_v49 }
  0xb4   :  { %332 = vst [vmem:[%s588_s3] sm:$0xff] %v330_v54  ;;  %v285_v56 = vpop.f32.mrf.mxu2 }
  0xb5   :  { %v299_v57 = vpop.f32.mrf.mxu3 }
  0xb6   :  { %v300_v58 = vadd.f32 %v299_v57, %v285_v56 }
  0xb8   :  { %v329_v60 = vadd.f32 %v325_v47, %v300_v58 }
  0xba   :  { %v331_v61 = vpack.c.bf16 %v329_v60, %v328_v59 }
  0xbc   :  { %333 = vst [vmem:[%s588_s3 + $0x8] sm:$0xff] %v331_v61 }
  0xbd   :  { %338 = vsyncpa [#allocation4], 1 }

// kernel: transformer_forward.39
= control target key start
LH: loop header
LB: loop body
LE: loop exit
PB: predicated region body
PF: predicated region fallthrough
CT: control target
= control target key end

     0   :  { %s1880_s0 = inlined_call_operand.vmem [shape: bf16[16,256], index: 0, kind: input, shape index: {}]   ;;  %s1881_s1 = inlined_call_operand.hbm [shape: bf16[256,512], index: 1, kind: input, shape index: {}]   ;;  %s1882_s2 = inlined_call_operand.vmem [shape: bf16[1,512], index: 2, kind: input, shape index: {}]   ;;  %s1883_s3 = inlined_call_operand.hbm [shape: bf16[512,256], index: 3, kind: input, shape index: {}]   ;;  %s1884_s4 = inlined_call_operand.vmem [shape: bf16[1,256], index: 4, kind: input, shape index: {}]   ;;  %s1885_s5 = inlined_call_operand.vmem [shape: bf16[16,256], index: 5, kind: output, shape index: {}]  }
   0x1   :  { %1886 = sst [smem:[#allocation9_spill]] %s1881_s1 }
   0x2   :  { %10 = vsyncpa [#allocation4], 0 }
   0x3   :  { %12 = vsyncpa [#allocation4 + $0x1], 0 }
   0x4   :  { %13 = vsyncpa [#allocation6], 0 }
   0x5   :  { %15 = vsyncpa [#allocation6 + $0x1], 0  ;;  %s1609_s18 = smov 0   ;;  %s1611_s19 = smov 0  }
   0x6   :  { %s1613_s20 = smov 0   ;;  %s1615_s21 = smov 0  }
   0x7   :  { %s1617_s22 = smov 0   ;;  %s1619_s23 = smov 0  }
   0x8 LB: > { %s1041_s24 = sadd.s32 4294967295, %s1573_s23   ;;  %s30_s25 = sadd.s32 1, %s1569_s22  ;;  %s1573_s23 = sphi %s1619_s23, %s21_s23   ;;  %s1569_s22 = sphi %s1617_s22, %s1895_s22   ;;  %s1565_s21 = sphi %s1615_s21, %s1894_s21   ;;  %s1561_s20 = sphi %s1613_s20, %s1893_s20   ;;  %s1557_s19 = sphi %s1611_s19, %s1892_s19   ;;  %s1553_s18 = sphi %s1609_s18, %s1891_s18  }
   0x9   : > { %p31_p0 = scmp.ge.s32.totalorder %s30_s25, 2  ;;  %s66_s26 = sadd.s32 1, %s1561_s20 }
   0xa   : > { %p73_p1 = scmp.ne.s32.totalorder %s1561_s20, %s1557_s19  ;;  %p74_p2 = scmp.eq.s32.totalorder %s1573_s23, 0 }
   0xb   : > { %s1897_s25 = smov (%p31_p0, %s30_s25), 0  ;;  %p79_p4 = scmp.ne.s32.totalorder %s1557_s19, %s1553_s18 }
   0xc   : > { %p1645_p3 = por %p74_p2, %p73_p1  ;;  %s63_s28 = ssub.s32 %s1569_s22, %s1897_s25 }
   0xd   : > { %p80_p5 = scmp.eq.s32.totalorder %s1041_s24, 0  ;;  %p64_p6 = scmp.eq.s32.totalorder %s63_s28, 0 }
   0xe   : > { %p1406_p8 = scmp.lt.s32.totalorder %s1573_s23, 2  ;;  %s1661_s6 = sand.u32 1, %s1561_s20  }
   0xf   : > { %p1652_p7 = por %p80_p5, %p79_p4  ;;  %s1326_s7 = sshll.u32 %s1569_s22, 3 }
  0x10   : > { %s1658_s30 = scalar_select %p64_p6, %s1561_s20, %s66_s26  }
  0x11   : > { %s1045_s8 = sshll.u32 %s1661_s6, 8  ;;  %s1889_s1 = sld [smem:[#allocation9_spill]] }
  0x12   : > { %s219_s13 = scalar_lea.vmem [#allocation3], %s1045_s8  ;;  %p1670_p9 = pnand %p1406_p8, %p1645_p3 }
  0x13   : > { %s227_s14 = sshll.u32 %s219_s13, 4  ;;  %p1052_p10 = scmp.ge.s32.totalorder %s1573_s23, 1  ;;  %s228_s14 = int_to_ptr.vmem [resolvable:$true] %s227_s14 }
  0x14   : > { %s216_s16 = scalar_lea.sflag [#allocation4], %s1661_s6  ;;  %s1575_s17 = smov 256  }
  0x15   : > { %s1576_s18 = smov 128   ;;  %s1577_s24 = smov 8  }
  0x16   : > { %p266_p11 = scmp.lt.s32.totalorder %s1573_s23, 3  ;;  %s1328_s26 = sshll.u32 %s1569_s22, 8 }
  0x17   : > { %s224_s11 = scalar_lea.hbm %s1889_s1, %s1326_s7  ;;  %s255_s27 = scalar_lea.hbm %s1883_s3, %s1328_s26 }
  0x18   : > { %s225_s12 = sshll.u32 %s224_s11, 4  ;;  %p267_p12 = pnand %p1052_p10, %p266_p11  ;;  %s226_s12 = int_to_ptr.hbm [resolvable:$true] %s225_s12 }
  0x19   : > { %1402 = dma.hbm_to_vmem [thread:$0]  (!%p1670_p9), %s226_s12, 4096, %s228_s14, %s216_s16, %s1575_s17, %s1576_s18, %s1577_s24  }
  0x1a   : > { %s256_s9 = sshll.u32 %s255_s27, 4  ;;  %s249_s10 = scalar_lea.vmem [#allocation5], %s1045_s8  ;;  %s257_s9 = int_to_ptr.hbm [resolvable:$true] %s256_s9 }
  0x1b   : > { %s258_s11 = sshll.u32 %s249_s10, 4  ;;  %s246_s13 = scalar_lea.sflag [#allocation6], %s1661_s6  ;;  %s259_s11 = int_to_ptr.vmem [resolvable:$true] %s258_s11 }
  0x1c   : > { %1405 = dma.hbm_to_vmem [thread:$0]  (!%p1670_p9), %s257_s9, 4096, %s259_s11, %s246_s13, %s1576_s18, %s1576_s18, %s1577_s24  }
  0x1d   : > { %270 = sbr.rel (%p267_p12) target bundleno = 392 (0x188), region = 40  ;;  %s272_s1 = sand.u32 (!%p267_p12), 1, %s1557_s19  }
  0x1e   : > { %s1053_s12 = sshll.u32 (!%p267_p12), %s272_s1, 8  ;;  %s273_s14 = scalar_lea.sflag (!%p267_p12), [#allocation4], %s272_s1 }
  0x1f   : > { %s1687_s16 = scalar_lea.vmem (!%p267_p12), [#allocation3], %s1053_s12 }
  0x22   : > { %1544 = dma.done.wait (%p1652_p7), %s273_s14, 4096  }
  0x23   : > { %1546 = vsyncadd (%p1652_p7), %s273_s14, 4294963200  ;;  %s283_s8 = scalar_lea.sflag [#allocation6], %s272_s1  ;;  %s1693_s17 = scalar_lea.vmem [#allocation5], %s1053_s12 }
  0x24   : > { %1548 = dma.done.wait (%p1652_p7), %s283_s8, 4096  }
  0x25   : > { %1550 = vsyncadd (%p1652_p7), %s283_s8, 4294963200  ;;  %s1055_s6 = sshll.u32 %s1565_s21, 1  ;;  %p1056_p0 = scmp.ne.s32.totalorder %s1565_s21, 0 }
  0x26   : > { %p339_p13 = scmp.lt.s32.totalorder %s1055_s6, 3 }
  0x27   : > { %354 = sbr.rel (%p1056_p0) target bundleno = 49 (0x31), region = 52 }
  0x28   : > { %s1899_s6 = smov (!%p339_p13, %s1055_s6), 3 }
  0x29   : > { %s341_s24 = scalar_lea.vmem %s1882_s2, %s1899_s6 }
  0x2c   : > { %v1578_v0 = vmov 0.0  }
  0x2d   : > { %355 = vst [vmem:[#allocation2 + $0x10] sm:$0xff] %v1578_v0 }
  0x2e   : > { %356 = vst [vmem:[#allocation2] sm:$0xff] %v1578_v0 }
  0x2f   : > { %357 = vst [vmem:[#allocation2 + $0x18] sm:$0xff] %v1578_v0 }
  0x30   : > { %358 = vst [vmem:[#allocation2 + $0x8] sm:$0xff] %v1578_v0 }
  0x31 PF: > { %v1123_v1 = vld [vmem:[%s1687_s16 + $0x70] sm:$0xf]  ;;  %v1346_v2 = vld [vmem:[%s1687_s16 + $0x74] sm:$0xf0]  ;;  %v1345_v6 = vld [vmem:[%s1687_s16 + $0x74] sm:$0xf] }
  0x32   : > { %v1187_v3 = vld [vmem:[%s1687_s16 + $0xf0] sm:$0xf]  ;;  %v1124_v4 = vor.u32 %v1346_v2, %v1123_v1  ;;  %v1362_v5 = vld [vmem:[%s1687_s16 + $0xf4] sm:$0xf0]  ;;  %v1125_v7 = vld [vmem:[%s1687_s16 + $0x78] sm:$0xf0] }
  0x33   : > { %v1188_v8 = vor.u32 %v1362_v5, %v1187_v3  ;;  %v1128_v9 = vor.u32 %v1345_v6, %v1125_v7  ;;  %v1361_v10 = vld [vmem:[%s1687_s16 + $0xf4] sm:$0xf]  ;;  %v1189_v11 = vld [vmem:[%s1687_s16 + $0xf8] sm:$0xf0]  ;;  %v1115_v12 = vld [vmem:[%s1687_s16 + $0x60] sm:$0xf] }
  0x34   : > { %572 = vmatpush.bf16.msra.mxu0 %v1124_v4  ;;  %v1192_v13 = vor.u32 %v1361_v10, %v1189_v11  ;;  %v1344_v14 = vld [vmem:[%s1687_s16 + $0x64] sm:$0xf0]  ;;  %v1179_v15 = vld [vmem:[%s1687_s16 + $0xe0] sm:$0xf]  ;;  %v1343_v19 = vld [vmem:[%s1687_s16 + $0x64] sm:$0xf] }
  0x35   : > { %v1360_v16 = vld [vmem:[%s1687_s16 + $0xe4] sm:$0xf0]  ;;  %586 = vmatpush.bf16.msra.mxu1 %v1188_v8  ;;  %600 = vmatpush.bf16.msra.mxu2 %v1128_v9  ;;  %v1116_v17 = vor.u32 %v1344_v14, %v1115_v12  ;;  %v1117_v20 = vld [vmem:[%s1687_s16 + $0x68] sm:$0xf0]  ;;  %v1359_v21 = vld [vmem:[%s1687_s16 + $0xe4] sm:$0xf] }
  0x36   : > { %v1180_v18 = vor.u32 %v1360_v16, %v1179_v15  ;;  %614 = vmatpush.bf16.msra.mxu3 %v1192_v13  ;;  %v1120_v22 = vor.u32 %v1343_v19, %v1117_v20  ;;  %v1181_v23 = vld [vmem:[%s1687_s16 + $0xe8] sm:$0xf0]  ;;  %v1107_v24 = vld [vmem:[%s1687_s16 + $0x50] sm:$0xf]  ;;  %v1342_v25 = vld [vmem:[%s1687_s16 + $0x54] sm:$0xf0] }
  0x37   : > { %v1184_v26 = vor.u32 %v1359_v21, %v1181_v23  ;;  %v1171_v27 = vld [vmem:[%s1687_s16 + $0xd0] sm:$0xf]  ;;  %v1358_v28 = vld [vmem:[%s1687_s16 + $0xd4] sm:$0xf0]  ;;  %v1341_v29 = vld [vmem:[%s1687_s16 + $0x54] sm:$0xf]  ;;  %v1108_v30 = vor.u32 %v1342_v25, %v1107_v24 }
  0x38   : > { %573 = vmatpush.bf16.msra.mxu0 %v1116_v17  ;;  %v1109_v31 = vld [vmem:[%s1687_s16 + $0x58] sm:$0xf0]  ;;  %v1357_v32 = vld [vmem:[%s1687_s16 + $0xd4] sm:$0xf]  ;;  %v1172_v34 = vor.u32 %v1358_v28, %v1171_v27  ;;  %v1099_v36 = vld [vmem:[%s1687_s16 + $0x40] sm:$0xf] }
  0x39   : > { %v1173_v33 = vld [vmem:[%s1687_s16 + $0xd8] sm:$0xf0]  ;;  %587 = vmatpush.bf16.msra.mxu1 %v1180_v18  ;;  %601 = vmatpush.bf16.msra.mxu2 %v1120_v22  ;;  %v1112_v35 = vor.u32 %v1341_v29, %v1109_v31  ;;  %v1340_v37 = vld [vmem:[%s1687_s16 + $0x44] sm:$0xf0]  ;;  %v1163_v38 = vld [vmem:[%s1687_s16 + $0xc0] sm:$0xf] }
  0x3a   : > { %615 = vmatpush.bf16.msra.mxu3 %v1184_v26  ;;  %v1176_v39 = vor.u32 %v1357_v32, %v1173_v33  ;;  %v1356_v40 = vld [vmem:[%s1687_s16 + $0xc4] sm:$0xf0]  ;;  %v1339_v41 = vld [vmem:[%s1687_s16 + $0x44] sm:$0xf]  ;;  %v1101_v42 = vld [vmem:[%s1687_s16 + $0x48] sm:$0xf0]  ;;  %v1100_v45 = vor.u32 %v1340_v37, %v1099_v36 }
  0x3b   : > { %v1355_v43 = vld [vmem:[%s1687_s16 + $0xc4] sm:$0xf]  ;;  %v1165_v44 = vld [vmem:[%s1687_s16 + $0xc8] sm:$0xf0]  ;;  %v1164_v46 = vor.u32 %v1356_v40, %v1163_v38  ;;  %v1104_v47 = vor.u32 %v1339_v41, %v1101_v42  ;;  %v1091_v48 = vld [vmem:[%s1687_s16 + $0x30] sm:$0xf] }
  0x3c   : > { %574 = vmatpush.bf16.msra.mxu0 %v1108_v30  ;;  %v1338_v49 = vld [vmem:[%s1687_s16 + $0x34] sm:$0xf0]  ;;  %v1155_v50 = vld [vmem:[%s1687_s16 + $0xb0] sm:$0xf]  ;;  %v1168_v51 = vor.u32 %v1355_v43, %v1165_v44  ;;  %v1337_v53 = vld [vmem:[%s1687_s16 + $0x34] sm:$0xf] }
  0x3d   : > { %588 = vmatpush.bf16.msra.mxu1 %v1172_v34  ;;  %602 = vmatpush.bf16.msra.mxu2 %v1112_v35  ;;  %v1354_v52 = vld [vmem:[%s1687_s16 + $0xb4] sm:$0xf0]  ;;  %v1093_v54 = vld [vmem:[%s1687_s16 + $0x38] sm:$0xf0]  ;;  %v1353_v55 = vld [vmem:[%s1687_s16 + $0xb4] sm:$0xf]  ;;  %v1092_v57 = vor.u32 %v1338_v49, %v1091_v48 }
  0x3e   : > { %616 = vmatpush.bf16.msra.mxu3 %v1176_v39  ;;  %v1157_v56 = vld [vmem:[%s1687_s16 + $0xb8] sm:$0xf0]  ;;  %v1156_v58 = vor.u32 %v1354_v52, %v1155_v50  ;;  %v1096_v59 = vor.u32 %v1337_v53, %v1093_v54  ;;  %v1083_v60 = vld [vmem:[%s1687_s16 + $0x20] sm:$0xf]  ;;  %v1336_v61 = vld [vmem:[%s1687_s16 + $0x24] sm:$0xf0] }
  0x3f   : > { %v1147_v62 = vld [vmem:[%s1687_s16 + $0xa0] sm:$0xf]  ;;  %v1160_v63 = vor.u32 %v1353_v55, %v1157_v56  ;;  %v1352_v0 = vld [vmem:[%s1687_s16 + $0xa4] sm:$0xf0]  ;;  %v1335_v1 = vld [vmem:[%s1687_s16 + $0x24] sm:$0xf]  ;;  %v1084_v5 = vor.u32 %v1336_v61, %v1083_v60 }
  0x40   : > { %575 = vmatpush.bf16.msra.mxu0 %v1100_v45  ;;  %v1085_v2 = vld [vmem:[%s1687_s16 + $0x28] sm:$0xf0]  ;;  %v1351_v3 = vld [vmem:[%s1687_s16 + $0xa4] sm:$0xf]  ;;  %v1148_v6 = vor.u32 %v1352_v0, %v1147_v62  ;;  %v1075_v8 = vld [vmem:[%s1687_s16 + $0x10] sm:$0xf] }
  0x41   : > { %589 = vmatpush.bf16.msra.mxu1 %v1164_v46  ;;  %603 = vmatpush.bf16.msra.mxu2 %v1104_v47  ;;  %v1149_v4 = vld [vmem:[%s1687_s16 + $0xa8] sm:$0xf0]  ;;  %v1088_v7 = vor.u32 %v1335_v1, %v1085_v2  ;;  %v1334_v9 = vld [vmem:[%s1687_s16 + $0x14] sm:$0xf0]  ;;  %v1139_v10 = vld [vmem:[%s1687_s16 + $0x90] sm:$0xf] }
  0x42   : > { %617 = vmatpush.bf16.msra.mxu3 %v1168_v51  ;;  %v1152_v11 = vor.u32 %v1351_v3, %v1149_v4  ;;  %v1350_v12 = vld [vmem:[%s1687_s16 + $0x94] sm:$0xf0]  ;;  %v1333_v13 = vld [vmem:[%s1687_s16 + $0x14] sm:$0xf]  ;;  %v1077_v14 = vld [vmem:[%s1687_s16 + $0x18] sm:$0xf0]  ;;  %v1076_v17 = vor.u32 %v1334_v9, %v1075_v8 }
  0x43   : > { %v1349_v15 = vld [vmem:[%s1687_s16 + $0x94] sm:$0xf]  ;;  %v1141_v16 = vld [vmem:[%s1687_s16 + $0x98] sm:$0xf0]  ;;  %v1067_v18 = vld [vmem:[%s1687_s16] sm:$0xf]  ;;  %v1140_v20 = vor.u32 %v1350_v12, %v1139_v10  ;;  %v1080_v21 = vor.u32 %v1333_v13, %v1077_v14 }
  0x44   : > { %576 = vmatpush.bf16.msra.mxu0 %v1092_v57  ;;  %v1332_v19 = vld [vmem:[%s1687_s16 + $0x4] sm:$0xf0]  ;;  %v1131_v22 = vld [vmem:[%s1687_s16 + $0x80] sm:$0xf]  ;;  %v1331_v24 = vld [vmem:[%s1687_s16 + $0x4] sm:$0xf]  ;;  %v1144_v25 = vor.u32 %v1349_v15, %v1141_v16 }
  0x45   : > { %590 = vmatpush.bf16.msra.mxu1 %v1156_v58  ;;  %604 = vmatpush.bf16.msra.mxu2 %v1096_v59  ;;  %v1348_v23 = vld [vmem:[%s1687_s16 + $0x84] sm:$0xf0]  ;;  %v1069_v26 = vld [vmem:[%s1687_s16 + $0x8] sm:$0xf0]  ;;  %v1347_v27 = vld [vmem:[%s1687_s16 + $0x84] sm:$0xf]  ;;  %v1068_v32 = vor.u32 %v1332_v19, %v1067_v18 }
  0x46   : > { %618 = vmatpush.bf16.msra.mxu3 %v1160_v63  ;;  %v1133_v28 = vld [vmem:[%s1687_s16 + $0x88] sm:$0xf0]  ;;  %v1059_v29 = vld [vmem:[%s1880_s0] sm:$0xf]  ;;  %v1251_v30 = vld [vmem:[%s1693_s17 + $0x70] sm:$0xf]  ;;  %v1132_v36 = vor.u32 %v1348_v23, %v1131_v22  ;;  %v1072_v37 = vor.u32 %v1331_v24, %v1069_v26 }
  0x47   : > { %v1378_v31 = vld [vmem:[%s1693_s17 + $0x74] sm:$0xf0]  ;;  %v1330_v33 = vld [vmem:[%s1880_s0 + $0x4] sm:$0xf0]  ;;  %v1377_v34 = vld [vmem:[%s1693_s17 + $0x74] sm:$0xf]  ;;  %v1136_v40 = vor.u32 %v1347_v27, %v1133_v28 }
  0x48   : > { %577 = vmatpush.bf16.msra.mxu0 %v1084_v5  ;;  %v1253_v35 = vld [vmem:[%s1693_s17 + $0x78] sm:$0xf0]  ;;  %v1329_v38 = vld [vmem:[%s1880_s0 + $0x4] sm:$0xf]  ;;  %v1061_v39 = vld [vmem:[%s1880_s0 + $0x8] sm:$0xf0]  ;;  %v1252_v41 = vor.u32 %v1378_v31, %v1251_v30  ;;  %v1060_v45 = vor.u32 %v1330_v33, %v1059_v29 }
  0x49   : > { %591 = vmatpush.bf16.msra.mxu1 %v1148_v6  ;;  %605 = vmatpush.bf16.msra.mxu2 %v1088_v7  ;;  %v1243_v42 = vld [vmem:[%s1693_s17 + $0x60] sm:$0xf]  ;;  %v1315_v43 = vld [vmem:[%s1693_s17 + $0xf0] sm:$0xf]  ;;  %v1394_v44 = vld [vmem:[%s1693_s17 + $0xf4] sm:$0xf0]  ;;  %v1256_v46 = vor.u32 %v1377_v34, %v1253_v35  ;;  %v1064_v50 = vor.u32 %v1329_v38, %v1061_v39 }
  0x4a   : > { %619 = vmatpush.bf16.msra.mxu3 %v1152_v11  ;;  %v1376_v47 = vld [vmem:[%s1693_s17 + $0x64] sm:$0xf0]  ;;  %v1393_v48 = vld [vmem:[%s1693_s17 + $0xf4] sm:$0xf]  ;;  %v1317_v49 = vld [vmem:[%s1693_s17 + $0xf8] sm:$0xf0]  ;;  %v1316_v53 = vor.u32 %v1394_v44, %v1315_v43 }
  0x4b   : > { %v1375_v51 = vld [vmem:[%s1693_s17 + $0x64] sm:$0xf]  ;;  %v1245_v52 = vld [vmem:[%s1693_s17 + $0x68] sm:$0xf0]  ;;  %v1244_v54 = vor.u32 %v1376_v47, %v1243_v42  ;;  %v1320_v55 = vor.u32 %v1393_v48, %v1317_v49  ;;  %v1235_v56 = vld [vmem:[%s1693_s17 + $0x50] sm:$0xf] }
  0x4c   : > { %578 = vmatpush.bf16.msra.mxu0 %v1076_v17  ;;  %v1307_v57 = vld [vmem:[%s1693_s17 + $0xe0] sm:$0xf]  ;;  %v1392_v58 = vld [vmem:[%s1693_s17 + $0xe4] sm:$0xf0]  ;;  %v1248_v59 = vor.u32 %v1375_v51, %v1245_v52  ;;  %v1374_v60 = vld [vmem:[%s1693_s17 + $0x54] sm:$0xf0] }
  0x4d   : > { %592 = vmatpush.bf16.msra.mxu1 %v1140_v20  ;;  %606 = vmatpush.bf16.msra.mxu2 %v1080_v21  ;;  %v1391_v61 = vld [vmem:[%s1693_s17 + $0xe4] sm:$0xf]  ;;  %v1309_v62 = vld [vmem:[%s1693_s17 + $0xe8] sm:$0xf0]  ;;  %v1373_v63 = vld [vmem:[%s1693_s17 + $0x54] sm:$0xf]  ;;  %v1308_v1 = vor.u32 %v1392_v58, %v1307_v57  ;;  %v1236_v2 = vor.u32 %v1374_v60, %v1235_v56 }
  0x4e   : > { %620 = vmatpush.bf16.msra.mxu3 %v1144_v25  ;;  %v1237_v0 = vld [vmem:[%s1693_s17 + $0x58] sm:$0xf0]  ;;  %v1312_v3 = vor.u32 %v1391_v61, %v1309_v62  ;;  %v1227_v5 = vld [vmem:[%s1693_s17 + $0x40] sm:$0xf]  ;;  %v1372_v6 = vld [vmem:[%s1693_s17 + $0x44] sm:$0xf0] }
  0x4f   : > { %v1240_v4 = vor.u32 %v1373_v63, %v1237_v0  ;;  %v1371_v7 = vld [vmem:[%s1693_s17 + $0x44] sm:$0xf]  ;;  %v1229_v8 = vld [vmem:[%s1693_s17 + $0x48] sm:$0xf0]  ;;  %v1228_v9 = vor.u32 %v1372_v6, %v1227_v5  ;;  %v1299_v11 = vld [vmem:[%s1693_s17 + $0xd0] sm:$0xf] }
  0x50   : > { %579 = vmatpush.bf16.msra.mxu0 %v1068_v32  ;;  %v1232_v10 = vor.u32 %v1371_v7, %v1229_v8  ;;  %v1390_v12 = vld [vmem:[%s1693_s17 + $0xd4] sm:$0xf0]  ;;  %v1389_v13 = vld [vmem:[%s1693_s17 + $0xd4] sm:$0xf]  ;;  %v1301_v15 = vld [vmem:[%s1693_s17 + $0xd8] sm:$0xf0] }
  0x51   : > { %593 = vmatpush.bf16.msra.mxu1 %v1132_v36  ;;  %607 = vmatpush.bf16.msra.mxu2 %v1072_v37  ;;  %v1300_v14 = vor.u32 %v1390_v12, %v1299_v11  ;;  %v1304_v16 = vor.u32 %v1389_v13, %v1301_v15  ;;  %v1219_v17 = vld [vmem:[%s1693_s17 + $0x30] sm:$0xf]  ;;  %v1370_v18 = vld [vmem:[%s1693_s17 + $0x34] sm:$0xf0]  ;;  %v1369_v19 = vld [vmem:[%s1693_s17 + $0x34] sm:$0xf] }
  0x52   : > { %621 = vmatpush.bf16.msra.mxu3 %v1136_v40  ;;  %v1220_v20 = vor.u32 %v1370_v18, %v1219_v17  ;;  %v1221_v21 = vld [vmem:[%s1693_s17 + $0x38] sm:$0xf0]  ;;  %v1291_v23 = vld [vmem:[%s1693_s17 + $0xc0] sm:$0xf]  ;;  %v1388_v24 = vld [vmem:[%s1693_s17 + $0xc4] sm:$0xf0] }
  0x53   : > { %580 = vmatmul.bf16.vlgmr.msra.gmra.mxu0 %v1060_v45  ;;  %v1224_v22 = vor.u32 %v1369_v19, %v1221_v21  ;;  %v1387_v25 = vld [vmem:[%s1693_s17 + $0xc4] sm:$0xf]  ;;  %v1292_v26 = vor.u32 %v1388_v24, %v1291_v23  ;;  %v1293_v27 = vld [vmem:[%s1693_s17 + $0xc8] sm:$0xf0]  ;;  %v1211_v29 = vld [vmem:[%s1693_s17 + $0x20] sm:$0xf] }
  0x54   : > { %830 = vmatpush.bf16.msrb.mxu0 %v1252_v41  ;;  %594 = vmatmul.bf16.vlgmr.msra.gmra.mxu1 %v1064_v50  ;;  %v1296_v28 = vor.u32 %v1387_v25, %v1293_v27  ;;  %v1368_v30 = vld [vmem:[%s1693_s17 + $0x24] sm:$0xf0]  ;;  %v1367_v32 = vld [vmem:[%s1693_s17 + $0x24] sm:$0xf]  ;;  %v1213_v33 = vld [vmem:[%s1693_s17 + $0x28] sm:$0xf0] }
  0x55   : > { %858 = vmatpush.bf16.msrb.mxu2 %v1256_v46  ;;  %622 = vmatmul.bf16.vlgmr.msra.gmra.mxu3 %v1064_v50  ;;  %v1212_v31 = vor.u32 %v1368_v30, %v1211_v29  ;;  %v1216_v34 = vor.u32 %v1367_v32, %v1213_v33  ;;  %v1283_v35 = vld [vmem:[%s1693_s17 + $0xb0] sm:$0xf]  ;;  %v1386_v36 = vld [vmem:[%s1693_s17 + $0xb4] sm:$0xf0]  ;;  %v1385_v38 = vld [vmem:[%s1693_s17 + $0xb4] sm:$0xf] }
  0x56   : > { %608 = vmatmul.bf16.vlgmr.msra.gmra.mxu2 %v1060_v45  ;;  %844 = vmatpush.bf16.msrb.mxu1 %v1316_v53  ;;  %v1284_v37 = vor.u32 %v1386_v36, %v1283_v35  ;;  %v1285_v39 = vld [vmem:[%s1693_s17 + $0xb8] sm:$0xf0]  ;;  %v1203_v41 = vld [vmem:[%s1693_s17 + $0x10] sm:$0xf]  ;;  %v1366_v42 = vld [vmem:[%s1693_s17 + $0x14] sm:$0xf0] }
  0x57   : > { %872 = vmatpush.bf16.msrb.mxu3 %v1320_v55  ;;  %v1288_v40 = vor.u32 %v1385_v38, %v1285_v39  ;;  %v1365_v43 = vld [vmem:[%s1693_s17 + $0x14] sm:$0xf]  ;;  %v1204_v44 = vor.u32 %v1366_v42, %v1203_v41  ;;  %v1205_v45 = vld [vmem:[%s1693_s17 + $0x18] sm:$0xf0]  ;;  %v1275_v47 = vld [vmem:[%s1693_s17 + $0xa0] sm:$0xf] }
  0x58   : > { %831 = vmatpush.bf16.msrb.mxu0 %v1244_v54  ;;  %v1208_v46 = vor.u32 %v1365_v43, %v1205_v45  ;;  %v1384_v48 = vld [vmem:[%s1693_s17 + $0xa4] sm:$0xf0]  ;;  %v1383_v49 = vld [vmem:[%s1693_s17 + $0xa4] sm:$0xf]  ;;  %v1277_v51 = vld [vmem:[%s1693_s17 + $0xa8] sm:$0xf0] }
  0x59   : > { %859 = vmatpush.bf16.msrb.mxu2 %v1248_v59  ;;  %v1276_v50 = vor.u32 %v1384_v48, %v1275_v47  ;;  %v1280_v52 = vor.u32 %v1383_v49, %v1277_v51  ;;  %v1195_v53 = vld [vmem:[%s1693_s17] sm:$0xf]  ;;  %v1364_v54 = vld [vmem:[%s1693_s17 + $0x4] sm:$0xf0]  ;;  %v1363_v55 = vld [vmem:[%s1693_s17 + $0x4] sm:$0xf] }
  0x5a   : > { %845 = vmatpush.bf16.msrb.mxu1 %v1308_v1  ;;  %v1196_v56 = vor.u32 %v1364_v54, %v1195_v53  ;;  %v1197_v57 = vld [vmem:[%s1693_s17 + $0x8] sm:$0xf0]  ;;  %v1267_v59 = vld [vmem:[%s1693_s17 + $0x90] sm:$0xf]  ;;  %v1382_v60 = vld [vmem:[%s1693_s17 + $0x94] sm:$0xf0] }
  0x5b   : > { %873 = vmatpush.bf16.msrb.mxu3 %v1312_v3  ;;  %v1200_v58 = vor.u32 %v1363_v55, %v1197_v57  ;;  %v1381_v61 = vld [vmem:[%s1693_s17 + $0x94] sm:$0xf]  ;;  %v1268_v62 = vor.u32 %v1382_v60, %v1267_v59  ;;  %v1269_v63 = vld [vmem:[%s1693_s17 + $0x98] sm:$0xf0]  ;;  %v1259_v1 = vld [vmem:[%s1693_s17 + $0x80] sm:$0xf] }
  0x5c   : > { %832 = vmatpush.bf16.msrb.mxu0 %v1236_v2  ;;  %v1272_v0 = vor.u32 %v1381_v61, %v1269_v63  ;;  %v1380_v2 = vld [vmem:[%s1693_s17 + $0x84] sm:$0xf0]  ;;  %v1379_v3 = vld [vmem:[%s1693_s17 + $0x84] sm:$0xf]  ;;  %v1261_v5 = vld [vmem:[%s1693_s17 + $0x88] sm:$0xf0] }
  0x5d   : > { %860 = vmatpush.bf16.msrb.mxu2 %v1240_v4  ;;  %v1260_v4 = vor.u32 %v1380_v2, %v1259_v1  ;;  %v1264_v6 = vor.u32 %v1379_v3, %v1261_v5  ;;  %v393_v7 = vld [vmem:[%s341_s24] sm:$0x3]  ;;  %v632_v36 = vld [vmem:[#allocation2 + $0x10] sm:$0xff]  ;;  %v634_v45 = vld [vmem:[#allocation2 + $0x18] sm:$0xff]  ;;  %p1321_p1 = scmp.ne.s32.totalorder %s1565_s21, 1 }
  0x5e   : > { %846 = vmatpush.bf16.msrb.mxu1 %v1300_v14  ;;  %v394_v8 = vunpack.c.l.bf16 %v393_v7  ;;  %v633_v41 = vld [vmem:[#allocation2] sm:$0xff]  ;;  %v635_v51 = vld [vmem:[#allocation2 + $0x8] sm:$0xff] }
  0x5f   : > { %874 = vmatpush.bf16.msrb.mxu3 %v1304_v16 }
  0x60   : > { %833 = vmatpush.bf16.msrb.mxu0 %v1228_v9  ;;  %v396_v9 = vperm.slane %v394_v8, 0  ;;  %v397_v13 = vperm.slane %v394_v8, 2 }
  0x61   : > { %861 = vmatpush.bf16.msrb.mxu2 %v1232_v10 }
  0x62   : > { %847 = vmatpush.bf16.msrb.mxu1 %v1292_v26  ;;  %v400_v11 = vperm.slane %v396_v9, 0  ;;  %v401_v16 = vperm.slane %v397_v13, 0 }
  0x63   : > { %875 = vmatpush.bf16.msrb.mxu3 %v1296_v28 }
  0x64   : > { %834 = vmatpush.bf16.msrb.mxu0 %v1220_v20 }
  0x65   : > { %862 = vmatpush.bf16.msrb.mxu2 %v1224_v22 }
  0x66   : > { %848 = vmatpush.bf16.msrb.mxu1 %v1284_v37 }
  0x67   : > { %876 = vmatpush.bf16.msrb.mxu3 %v1288_v40 }
  0x68   : > { %835 = vmatpush.bf16.msrb.mxu0 %v1212_v31 }
  0x69   : > { %863 = vmatpush.bf16.msrb.mxu2 %v1216_v34 }
  0x6a   : > { %849 = vmatpush.bf16.msrb.mxu1 %v1276_v50 }
  0x6b   : > { %877 = vmatpush.bf16.msrb.mxu3 %v1280_v52 }
  0x6c   : > { %836 = vmatpush.bf16.msrb.mxu0 %v1204_v44 }
  0x6d   : > { %864 = vmatpush.bf16.msrb.mxu2 %v1208_v46 }
  0x6e   : > { %850 = vmatpush.bf16.msrb.mxu1 %v1268_v62 }
  0x6f   : > { %878 = vmatpush.bf16.msrb.mxu3 %v1272_v0 }
  0x70   : > { %837 = vmatpush.bf16.msrb.mxu0 %v1196_v56 }
  0x71   : > { %865 = vmatpush.bf16.msrb.mxu2 %v1200_v58 }
  0x72   : > { %851 = vmatpush.bf16.msrb.mxu1 %v1260_v4 }
  0x73   : > { %879 = vmatpush.bf16.msrb.mxu3 %v1264_v6 }
  0xd0   : > { %v581_v10 = vpop.f32.mrf.mxu0 }
  0xd1   : > { %v595_v12 = vpop.f32.mrf.mxu1  ;;  %v582_v14 = vadd.f32 %v581_v10, %v400_v11 }
  0xd3   : > { %v596_v19 = vadd.f32 %v595_v12, %v582_v14 }
  0xd5   : > { %v628_v24 = vmax.f32 %v596_v19, 0.0 }
  0xd8   : > { %v623_v17 = vpop.f32.mrf.mxu3  ;;  %v583_v18 = vpop.f32.mrf.mxu0 }
  0xd9   : > { %v609_v15 = vpop.f32.mrf.mxu2  ;;  %v584_v20 = vadd.f32 %v583_v18, %v400_v11  ;;  %v597_v21 = vpop.f32.mrf.mxu1 }
  0xda   : > { %v610_v23 = vadd.f32 %v609_v15, %v401_v16 }
  0xdb   : > { %v598_v22 = vadd.f32 %v597_v21, %v584_v20 }
  0xdc   : > { %v624_v28 = vadd.f32 %v623_v17, %v610_v23 }
  0xdd   : > { %v630_v25 = vmax.f32 %v598_v22, 0.0 }
  0xde   : > { %v629_v32 = vmax.f32 %v624_v28, 0.0 }
  0xdf   : > { %v636_v26 = vpack.c.bf16 %v630_v25, %v628_v24 }
  0xe0   : > { %v625_v30 = vpop.f32.mrf.mxu3 }
  0xe1   : > { %v611_v27 = vpop.f32.mrf.mxu2  ;;  %838 = vmatmul.bf16.vlgmr.msrb.gmra.mxu0 %v636_v26  ;;  %866 = vmatmul.bf16.vlgmr.msrb.gmra.mxu2 %v636_v26 }
  0xe2   : > { %v612_v29 = vadd.f32 %v611_v27, %v401_v16 }
  0xe4   : > { %v626_v31 = vadd.f32 %v625_v30, %v612_v29 }
  0xe6   : > { %v631_v33 = vmax.f32 %v626_v31, 0.0 }
  0xe8   : > { %v637_v34 = vpack.c.bf16 %v631_v33, %v629_v32 }
  0xea   : > { %852 = vmatmul.bf16.vlgmr.msrb.gmra.mxu1 %v637_v34  ;;  %880 = vmatmul.bf16.vlgmr.msrb.gmra.mxu3 %v637_v34 }
 0x15e   : > { %v839_v35 = vpop.f32.mrf.mxu0 }
 0x164   : > { %v867_v40 = vpop.f32.mrf.mxu2 }
 0x166   : > { %v841_v44 = vpop.f32.mrf.mxu0 }
 0x167   : > { %v853_v37 = vpop.f32.mrf.mxu1 }
 0x168   : > { %v854_v38 = vadd.f32 %v853_v37, %v839_v35 }
 0x16a   : > { %v886_v39 = vadd.f32 %v854_v38, %v632_v36 }
 0x16c   : > { %890 = vst [vmem:[#allocation2 + $0x10] sm:$0xff] %v886_v39  ;;  %v869_v50 = vpop.f32.mrf.mxu2 }
 0x16d   : > { %v881_v42 = vpop.f32.mrf.mxu3 }
 0x16e   : > { %v882_v43 = vadd.f32 %v881_v42, %v867_v40 }
 0x16f   : > { %v855_v46 = vpop.f32.mrf.mxu1 }
 0x170   : > { %v887_v47 = vadd.f32 %v882_v43, %v633_v41  ;;  %v856_v48 = vadd.f32 %v855_v46, %v841_v44 }
 0x172   : > { %891 = vst [vmem:[#allocation2] sm:$0xff] %v887_v47  ;;  %v888_v49 = vadd.f32 %v856_v48, %v634_v45 }
 0x174   : > { %892 = vst [vmem:[#allocation2 + $0x18] sm:$0xff] %v888_v49 }
 0x175   : > { %v883_v52 = vpop.f32.mrf.mxu3 }
 0x176   : > { %v884_v53 = vadd.f32 %v883_v52, %v869_v50  ;;  %897 = sbr.rel (%p1321_p1) target bundleno = 392 (0x188), region = 56 }
 0x178   : > { %v889_v54 = vadd.f32 %v884_v53, %v635_v51 }
 0x17a   : > { %893 = vst [vmem:[#allocation2 + $0x8] sm:$0xff] %v889_v54 }
 0x17b   : > { %v902_v55 = vld [vmem:[%s1884_s4] sm:$0x3]  ;;  %v898_v57 = vld [vmem:[#allocation2 + $0x10] sm:$0xff]  ;;  %v900_v61 = vld [vmem:[#allocation2 + $0x18] sm:$0xff] }
 0x17c   : > { %v903_v56 = vunpack.c.l.bf16 %v902_v55  ;;  %v899_v60 = vld [vmem:[#allocation2] sm:$0xff] }
 0x17e   : > { %v905_v58 = vperm.slane %v903_v56, 0  ;;  %v906_v59 = vperm.slane %v903_v56, 2 }
 0x180   : > { %v909_v63 = vperm.slane %v905_v58, 0  ;;  %v910_v0 = vperm.slane %v906_v59, 0 }
 0x181   : > { %v901_v62 = vld [vmem:[#allocation2 + $0x8] sm:$0xff] }
 0x182   : > { %v911_v1 = vadd.f32 %v909_v63, %v898_v57  ;;  %v912_v2 = vadd.f32 %v910_v0, %v899_v60  ;;  %v913_v3 = vadd.f32 %v909_v63, %v900_v61  ;;  %v914_v4 = vadd.f32 %v910_v0, %v901_v62 }
 0x184   : > { %v915_v5 = vpack.c.bf16 %v912_v2, %v911_v1  ;;  %v916_v6 = vpack.c.bf16 %v914_v4, %v913_v3 }
 0x186   : > { %917 = vst [vmem:[%s1885_s5] sm:$0xff] %v915_v5 }
 0x187   : > { %918 = vst [vmem:[%s1885_s5 + $0x8] sm:$0xff] %v916_v6 }
 0x188 PF: > { %s21_s23 = sadd.s32 1, %s1573_s23   ;;  %s1891_s18 = smov %s1557_s19 }
 0x189   : > { %p18_p2 = scmp.ge.s32.totalorder %s21_s23, 4   ;;  %s1892_s19 = smov %s1561_s20 }
 0x18a   : > { %s1893_s20 = smov %s1658_s30  ;;  %s1894_s21 = smov %s1569_s22 }
 0x18b   : > { %s1895_s22 = smov %s1897_s25  ;;  %20 = sbr.rel (!%p18_p2) target bundleno = 8 (0x8), region = 107 }
 0x190   :  { %943 = vsyncpa [#allocation4], 1 }
 0x191   :  { %945 = vsyncpa [#allocation4 + $0x1], 1 }
 0x192   :  { %946 = vsyncpa [#allocation6], 1 }
 0x193   :  { %948 = vsyncpa [#allocation6 + $0x1], 1 }

// kernel: transformer_forward.69
= control target key start
LH: loop header
LB: loop body
LE: loop exit
PB: predicated region body
PF: predicated region fallthrough
CT: control target
= control target key end

     0   :  { %8 = vsyncpa [#allocation4], 0  ;;  %s629_s0 = inlined_call_operand.vmem [shape: bf16[16,256], index: 0, kind: input, shape index: {}]   ;;  %s630_s1 = inlined_call_operand.hbm [shape: bf16[256,256], index: 1, kind: input, shape index: {}]   ;;  %s631_s2 = inlined_call_operand.vmem [shape: bf16[1,256], index: 2, kind: input, shape index: {}]   ;;  %s632_s3 = inlined_call_operand.hbm [shape: f32[16,256], index: 3, kind: output, shape index: {}]  }
   0x1   :  { %9 = vsyncpa [#allocation5], 0  ;;  %s16_s14 = sshll.u32 %s630_s1, 4  ;;  %s582_s15 = smov [#allocation3]   ;;  %s17_s14 = int_to_ptr.hbm [resolvable:$true] %s16_s14 }
   0x2   :  { %s18_s16 = sshll.u32 %s582_s15, 4  ;;  %s583_s17 = smov 128   ;;  %s19_s16 = int_to_ptr.vmem [resolvable:$true] %s18_s16 }
   0x3   :  { %s584_s18 = smov 8  }
   0x4   :  { %24 = dma.hbm_to_vmem [thread:$0]  %s17_s14, 4096, %s19_s16, [#allocation4], %s583_s17, %s583_s17, %s584_s18  }
   0x5   :  { %578 = dma.done.wait [#allocation4], 4096  }
   0x6   :  { %579 = vsyncadd [#allocation4], 4294963200  ;;  %v420_v0 = vld [vmem:[#allocation3 + $0x70] sm:$0xf]  ;;  %v507_v1 = vld [vmem:[#allocation3 + $0x74] sm:$0xf0] }
   0x7   :  { %v484_v2 = vld [vmem:[#allocation3 + $0xf0] sm:$0xf]  ;;  %v421_v3 = vor.u32 %v507_v1, %v420_v0  ;;  %v523_v4 = vld [vmem:[#allocation3 + $0xf4] sm:$0xf0]  ;;  %v506_v5 = vld [vmem:[#allocation3 + $0x74] sm:$0xf] }
   0x8   :  { %v422_v6 = vld [vmem:[#allocation3 + $0x78] sm:$0xf0]  ;;  %v485_v7 = vor.u32 %v523_v4, %v484_v2  ;;  %v522_v9 = vld [vmem:[#allocation3 + $0xf4] sm:$0xf]  ;;  %v412_v11 = vld [vmem:[#allocation3 + $0x60] sm:$0xf] }
   0x9   :  { %v425_v8 = vor.u32 %v506_v5, %v422_v6  ;;  %v486_v10 = vld [vmem:[#allocation3 + $0xf8] sm:$0xf0]  ;;  %247 = vmatpush.bf16.msra.mxu0 %v421_v3  ;;  %v505_v13 = vld [vmem:[#allocation3 + $0x64] sm:$0xf0]  ;;  %v476_v14 = vld [vmem:[#allocation3 + $0xe0] sm:$0xf] }
   0xa   :  { %v489_v12 = vor.u32 %v522_v9, %v486_v10  ;;  %v521_v15 = vld [vmem:[#allocation3 + $0xe4] sm:$0xf0]  ;;  %261 = vmatpush.bf16.msra.mxu1 %v485_v7  ;;  %v413_v16 = vor.u32 %v505_v13, %v412_v11  ;;  %v504_v18 = vld [vmem:[#allocation3 + $0x64] sm:$0xf]  ;;  %v414_v19 = vld [vmem:[#allocation3 + $0x68] sm:$0xf0] }
   0xb   :  { %275 = vmatpush.bf16.msra.mxu2 %v425_v8  ;;  %v477_v17 = vor.u32 %v521_v15, %v476_v14  ;;  %v520_v20 = vld [vmem:[#allocation3 + $0xe4] sm:$0xf]  ;;  %v417_v21 = vor.u32 %v504_v18, %v414_v19  ;;  %v478_v22 = vld [vmem:[#allocation3 + $0xe8] sm:$0xf0]  ;;  %v404_v23 = vld [vmem:[#allocation3 + $0x50] sm:$0xf] }
   0xc   :  { %289 = vmatpush.bf16.msra.mxu3 %v489_v12  ;;  %v503_v24 = vld [vmem:[#allocation3 + $0x54] sm:$0xf0]  ;;  %v481_v25 = vor.u32 %v520_v20, %v478_v22  ;;  %v468_v26 = vld [vmem:[#allocation3 + $0xd0] sm:$0xf]  ;;  %v502_v28 = vld [vmem:[#allocation3 + $0x54] sm:$0xf] }
   0xd   :  { %v519_v27 = vld [vmem:[#allocation3 + $0xd4] sm:$0xf0]  ;;  %248 = vmatpush.bf16.msra.mxu0 %v413_v16  ;;  %v405_v29 = vor.u32 %v503_v24, %v404_v23  ;;  %v406_v30 = vld [vmem:[#allocation3 + $0x58] sm:$0xf0]  ;;  %v518_v31 = vld [vmem:[#allocation3 + $0xd4] sm:$0xf] }
   0xe   :  { %v470_v32 = vld [vmem:[#allocation3 + $0xd8] sm:$0xf0]  ;;  %262 = vmatpush.bf16.msra.mxu1 %v477_v17  ;;  %v469_v33 = vor.u32 %v519_v27, %v468_v26  ;;  %v409_v34 = vor.u32 %v502_v28, %v406_v30  ;;  %v396_v35 = vld [vmem:[#allocation3 + $0x40] sm:$0xf]  ;;  %v501_v36 = vld [vmem:[#allocation3 + $0x44] sm:$0xf0] }
   0xf   :  { %276 = vmatpush.bf16.msra.mxu2 %v417_v21  ;;  %v460_v37 = vld [vmem:[#allocation3 + $0xc0] sm:$0xf]  ;;  %v473_v38 = vor.u32 %v518_v31, %v470_v32  ;;  %v517_v39 = vld [vmem:[#allocation3 + $0xc4] sm:$0xf0]  ;;  %v500_v40 = vld [vmem:[#allocation3 + $0x44] sm:$0xf]  ;;  %v397_v44 = vor.u32 %v501_v36, %v396_v35 }
  0x10   :  { %290 = vmatpush.bf16.msra.mxu3 %v481_v25  ;;  %v398_v41 = vld [vmem:[#allocation3 + $0x48] sm:$0xf0]  ;;  %v516_v42 = vld [vmem:[#allocation3 + $0xc4] sm:$0xf]  ;;  %v461_v45 = vor.u32 %v517_v39, %v460_v37  ;;  %v388_v47 = vld [vmem:[#allocation3 + $0x30] sm:$0xf] }
  0x11   :  { %v462_v43 = vld [vmem:[#allocation3 + $0xc8] sm:$0xf0]  ;;  %249 = vmatpush.bf16.msra.mxu0 %v405_v29  ;;  %v401_v46 = vor.u32 %v500_v40, %v398_v41  ;;  %v499_v48 = vld [vmem:[#allocation3 + $0x34] sm:$0xf0]  ;;  %v452_v49 = vld [vmem:[#allocation3 + $0xb0] sm:$0xf] }
  0x12   :  { %263 = vmatpush.bf16.msra.mxu1 %v469_v33  ;;  %v465_v50 = vor.u32 %v516_v42, %v462_v43  ;;  %v515_v51 = vld [vmem:[#allocation3 + $0xb4] sm:$0xf0]  ;;  %v498_v52 = vld [vmem:[#allocation3 + $0x34] sm:$0xf]  ;;  %v390_v53 = vld [vmem:[#allocation3 + $0x38] sm:$0xf0]  ;;  %v389_v56 = vor.u32 %v499_v48, %v388_v47 }
  0x13   :  { %277 = vmatpush.bf16.msra.mxu2 %v409_v34  ;;  %v514_v54 = vld [vmem:[#allocation3 + $0xb4] sm:$0xf]  ;;  %v454_v55 = vld [vmem:[#allocation3 + $0xb8] sm:$0xf0]  ;;  %v453_v57 = vor.u32 %v515_v51, %v452_v49  ;;  %v393_v58 = vor.u32 %v498_v52, %v390_v53  ;;  %v380_v59 = vld [vmem:[#allocation3 + $0x20] sm:$0xf] }
  0x14   :  { %291 = vmatpush.bf16.msra.mxu3 %v473_v38  ;;  %v497_v60 = vld [vmem:[#allocation3 + $0x24] sm:$0xf0]  ;;  %v444_v61 = vld [vmem:[#allocation3 + $0xa0] sm:$0xf]  ;;  %v457_v62 = vor.u32 %v514_v54, %v454_v55  ;;  %v496_v0 = vld [vmem:[#allocation3 + $0x24] sm:$0xf] }
  0x15   :  { %250 = vmatpush.bf16.msra.mxu0 %v397_v44  ;;  %v513_v63 = vld [vmem:[#allocation3 + $0xa4] sm:$0xf0]  ;;  %v382_v1 = vld [vmem:[#allocation3 + $0x28] sm:$0xf0]  ;;  %v512_v2 = vld [vmem:[#allocation3 + $0xa4] sm:$0xf]  ;;  %v381_v4 = vor.u32 %v497_v60, %v380_v59 }
  0x16   :  { %264 = vmatpush.bf16.msra.mxu1 %v461_v45  ;;  %v446_v3 = vld [vmem:[#allocation3 + $0xa8] sm:$0xf0]  ;;  %v445_v5 = vor.u32 %v513_v63, %v444_v61  ;;  %v385_v6 = vor.u32 %v496_v0, %v382_v1  ;;  %v372_v7 = vld [vmem:[#allocation3 + $0x10] sm:$0xf]  ;;  %v495_v8 = vld [vmem:[#allocation3 + $0x14] sm:$0xf0] }
  0x17   :  { %278 = vmatpush.bf16.msra.mxu2 %v401_v46  ;;  %v436_v9 = vld [vmem:[#allocation3 + $0x90] sm:$0xf]  ;;  %v449_v10 = vor.u32 %v512_v2, %v446_v3  ;;  %v511_v11 = vld [vmem:[#allocation3 + $0x94] sm:$0xf0]  ;;  %v494_v12 = vld [vmem:[#allocation3 + $0x14] sm:$0xf]  ;;  %v373_v16 = vor.u32 %v495_v8, %v372_v7 }
  0x18   :  { %292 = vmatpush.bf16.msra.mxu3 %v465_v50  ;;  %v374_v13 = vld [vmem:[#allocation3 + $0x18] sm:$0xf0]  ;;  %v510_v14 = vld [vmem:[#allocation3 + $0x94] sm:$0xf]  ;;  %v437_v17 = vor.u32 %v511_v11, %v436_v9  ;;  %v364_v19 = vld [vmem:[#allocation3] sm:$0xf] }
  0x19   :  { %251 = vmatpush.bf16.msra.mxu0 %v389_v56  ;;  %v438_v15 = vld [vmem:[#allocation3 + $0x98] sm:$0xf0]  ;;  %v377_v18 = vor.u32 %v494_v12, %v374_v13  ;;  %v493_v20 = vld [vmem:[#allocation3 + $0x4] sm:$0xf0]  ;;  %v428_v21 = vld [vmem:[#allocation3 + $0x80] sm:$0xf] }
  0x1a   :  { %265 = vmatpush.bf16.msra.mxu1 %v453_v57  ;;  %v441_v22 = vor.u32 %v510_v14, %v438_v15  ;;  %v509_v23 = vld [vmem:[#allocation3 + $0x84] sm:$0xf0]  ;;  %v492_v24 = vld [vmem:[#allocation3 + $0x4] sm:$0xf]  ;;  %v366_v25 = vld [vmem:[#allocation3 + $0x8] sm:$0xf0]  ;;  %v365_v28 = vor.u32 %v493_v20, %v364_v19 }
  0x1b   :  { %279 = vmatpush.bf16.msra.mxu2 %v393_v58  ;;  %v508_v26 = vld [vmem:[#allocation3 + $0x84] sm:$0xf]  ;;  %v430_v27 = vld [vmem:[#allocation3 + $0x88] sm:$0xf0]  ;;  %v356_v29 = vld [vmem:[%s629_s0] sm:$0xf]  ;;  %v429_v31 = vor.u32 %v509_v23, %v428_v21  ;;  %v369_v32 = vor.u32 %v492_v24, %v366_v25 }
  0x1c   :  { %293 = vmatpush.bf16.msra.mxu3 %v457_v62  ;;  %v491_v30 = vld [vmem:[%s629_s0 + $0x4] sm:$0xf0]  ;;  %v490_v33 = vld [vmem:[%s629_s0 + $0x4] sm:$0xf]  ;;  %v358_v34 = vld [vmem:[%s629_s0 + $0x8] sm:$0xf0]  ;;  %v433_v35 = vor.u32 %v508_v26, %v430_v27 }
  0x1d   :  { %252 = vmatpush.bf16.msra.mxu0 %v381_v4  ;;  %v357_v36 = vor.u32 %v491_v30, %v356_v29  ;;  %v361_v37 = vor.u32 %v490_v33, %v358_v34  ;;  %v318_v38 = vld [vmem:[%s631_s2] sm:$0x3]  ;;  %s585_s0 = smov [#allocation6]   ;;  %s341_s30 = sshll.u32 %s632_s3, 4  ;;  %s342_s30 = int_to_ptr.hbm [resolvable:$true] %s341_s30 }
  0x1e   :  { %266 = vmatpush.bf16.msra.mxu1 %v445_v5  ;;  %v319_v39 = vunpack.c.l.bf16 %v318_v38  ;;  %s339_s2 = sshll.u32 %s585_s0, 4  ;;  %s586_s4 = smov 256   ;;  %s340_s2 = int_to_ptr.vmem [resolvable:$true] %s339_s2 }
  0x1f   :  { %280 = vmatpush.bf16.msra.mxu2 %v385_v6  ;;  %s587_s5 = smov 16  }
  0x20   :  { %294 = vmatpush.bf16.msra.mxu3 %v449_v10  ;;  %v321_v40 = vperm.slane %v319_v39, 0  ;;  %v322_v45 = vperm.slane %v319_v39, 2 }
  0x21   :  { %253 = vmatpush.bf16.msra.mxu0 %v373_v16 }
  0x22   :  { %267 = vmatpush.bf16.msra.mxu1 %v437_v17  ;;  %v325_v42 = vperm.slane %v321_v40, 0  ;;  %v326_v48 = vperm.slane %v322_v45, 0 }
  0x23   :  { %281 = vmatpush.bf16.msra.mxu2 %v377_v18 }
  0x24   :  { %295 = vmatpush.bf16.msra.mxu3 %v441_v22 }
  0x25   :  { %254 = vmatpush.bf16.msra.mxu0 %v365_v28 }
  0x26   :  { %268 = vmatpush.bf16.msra.mxu1 %v429_v31 }
  0x27   :  { %282 = vmatpush.bf16.msra.mxu2 %v369_v32 }
  0x28   :  { %296 = vmatpush.bf16.msra.mxu3 %v433_v35  ;;  %255 = vmatmul.bf16.vlgmr.msra.gmra.mxu0 %v357_v36 }
  0x29   :  { %269 = vmatmul.bf16.vlgmr.msra.gmra.mxu1 %v361_v37 }
  0x2a   :  { %283 = vmatmul.bf16.vlgmr.msra.gmra.mxu2 %v357_v36 }
  0x2b   :  { %297 = vmatmul.bf16.vlgmr.msra.gmra.mxu3 %v361_v37 }
  0xa5   :  { %v256_v41 = vpop.f32.mrf.mxu0 }
  0xa6   :  { %v270_v43 = vpop.f32.mrf.mxu1 }
  0xa7   :  { %v271_v44 = vadd.f32 %v270_v43, %v256_v41 }
  0xa9   :  { %v327_v46 = vadd.f32 %v325_v42, %v271_v44 }
  0xab   :  { %331 = vst [vmem:[#allocation6] sm:$0xff] %v327_v46 }
  0xad   :  { %v284_v47 = vpop.f32.mrf.mxu2  ;;  %v258_v50 = vpop.f32.mrf.mxu0 }
  0xae   :  { %v298_v49 = vpop.f32.mrf.mxu3  ;;  %v272_v52 = vpop.f32.mrf.mxu1 }
  0xaf   :  { %v299_v51 = vadd.f32 %v298_v49, %v284_v47  ;;  %v273_v53 = vadd.f32 %v272_v52, %v258_v50 }
  0xb1   :  { %v328_v54 = vadd.f32 %v326_v48, %v299_v51  ;;  %v329_v55 = vadd.f32 %v325_v42, %v273_v53 }
  0xb3   :  { %332 = vst [vmem:[#allocation6 + $0x8] sm:$0xff] %v328_v54 }
  0xb4   :  { %333 = vst [vmem:[#allocation6 + $0x10] sm:$0xff] %v329_v55 }
  0xb5   :  { %v286_v56 = vpop.f32.mrf.mxu2 }
  0xb6   :  { %v300_v57 = vpop.f32.mrf.mxu3 }
  0xb7   :  { %v301_v58 = vadd.f32 %v300_v57, %v286_v56 }
  0xb9   :  { %v330_v59 = vadd.f32 %v326_v48, %v301_v58 }
  0xbb   :  { %334 = vst [vmem:[#allocation6 + $0x18] sm:$0xff] %v330_v59 }
  0xbc   :  { %347 = dma.vmem_to_hbm [thread:$0]  %s340_s2, 512, %s342_s30, [#allocation5], %s586_s4, %s586_s4, %s587_s5  }
  0xbd   :  { %580 = dma.done.wait [#allocation5], 512  }
  0xbe   :  { %581 = vsyncadd [#allocation5], 4294966784 }
  0xbf   :  { %352 = vsyncpa [#allocation4], 1 }
  0xc0   :  { %353 = vsyncpa [#allocation5], 1 }

</bundles_post_ra>
